<compile_context>
chip_gen: v7x
topology: tpu7x:2x2x1
jax: 0.10.0
libtpu: 0.0.40
codegen_flags: <defaults>
</compile_context>

<pallas_src>
import functools

import jax
import jax.numpy as jnp
from jax.experimental import pallas as pl
from jax.experimental.pallas import tpu as pltpu

LANE = 128
SUBLANE = 8
NEG_INF = -1e30   # finite sentinel; keeps fully-masked rows NaN-free
SLOPE = 0.01      # LeakyReLU negative slope used inside AttentiveFP


def _round_up(x, m):
    return (x + m - 1) // m * m


def _pad2(a, rows, cols, dtype):
    out = jnp.zeros((rows, cols), dtype)
    return out.at[: a.shape[0], : a.shape[1]].set(a.astype(dtype))


def _pick_tiles(n_nodes):
    """Pick (n_pad, TQ, TK): as big as possible (fewer grid steps / bigger DMAs),
    but keep >=2 dst tiles so the 'parallel' axis can shard across v7x's 2 TCs."""
    n_pad = _round_up(max(n_nodes, 1), LANE)
    if n_pad >= 1024:
        n_pad = _round_up(n_pad, 512)
    elif n_pad >= 512:
        n_pad = _round_up(n_pad, 256)

    def largest_div(cands, ok=lambda c: True):
        for c in cands:
            if n_pad % c == 0 and ok(c):
                return c
        return LANE

    tk = largest_div((512, 256, 128))
    tq = largest_div((512, 256, 128), ok=lambda c: n_pad // c >= 2)
    return n_pad, tq, tk


# --------------------------------------------------------------------------
# Kernel 0: node transform + attention logits
# --------------------------------------------------------------------------
def _node_transform_kernel(x_ref, w1_ref, b1_ref, a2_ref, hout_ref, alpha_ref):
    # h = LeakyReLU(x @ W1 + b1)   (AttentiveFP lin1), bf16 MXU inputs, f32 accum
    h = jnp.dot(x_ref[...], w1_ref[...], preferred_element_type=jnp.float32)
    h = h + b1_ref[...]
    h = jnp.where(h > 0, h, SLOPE * h)
    h_bf = h.astype(jnp.bfloat16)
    hout_ref[...] = h_bf
    # attention logits via one MXU matmul; only lanes 0 (dst) / 1 (src) are real
    logits = jnp.dot(h_bf, a2_ref[...], preferred_element_type=jnp.float32)
    alpha_ref[...] = logits[:, :2]          # tiny (N,2) output, no 128-lane padding


# --------------------------------------------------------------------------
# Kernel 1: flash-style masked GAT attention + ELU + lin2 + encoder ReLU
#   grid = (dst tiles ["parallel"], src tiles ["arbitrary"]); h is VMEM-resident
# --------------------------------------------------------------------------
def _flash_gat_kernel(occ_ref, adst_ref, asrc_ref, mask_ref, h_ref, batt_ref,
                      w2_ref, b2_ref, o_ref, m_sc, l_sc, acc_sc):
    i = pl.program_id(0)
    k = pl.program_id(1)
    nk = pl.num_programs(1)

    @pl.when(k == 0)
    def _init():
        m_sc[...] = jnp.full_like(m_sc, -jnp.inf)
        l_sc[...] = jnp.zeros_like(l_sc)
        acc_sc[...] = jnp.zeros_like(acc_sc)

    # skip all softmax/MXU work for fully-masked (dst,src) tile pairs
    @pl.when(occ_ref[i * nk + k] != 0)
    def _compute():
        tk = mask_ref.shape[1]
        start = pl.multiple_of(k * tk, tk)
        h_src = h_ref[pl.ds(start, tk), :]                 # slice resident h

        s = adst_ref[...] + asrc_ref[...]                  # [TQ,1]+[1,TK] -> [TQ,TK]
        s = jnp.where(s > 0, s, SLOPE * s)                 # LeakyReLU(0.01)
        s = jnp.where(mask_ref[...] != 0, s, NEG_INF)      # int8 occupancy mask

        # online softmax with deferred normalization
        m_prev = m_sc[...]
        m_new = jnp.maximum(m_prev, jnp.max(s, axis=-1, keepdims=True))
        corr = jnp.exp(m_prev - m_new)
        p = jnp.exp(s - m_new)
        l_sc[...] = corr * l_sc[...] + jnp.sum(p, axis=-1, keepdims=True)
        acc_sc[...] = corr * acc_sc[...] + jnp.dot(
            p.astype(jnp.bfloat16), h_src, preferred_element_type=jnp.float32)
        m_sc[...] = m_new

    @pl.when(k == nk - 1)
    def _finalize():
        inv = pl.reciprocal(l_sc[...], approx=True)          # EUP, deferred norm
        att = acc_sc[...] * inv + batt_ref[...]              # attention output
        att = jnp.where(att > 0, att, jnp.exp(att) - 1.0)    # ELU (AttentiveFP)
        node = jnp.dot(att.astype(jnp.bfloat16), w2_ref[...],
                       preferred_element_type=jnp.float32) + b2_ref[...]  # lin2
        node = jnp.maximum(node, 0.0)                        # encoder nn.ReLU
        o_ref[...] = node.astype(o_ref.dtype)


# --------------------------------------------------------------------------
# Kernel 2: global mean pool (1/count folded into pool matrix) + fc1
# --------------------------------------------------------------------------
def _pool_fc_kernel(pool_ref, node_ref, wfc_ref, bfc_ref, o_ref, acc_sc):
    k = pl.program_id(0)

    @pl.when(k == 0)
    def _init():
        acc_sc[...] = jnp.zeros_like(acc_sc)

    acc_sc[...] += jnp.dot(pool_ref[...], node_ref[...],
                           preferred_element_type=jnp.float32)

    @pl.when(k == pl.num_programs(0) - 1)
    def _finalize():
        y = jnp.dot(acc_sc[...].astype(jnp.bfloat16), wfc_ref[...],
                    preferred_element_type=jnp.float32) + bfc_ref[...]
        o_ref[...] = y


# --------------------------------------------------------------------------
# Wrapper
# --------------------------------------------------------------------------
@functools.partial(jax.jit, static_argnames=("n_graphs",))
def attentive_fp_encoder(x, edge_src, edge_dst, batch, params, *, n_graphs):
    w1, b1, att_dst, att_src, b_att, w2, b2, wfc, bfc = params
    n_nodes, n_in = x.shape
    att_hid = w1.shape[1]
    n_hid = w2.shape[1]
    n_out = wfc.shape[1]

    n_pad, TQ, TK = _pick_tiles(n_nodes)
    b_pad = _round_up(max(n_graphs, 1), SUBLANE)
    d_in = _round_up(n_in, LANE)
    d_att = _round_up(att_hid, LANE)   # TODO(synk): keep at 32 on v7x if N too big for resident h
    d_hid = _round_up(n_hid, LANE)
    d_out = _round_up(n_out, LANE)
    nq, nk = n_pad // TQ, n_pad // TK

    # ---- plain-JAX glue: pad / pack operands (layout plumbing only) ----
    x_p = _pad2(x, n_pad, d_in, jnp.bfloat16)
    w1_p = _pad2(w1, d_in, d_att, jnp.bfloat16)
    b1_p = _pad2(b1[None, :], 1, d_att, jnp.float32)
    a2 = jnp.zeros((d_att, LANE), jnp.float32)
    a2 = a2.at[:att_hid, 0].set(att_dst)
    a2 = a2.at[:att_hid, 1].set(att_src)
    a2 = a2.astype(jnp.bfloat16)
    batt_p = _pad2(b_att[None, :], 1, d_att, jnp.float32)
    w2_p = _pad2(w2, d_att, d_hid, jnp.bfloat16)
    b2_p = _pad2(b2[None, :], 1, d_hid, jnp.float32)
    wfc_p = _pad2(wfc, d_hid, d_out, jnp.bfloat16)
    bfc_p = _pad2(bfc[None, :], 1, d_out, jnp.float32)

    # int8 occupancy mask built directly in its final dtype (no f32 intermediate);
    # self loops on ALL rows (padded included) keep every softmax row well-defined.
    diag = jnp.arange(n_pad, dtype=jnp.int32)
    mask = jnp.zeros((n_pad, n_pad), jnp.int8)
    mask = mask.at[edge_dst, edge_src].set(1)
    mask = mask.at[diag, diag].set(1)

    # per-(dst-tile, src-tile) occupancy for compute skipping (O(E+N), not O(N^2))
    qt = jnp.concatenate([edge_dst.astype(jnp.int32) // TQ, diag // TQ])
    kt = jnp.concatenate([edge_src.astype(jnp.int32) // TK, diag // TK])
    occ = jnp.zeros((nq, nk), jnp.int32).at[qt, kt].set(1).reshape(nq * nk)

    # mean-pool matrix with 1/count folded in; padded nodes map to no graph
    batch_p = jnp.full((n_pad,), -1, jnp.int32).at[:n_nodes].set(batch)
    pool = (batch_p[None, :] == jnp.arange(b_pad)[:, None]).astype(jnp.float32)
    counts = jnp.maximum(jnp.sum(pool, axis=-1, keepdims=True), 1.0)
    pool_p = (pool / counts).astype(jnp.bfloat16)

    # ---- kernel 0: node transform + attention logits ----
    h_bf, alpha = pl.pallas_call(
        _node_transform_kernel,
        grid=(n_pad // TK,),
        in_specs=[
            pl.BlockSpec((TK, d_in), lambda i: (i, 0)),
            pl.BlockSpec((d_in, d_att), lambda i: (0, 0)),
            pl.BlockSpec((1, d_att), lambda i: (0, 0)),
            pl.BlockSpec((d_att, LANE), lambda i: (0, 0)),
        ],
        out_specs=(
            pl.BlockSpec((TK, d_att), lambda i: (i, 0)),
            pl.BlockSpec((TK, 2), lambda i: (i, 0)),
        ),
        out_shape=(
            jax.ShapeDtypeStruct((n_pad, d_att), jnp.bfloat16),
            jax.ShapeDtypeStruct((n_pad, 2), jnp.float32),
        ),
        compiler_params=pltpu.CompilerParams(dimension_semantics=("parallel",)),
    )(x_p, w1_p, b1_p, a2)

    a_dst_col = alpha[:, 0:1]                   # [n_pad, 1]
    a_src_row = jnp.transpose(alpha[:, 1:2])    # [1, n_pad]

    # VMEM budget for kernel 1 (resident h + big tiles), with headroom; keep
    # under ~48 MiB so it is safe on v7x's 64 MiB physical VMEM as well.
    est = (2 * TQ * TK                      # int8 mask tile, double buffered
           + 2 * n_pad * d_att * 2          # resident h (bf16)
           + 2 * TQ * d_hid * 2             # output tile
           + TQ * d_att * 4 + 2 * TQ * 4    # f32 accumulator + m/l scratch
           + 2 * d_att * d_hid * 2          # W2
           + (1 << 20))
    vmem_limit = int(min(max(2 * est, 16 << 20), 48 << 20))

    # ---- kernel 1: flash-GAT attention -> ELU -> lin2 -> ReLU ----
    node_feat = pl.pallas_call(
        _flash_gat_kernel,
        grid_spec=pltpu.PrefetchScalarGridSpec(
            num_scalar_prefetch=1,
            grid=(nq, nk),
            in_specs=[
                pl.BlockSpec((TQ, 1), lambda i, k, occ: (i, 0)),        # a_dst
                pl.BlockSpec((1, TK), lambda i, k, occ: (0, k)),        # a_src
                pl.BlockSpec((TQ, TK), lambda i, k, occ: (i, k)),       # int8 mask
                pl.BlockSpec((n_pad, d_att), lambda i, k, occ: (0, 0)), # h resident
                pl.BlockSpec((1, d_att), lambda i, k, occ: (0, 0)),     # attention bias
                pl.BlockSpec((d_att, d_hid), lambda i, k, occ: (0, 0)), # W2 (lin2)
                pl.BlockSpec((1, d_hid), lambda i, k, occ: (0, 0)),     # b2
            ],
            out_specs=pl.BlockSpec((TQ, d_hid), lambda i, k, occ: (i, 0)),
            scratch_shapes=[
                pltpu.VMEM((TQ, 1), jnp.float32),      # running max
                pltpu.VMEM((TQ, 1), jnp.float32),      # running sum
                pltpu.VMEM((TQ, d_att), jnp.float32),  # unnormalized accumulator
            ],
        ),
        out_shape=jax.ShapeDtypeStruct((n_pad, d_hid), jnp.bfloat16),
        compiler_params=pltpu.CompilerParams(
            dimension_semantics=("parallel", "arbitrary"),
            vmem_limit_bytes=vmem_limit),
    )(occ, a_dst_col, a_src_row, mask, h_bf, batt_p, w2_p, b2_p)

    # ---- kernel 2: global mean pool + fc1 (kept separate: dst axis of kernel 1
    # stays "parallel" for v7x 2-TC sharding) ----
    y_pad = pl.pallas_call(
        _pool_fc_kernel,
        grid=(n_pad // TK,),
        in_specs=[
            pl.BlockSpec((b_pad, TK), lambda k: (0, k)),
            pl.BlockSpec((TK, d_hid), lambda k: (k, 0)),
            pl.BlockSpec((d_hid, d_out), lambda k: (0, 0)),
            pl.BlockSpec((1, d_out), lambda k: (0, 0)),
        ],
        out_specs=pl.BlockSpec((b_pad, d_out), lambda k: (0, 0)),
        out_shape=jax.ShapeDtypeStruct((b_pad, d_out), jnp.float32),
        scratch_shapes=[pltpu.VMEM((b_pad, d_hid), jnp.float32)],
        compiler_params=pltpu.CompilerParams(dimension_semantics=("arbitrary",)),
    )(pool_p, node_feat, wfc_p, bfc_p)

    return y_pad[:n_graphs, :n_out]


# --------------------------------------------------------------------------
# Pure-JAX reference (f32, same dense-mask semantics) and parameters
# --------------------------------------------------------------------------
def reference_forward(x, edge_src, edge_dst, batch, params, n_graphs):
    w1, b1, att_dst, att_src, b_att, w2, b2, wfc, bfc = params
    n = x.shape[0]
    h = x @ w1 + b1[None, :]
    h = jnp.where(h > 0, h, SLOPE * h)
    a_d = h @ att_dst
    a_s = h @ att_src
    e = a_d[:, None] + a_s[None, :]
    e = jnp.where(e > 0, e, SLOPE * e)
    adj = jnp.zeros((n, n), bool).at[edge_dst, edge_src].set(True)
    adj = adj.at[jnp.arange(n), jnp.arange(n)].set(True)
    e = jnp.where(adj, e, NEG_INF)
    e = e - jnp.max(e, axis=-1, keepdims=True)
    p = jnp.exp(e)
    p = p / jnp.sum(p, axis=-1, keepdims=True)
    agg = p @ h + b_att[None, :]
    agg = jnp.where(agg > 0, agg, jnp.exp(agg) - 1.0)
    node = jnp.maximum(agg @ w2 + b2[None, :], 0.0)
    pool = (batch[None, :] == jnp.arange(n_graphs)[:, None]).astype(jnp.float32)
    cnt = jnp.maximum(jnp.sum(pool, axis=-1, keepdims=True), 1.0)
    pooled = (pool / cnt) @ node
    return pooled @ wfc + bfc[None, :]


def init_params(key, n_in, att_hid, n_hid, n_out):
    ks = jax.random.split(key, 9)
    w1 = jax.random.normal(ks[0], (n_in, att_hid), jnp.float32) / jnp.sqrt(n_in)
    b1 = 0.1 * jax.random.normal(ks[1], (att_hid,), jnp.float32)
    att_dst = jax.random.normal(ks[2], (att_hid,), jnp.float32) / jnp.sqrt(att_hid)
    att_src = jax.random.normal(ks[3], (att_hid,), jnp.float32) / jnp.sqrt(att_hid)
    b_att = 0.1 * jax.random.normal(ks[4], (att_hid,), jnp.float32)
    w2 = jax.random.normal(ks[5], (att_hid, n_hid), jnp.float32) / jnp.sqrt(att_hid)
    b2 = 0.1 * jax.random.normal(ks[6], (n_hid,), jnp.float32)
    wfc = jax.random.normal(ks[7], (n_hid, n_out), jnp.float32) / jnp.sqrt(n_hid)
    bfc = 0.1 * jax.random.normal(ks[8], (n_out,), jnp.float32)
    return (w1, b1, att_dst, att_src, b_att, w2, b2, wfc, bfc)


if __name__ == "__main__":
    # Small shapes consistent with AttentiveFPEncoder(nout=16, nhid=32,
    # attention_hidden=32, n_in=8); 200 nodes / 2 graphs -> n_pad=256, TQ=128,
    # TK=256 (exercises a 2x1 tile grid with unequal TQ/TK).
    N_IN, ATT_HID, N_HID, N_OUT = 8, 32, 32, 16
    N_NODES, N_EDGES, N_GRAPHS = 200, 600, 2

    key = jax.random.PRNGKey(0)
    kx, ke1, ke2, kp = jax.random.split(key, 4)

    x = jax.random.normal(kx, (N_NODES, N_IN), jnp.float32)
    edge_src = jax.random.randint(ke1, (N_EDGES,), 0, N_NODES, dtype=jnp.int32)
    edge_dst = jax.random.randint(ke2, (N_EDGES,), 0, N_NODES, dtype=jnp.int32)
    batch = (jnp.arange(N_NODES, dtype=jnp.int32) >= N_NODES // 2).astype(jnp.int32)

    params = init_params(kp, N_IN, ATT_HID, N_HID, N_OUT)

    out = attentive_fp_encoder(x, edge_src, edge_dst, batch, params,
                               n_graphs=N_GRAPHS)
    out = jax.block_until_ready(out)
    assert out.shape == (N_GRAPHS, N_OUT)

    ref = reference_forward(x, edge_src, edge_dst, batch, params, N_GRAPHS)
    err = float(jnp.max(jnp.abs(out - ref)))
    assert err < 0.25, f"kernel/reference mismatch: max abs err = {err}"
    print("KERNEL_OK")
</pallas_src>

<mosaic_0001>
module attributes {stable_mosaic.version = 11 : i64} {
  func.func @_node_transform_kernel(%arg0: i32, %arg1: memref<256x128xbf16, #tpu.memory_space<vmem>>, %arg2: memref<128x128xbf16, #tpu.memory_space<vmem>>, %arg3: memref<1x128xf32, #tpu.memory_space<vmem>>, %arg4: memref<128x128xbf16, #tpu.memory_space<vmem>>, %arg5: memref<256x128xbf16, #tpu.memory_space<vmem>>, %arg6: memref<256x2xf32, #tpu.memory_space<vmem>>) attributes {dimension_semantics = [#tpu.dimension_semantics<parallel>], iteration_bounds = array<i64: 1>, scalar_prefetch = 0 : i64, scratch_operands = 0 : i64, tpu.core_type = #tpu.core_type<tc>, window_params = [{transform_indices = @transform_0, window_bounds = array<i64: 256, 128>}, {pipeline_mode = #tpu.pipeline_mode<synchronous>, transform_indices = @transform_1, window_bounds = array<i64: 128, 128>}, {pipeline_mode = #tpu.pipeline_mode<synchronous>, transform_indices = @transform_2, window_bounds = array<i64: 1, 128>}, {pipeline_mode = #tpu.pipeline_mode<synchronous>, transform_indices = @transform_3, window_bounds = array<i64: 128, 128>}, {transform_indices = @transform_4, window_bounds = array<i64: 256, 128>}, {transform_indices = @transform_5, window_bounds = array<i64: 256, 2>}]} {
    %c0 = arith.constant 0 : index
    %c0_0 = arith.constant 0 : index
    %0 = vector.load %arg1[%c0, %c0_0] : memref<256x128xbf16, #tpu.memory_space<vmem>>, vector<256x128xbf16>
    %c0_1 = arith.constant 0 : index
    %c0_2 = arith.constant 0 : index
    %1 = vector.load %arg2[%c0_1, %c0_2] : memref<128x128xbf16, #tpu.memory_space<vmem>>, vector<128x128xbf16>
    %cst = arith.constant dense<0.000000e+00> : vector<256x128xf32>
    %2 = tpu.matmul %0, %1, %cst {dimension_numbers = #tpu.dot_dimension_numbers<[1], [0], [0], [1], [0, 0, 1, 1], [], []>} : vector<256x128xbf16>, vector<128x128xbf16>, vector<256x128xf32> -> vector<256x128xf32>
    %c0_3 = arith.constant 0 : index
    %c0_4 = arith.constant 0 : index
    %3 = vector.load %arg3[%c0_3, %c0_4] : memref<1x128xf32, #tpu.memory_space<vmem>>, vector<1x128xf32>
    %4 = vector.broadcast %3 : vector<1x128xf32> to vector<256x128xf32>
    %5 = arith.addf %2, %4 : vector<256x128xf32>
    %cst_5 = arith.constant 0.000000e+00 : f32
    %6 = vector.broadcast %cst_5 : f32 to vector<256x128xf32>
    %7 = arith.cmpf ogt, %5, %6 : vector<256x128xf32>
    %cst_6 = arith.constant 0.00999999977 : f32
    %8 = vector.broadcast %cst_6 : f32 to vector<256x128xf32>
    %9 = arith.mulf %8, %5 : vector<256x128xf32>
    %10 = arith.select %7, %5, %9 : vector<256x128xi1>, vector<256x128xf32>
    %11 = arith.truncf %10 : vector<256x128xf32> to vector<256x128xbf16>
    %c0_7 = arith.constant 0 : index
    %c0_8 = arith.constant 0 : index
    %12 = vector.load %arg5[%c0_7, %c0_8] : memref<256x128xbf16, #tpu.memory_space<vmem>>, vector<256x128xbf16>
    tpu.vector_store %arg5[%c0_7, %c0_8], %11 {strides = array<i32>} : memref<256x128xbf16, #tpu.memory_space<vmem>>, vector<256x128xbf16>,
    %c0_9 = arith.constant 0 : index
    %c0_10 = arith.constant 0 : index
    %13 = vector.load %arg4[%c0_9, %c0_10] : memref<128x128xbf16, #tpu.memory_space<vmem>>, vector<128x128xbf16>
    %cst_11 = arith.constant dense<0.000000e+00> : vector<256x128xf32>
    %14 = tpu.matmul %11, %13, %cst_11 {dimension_numbers = #tpu.dot_dimension_numbers<[1], [0], [0], [1], [0, 0, 1, 1], [], []>} : vector<256x128xbf16>, vector<128x128xbf16>, vector<256x128xf32> -> vector<256x128xf32>
    %15 = vector.extract_strided_slice %14 {offsets = [0, 0], sizes = [256, 2], strides = [1, 1]} : vector<256x128xf32> to vector<256x2xf32>
    %c0_12 = arith.constant 0 : index
    %c0_13 = arith.constant 0 : index
    %16 = vector.load %arg6[%c0_12, %c0_13] : memref<256x2xf32, #tpu.memory_space<vmem>>, vector<256x2xf32>
    tpu.vector_store %arg6[%c0_12, %c0_13], %15 {strides = array<i32>} : memref<256x2xf32, #tpu.memory_space<vmem>>, vector<256x2xf32>,
    return
  }
  func.func @transform_0(%arg0: i32) -> (i32, i32) {
    %c0_i32 = arith.constant 0 : i32
    %c0_i32_0 = arith.constant 0 : i32
    return %arg0, %c0_i32 : i32, i32
  }
  func.func @transform_1(%arg0: i32) -> (i32, i32) {
    %c0_i32 = arith.constant 0 : i32
    %c0_i32_0 = arith.constant 0 : i32
    %c0_i32_1 = arith.constant 0 : i32
    return %c0_i32, %c0_i32_0 : i32, i32
  }
  func.func @transform_2(%arg0: i32) -> (i32, i32) {
    %c0_i32 = arith.constant 0 : i32
    %c0_i32_0 = arith.constant 0 : i32
    %c0_i32_1 = arith.constant 0 : i32
    return %c0_i32, %c0_i32_0 : i32, i32
  }
  func.func @transform_3(%arg0: i32) -> (i32, i32) {
    %c0_i32 = arith.constant 0 : i32
    %c0_i32_0 = arith.constant 0 : i32
    %c0_i32_1 = arith.constant 0 : i32
    return %c0_i32, %c0_i32_0 : i32, i32
  }
  func.func @transform_4(%arg0: i32) -> (i32, i32) {
    %c0_i32 = arith.constant 0 : i32
    %c0_i32_0 = arith.constant 0 : i32
    return %arg0, %c0_i32 : i32, i32
  }
  func.func @transform_5(%arg0: i32) -> (i32, i32) {
    %c0_i32 = arith.constant 0 : i32
    %c0_i32_0 = arith.constant 0 : i32
    return %arg0, %c0_i32 : i32, i32
  }
}

module attributes {stable_mosaic.version = 11 : i64} {
  func.func @_flash_gat_kernel(%arg0: i32, %arg1: i32, %arg2: memref<2xi32, #tpu.memory_space<smem>>, %arg3: memref<128x1xf32, #tpu.memory_space<vmem>>, %arg4: memref<1x256xf32, #tpu.memory_space<vmem>>, %arg5: memref<128x256xi8, #tpu.memory_space<vmem>>, %arg6: memref<256x128xbf16, #tpu.memory_space<vmem>>, %arg7: memref<1x128xf32, #tpu.memory_space<vmem>>, %arg8: memref<128x128xbf16, #tpu.memory_space<vmem>>, %arg9: memref<1x128xf32, #tpu.memory_space<vmem>>, %arg10: memref<128x128xbf16, #tpu.memory_space<vmem>>, %arg11: memref<128x1xf32, #tpu.memory_space<vmem>>, %arg12: memref<128x1xf32, #tpu.memory_space<vmem>>, %arg13: memref<128x128xf32, #tpu.memory_space<vmem>>) attributes {dimension_semantics = [#tpu.dimension_semantics<parallel>, #tpu.dimension_semantics<arbitrary>], iteration_bounds = array<i64: 2, 1>, scalar_prefetch = 1 : i64, scratch_operands = 3 : i64, tpu.core_type = #tpu.core_type<tc>, window_params = [{transform_indices = @transform_0, window_bounds = array<i64: 128, 1>}, {transform_indices = @transform_1, window_bounds = array<i64: 1, 256>}, {transform_indices = @transform_2, window_bounds = array<i64: 128, 256>}, {pipeline_mode = #tpu.pipeline_mode<synchronous>, transform_indices = @transform_3, window_bounds = array<i64: 256, 128>}, {pipeline_mode = #tpu.pipeline_mode<synchronous>, transform_indices = @transform_4, window_bounds = array<i64: 1, 128>}, {pipeline_mode = #tpu.pipeline_mode<synchronous>, transform_indices = @transform_5, window_bounds = array<i64: 128, 128>}, {pipeline_mode = #tpu.pipeline_mode<synchronous>, transform_indices = @transform_6, window_bounds = array<i64: 1, 128>}, {transform_indices = @transform_7, window_bounds = array<i64: 128, 128>}]} {
    %c0_i32 = arith.constant 0 : i32
    %0 = arith.cmpi eq, %arg1, %c0_i32 : i32
    %1 = arith.extui %0 : i1 to i32
    %c0_i32_0 = arith.constant 0 : i32
    %2 = arith.cmpi ne, %1, %c0_i32_0 : i32
    scf.if %2 {
      %cst = arith.constant 0xFF800000 : f32
      %13 = vector.broadcast %cst : f32 to vector<128x1xf32>
      %c0 = arith.constant 0 : index
      %c0_5 = arith.constant 0 : index
      %14 = vector.load %arg11[%c0, %c0_5] : memref<128x1xf32, #tpu.memory_space<vmem>>, vector<128x1xf32>
      tpu.vector_store %arg11[%c0, %c0_5], %13 {strides = array<i32>} : memref<128x1xf32, #tpu.memory_space<vmem>>, vector<128x1xf32>,
      %cst_6 = arith.constant 0.000000e+00 : f32
      %15 = vector.broadcast %cst_6 : f32 to vector<128x1xf32>
      %c0_7 = arith.constant 0 : index
      %c0_8 = arith.constant 0 : index
      %16 = vector.load %arg12[%c0_7, %c0_8] : memref<128x1xf32, #tpu.memory_space<vmem>>, vector<128x1xf32>
      tpu.vector_store %arg12[%c0_7, %c0_8], %15 {strides = array<i32>} : memref<128x1xf32, #tpu.memory_space<vmem>>, vector<128x1xf32>,
      %cst_9 = arith.constant 0.000000e+00 : f32
      %17 = vector.broadcast %cst_9 : f32 to vector<128x128xf32>
      %c0_10 = arith.constant 0 : index
      %c0_11 = arith.constant 0 : index
      %18 = vector.load %arg13[%c0_10, %c0_11] : memref<128x128xf32, #tpu.memory_space<vmem>>, vector<128x128xf32>
      tpu.vector_store %arg13[%c0_10, %c0_11], %17 {strides = array<i32>} : memref<128x128xf32, #tpu.memory_space<vmem>>, vector<128x128xf32>,
    } else {
    }
    %c1_i32 = arith.constant 1 : i32
    %3 = arith.muli %arg0, %c1_i32 : i32
    %4 = arith.addi %3, %arg1 : i32
    %5 = arith.index_cast %4 : i32 to index
    %6 = memref.load %arg2[%5] : memref<2xi32, #tpu.memory_space<smem>>
    %c0_i32_1 = arith.constant 0 : i32
    %7 = arith.cmpi ne, %6, %c0_i32_1 : i32
    %8 = arith.extui %7 : i1 to i32
    %c0_i32_2 = arith.constant 0 : i32
    %9 = arith.cmpi ne, %8, %c0_i32_2 : i32
    scf.if %9 {
      %c256_i32 = arith.constant 256 : i32
      %13 = arith.muli %arg1, %c256_i32 : i32
      %14 = tpu.assume_multiple %13, 256 : i32
      %15 = arith.index_cast %14 : i32 to index
      %c0 = arith.constant 0 : index
      %16 = vector.load %arg6[%15, %c0] : memref<256x128xbf16, #tpu.memory_space<vmem>>, vector<256x128xbf16>
      %c0_5 = arith.constant 0 : index
      %c0_6 = arith.constant 0 : index
      %17 = vector.load %arg3[%c0_5, %c0_6] : memref<128x1xf32, #tpu.memory_space<vmem>>, vector<128x1xf32>
      %c0_7 = arith.constant 0 : index
      %c0_8 = arith.constant 0 : index
      %18 = vector.load %arg4[%c0_7, %c0_8] : memref<1x256xf32, #tpu.memory_space<vmem>>, vector<1x256xf32>
      %19 = vector.broadcast %17 : vector<128x1xf32> to vector<128x256xf32>
      %20 = vector.broadcast %18 : vector<1x256xf32> to vector<128x256xf32>
      %21 = arith.addf %19, %20 : vector<128x256xf32>
      %cst = arith.constant 0.000000e+00 : f32
      %22 = vector.broadcast %cst : f32 to vector<128x256xf32>
      %23 = arith.cmpf ogt, %21, %22 : vector<128x256xf32>
      %cst_9 = arith.constant 0.00999999977 : f32
      %24 = vector.broadcast %cst_9 : f32 to vector<128x256xf32>
      %25 = arith.mulf %24, %21 : vector<128x256xf32>
      %26 = arith.select %23, %21, %25 : vector<128x256xi1>, vector<128x256xf32>
      %c0_10 = arith.constant 0 : index
      %c0_11 = arith.constant 0 : index
      %27 = vector.load %arg5[%c0_10, %c0_11] : memref<128x256xi8, #tpu.memory_space<vmem>>, vector<128x256xi8>
      %c0_i8 = arith.constant 0 : i8
      %28 = vector.broadcast %c0_i8 : i8 to vector<128x256xi8>
      %29 = arith.cmpi ne, %27, %28 : vector<128x256xi8>
      %cst_12 = arith.constant -1.000000e+30 : f32
      %30 = vector.broadcast %cst_12 : f32 to vector<128x256xf32>
      %31 = arith.select %29, %26, %30 : vector<128x256xi1>, vector<128x256xf32>
      %c0_13 = arith.constant 0 : index
      %c0_14 = arith.constant 0 : index
      %32 = vector.load %arg11[%c0_13, %c0_14] : memref<128x1xf32, #tpu.memory_space<vmem>>, vector<128x1xf32>
      %cst_15 = arith.constant dense<0xFF800000> : vector<128xf32>
      %33 = vector.multi_reduction <maximumf>, %31, %cst_15 [1] : vector<128x256xf32> to vector<128xf32>
      %34 = vector.shape_cast %33 : vector<128xf32> to vector<128x1xf32>
      %35 = arith.maximumf %32, %34 : vector<128x1xf32>
      %36 = arith.subf %32, %35 : vector<128x1xf32>
      %37 = math.exp %36 : vector<128x1xf32>
      %38 = vector.broadcast %35 : vector<128x1xf32> to vector<128x256xf32>
      %39 = arith.subf %31, %38 : vector<128x256xf32>
      %40 = math.exp %39 : vector<128x256xf32>
      %c0_16 = arith.constant 0 : index
      %c0_17 = arith.constant 0 : index
      %41 = vector.load %arg12[%c0_16, %c0_17] : memref<128x1xf32, #tpu.memory_space<vmem>>, vector<128x1xf32>
      %42 = arith.mulf %37, %41 : vector<128x1xf32>
      %cst_18 = arith.constant dense<0.000000e+00> : vector<128xf32>
      %43 = vector.multi_reduction <add>, %40, %cst_18 [1] : vector<128x256xf32> to vector<128xf32>
      %44 = vector.shape_cast %43 : vector<128xf32> to vector<128x1xf32>
      %45 = arith.addf %42, %44 : vector<128x1xf32>
      %c0_19 = arith.constant 0 : index
      %c0_20 = arith.constant 0 : index
      %46 = vector.load %arg12[%c0_19, %c0_20] : memref<128x1xf32, #tpu.memory_space<vmem>>, vector<128x1xf32>
      tpu.vector_store %arg12[%c0_19, %c0_20], %45 {strides = array<i32>} : memref<128x1xf32, #tpu.memory_space<vmem>>, vector<128x1xf32>,
      %c0_21 = arith.constant 0 : index
      %c0_22 = arith.constant 0 : index
      %47 = vector.load %arg13[%c0_21, %c0_22] : memref<128x128xf32, #tpu.memory_space<vmem>>, vector<128x128xf32>
      %48 = vector.broadcast %37 : vector<128x1xf32> to vector<128x128xf32>
      %49 = arith.mulf %48, %47 : vector<128x128xf32>
      %50 = arith.truncf %40 : vector<128x256xf32> to vector<128x256xbf16>
      %cst_23 = arith.constant dense<0.000000e+00> : vector<128x128xf32>
      %51 = tpu.matmul %50, %16, %cst_23 {dimension_numbers = #tpu.dot_dimension_numbers<[1], [0], [0], [1], [0, 0, 1, 1], [], []>} : vector<128x256xbf16>, vector<256x128xbf16>, vector<128x128xf32> -> vector<128x128xf32>
      %52 = arith.addf %49, %51 : vector<128x128xf32>
      %c0_24 = arith.constant 0 : index
      %c0_25 = arith.constant 0 : index
      %53 = vector.load %arg13[%c0_24, %c0_25] : memref<128x128xf32, #tpu.memory_space<vmem>>, vector<128x128xf32>
      tpu.vector_store %arg13[%c0_24, %c0_25], %52 {strides = array<i32>} : memref<128x128xf32, #tpu.memory_space<vmem>>, vector<128x128xf32>,
      %c0_26 = arith.constant 0 : index
      %c0_27 = arith.constant 0 : index
      %54 = vector.load %arg11[%c0_26, %c0_27] : memref<128x1xf32, #tpu.memory_space<vmem>>, vector<128x1xf32>
      tpu.vector_store %arg11[%c0_26, %c0_27], %35 {strides = array<i32>} : memref<128x1xf32, #tpu.memory_space<vmem>>, vector<128x1xf32>,
    } else {
    }
    %c0_i32_3 = arith.constant 0 : i32
    %10 = arith.cmpi eq, %arg1, %c0_i32_3 : i32
    %11 = arith.extui %10 : i1 to i32
    %c0_i32_4 = arith.constant 0 : i32
    %12 = arith.cmpi ne, %11, %c0_i32_4 : i32
    scf.if %12 {
      %c0 = arith.constant 0 : index
      %c0_5 = arith.constant 0 : index
      %13 = vector.load %arg12[%c0, %c0_5] : memref<128x1xf32, #tpu.memory_space<vmem>>, vector<128x1xf32>
      %14 = tpu.reciprocal %13 {approx = true} : vector<128x1xf32> -> vector<128x1xf32>
      %c0_6 = arith.constant 0 : index
      %c0_7 = arith.constant 0 : index
      %15 = vector.load %arg13[%c0_6, %c0_7] : memref<128x128xf32, #tpu.memory_space<vmem>>, vector<128x128xf32>
      %16 = vector.broadcast %14 : vector<128x1xf32> to vector<128x128xf32>
      %17 = arith.mulf %15, %16 : vector<128x128xf32>
      %c0_8 = arith.constant 0 : index
      %c0_9 = arith.constant 0 : index
      %18 = vector.load %arg7[%c0_8, %c0_9] : memref<1x128xf32, #tpu.memory_space<vmem>>, vector<1x128xf32>
      %19 = vector.broadcast %18 : vector<1x128xf32> to vector<128x128xf32>
      %20 = arith.addf %17, %19 : vector<128x128xf32>
      %cst = arith.constant 0.000000e+00 : f32
      %21 = vector.broadcast %cst : f32 to vector<128x128xf32>
      %22 = arith.cmpf ogt, %20, %21 : vector<128x128xf32>
      %23 = math.exp %20 : vector<128x128xf32>
      %cst_10 = arith.constant 1.000000e+00 : f32
      %24 = vector.broadcast %cst_10 : f32 to vector<128x128xf32>
      %25 = arith.subf %23, %24 : vector<128x128xf32>
      %26 = arith.select %22, %20, %25 : vector<128x128xi1>, vector<128x128xf32>
      %27 = arith.truncf %26 : vector<128x128xf32> to vector<128x128xbf16>
      %c0_11 = arith.constant 0 : index
      %c0_12 = arith.constant 0 : index
      %28 = vector.load %arg8[%c0_11, %c0_12] : memref<128x128xbf16, #tpu.memory_space<vmem>>, vector<128x128xbf16>
      %cst_13 = arith.constant dense<0.000000e+00> : vector<128x128xf32>
      %29 = tpu.matmul %27, %28, %cst_13 {dimension_numbers = #tpu.dot_dimension_numbers<[1], [0], [0], [1], [0, 0, 1, 1], [], []>} : vector<128x128xbf16>, vector<128x128xbf16>, vector<128x128xf32> -> vector<128x128xf32>
      %c0_14 = arith.constant 0 : index
      %c0_15 = arith.constant 0 : index
      %30 = vector.load %arg9[%c0_14, %c0_15] : memref<1x128xf32, #tpu.memory_space<vmem>>, vector<1x128xf32>
      %31 = vector.broadcast %30 : vector<1x128xf32> to vector<128x128xf32>
      %32 = arith.addf %29, %31 : vector<128x128xf32>
      %cst_16 = arith.constant 0.000000e+00 : f32
      %33 = vector.broadcast %cst_16 : f32 to vector<128x128xf32>
      %34 = arith.maximumf %32, %33 : vector<128x128xf32>
      %35 = arith.truncf %34 : vector<128x128xf32> to vector<128x128xbf16>
      %c0_17 = arith.constant 0 : index
      %c0_18 = arith.constant 0 : index
      %36 = vector.load %arg10[%c0_17, %c0_18] : memref<128x128xbf16, #tpu.memory_space<vmem>>, vector<128x128xbf16>
      tpu.vector_store %arg10[%c0_17, %c0_18], %35 {strides = array<i32>} : memref<128x128xbf16, #tpu.memory_space<vmem>>, vector<128x128xbf16>,
    } else {
    }
    return
  }
  func.func @transform_0(%arg0: i32, %arg1: i32, %arg2: memref<2xi32, #tpu.memory_space<smem>>) -> (i32, i32) {
    %c0_i32 = arith.constant 0 : i32
    %c0_i32_0 = arith.constant 0 : i32
    return %arg0, %c0_i32 : i32, i32
  }
  func.func @transform_1(%arg0: i32, %arg1: i32, %arg2: memref<2xi32, #tpu.memory_space<smem>>) -> (i32, i32) {
    %c0_i32 = arith.constant 0 : i32
    %c0_i32_0 = arith.constant 0 : i32
    return %c0_i32, %arg1 : i32, i32
  }
  func.func @transform_2(%arg0: i32, %arg1: i32, %arg2: memref<2xi32, #tpu.memory_space<smem>>) -> (i32, i32) {
    %c0_i32 = arith.constant 0 : i32
    return %arg0, %arg1 : i32, i32
  }
  func.func @transform_3(%arg0: i32, %arg1: i32, %arg2: memref<2xi32, #tpu.memory_space<smem>>) -> (i32, i32) {
    %c0_i32 = arith.constant 0 : i32
    %c0_i32_0 = arith.constant 0 : i32
    %c0_i32_1 = arith.constant 0 : i32
    return %c0_i32, %c0_i32_0 : i32, i32
  }
  func.func @transform_4(%arg0: i32, %arg1: i32, %arg2: memref<2xi32, #tpu.memory_space<smem>>) -> (i32, i32) {
    %c0_i32 = arith.constant 0 : i32
    %c0_i32_0 = arith.constant 0 : i32
    %c0_i32_1 = arith.constant 0 : i32
    return %c0_i32, %c0_i32_0 : i32, i32
  }
  func.func @transform_5(%arg0: i32, %arg1: i32, %arg2: memref<2xi32, #tpu.memory_space<smem>>) -> (i32, i32) {
    %c0_i32 = arith.constant 0 : i32
    %c0_i32_0 = arith.constant 0 : i32
    %c0_i32_1 = arith.constant 0 : i32
    return %c0_i32, %c0_i32_0 : i32, i32
  }
  func.func @transform_6(%arg0: i32, %arg1: i32, %arg2: memref<2xi32, #tpu.memory_space<smem>>) -> (i32, i32) {
    %c0_i32 = arith.constant 0 : i32
    %c0_i32_0 = arith.constant 0 : i32
    %c0_i32_1 = arith.constant 0 : i32
    return %c0_i32, %c0_i32_0 : i32, i32
  }
  func.func @transform_7(%arg0: i32, %arg1: i32, %arg2: memref<2xi32, #tpu.memory_space<smem>>) -> (i32, i32) {
    %c0_i32 = arith.constant 0 : i32
    %c0_i32_0 = arith.constant 0 : i32
    return %arg0, %c0_i32 : i32, i32
  }
}

module attributes {stable_mosaic.version = 11 : i64} {
  func.func @_pool_fc_kernel(%arg0: i32, %arg1: memref<8x256xbf16, #tpu.memory_space<vmem>>, %arg2: memref<256x128xbf16, #tpu.memory_space<vmem>>, %arg3: memref<128x128xbf16, #tpu.memory_space<vmem>>, %arg4: memref<1x128xf32, #tpu.memory_space<vmem>>, %arg5: memref<8x128xf32, #tpu.memory_space<vmem>>, %arg6: memref<8x128xf32, #tpu.memory_space<vmem>>) attributes {dimension_semantics = [#tpu.dimension_semantics<arbitrary>], iteration_bounds = array<i64: 1>, scalar_prefetch = 0 : i64, scratch_operands = 1 : i64, tpu.core_type = #tpu.core_type<tc>, window_params = [{transform_indices = @transform_0, window_bounds = array<i64: 8, 256>}, {transform_indices = @transform_1, window_bounds = array<i64: 256, 128>}, {pipeline_mode = #tpu.pipeline_mode<synchronous>, transform_indices = @transform_2, window_bounds = array<i64: 128, 128>}, {pipeline_mode = #tpu.pipeline_mode<synchronous>, transform_indices = @transform_3, window_bounds = array<i64: 1, 128>}, {pipeline_mode = #tpu.pipeline_mode<synchronous>, transform_indices = @transform_4, window_bounds = array<i64: 8, 128>}]} {
    %c0_i32 = arith.constant 0 : i32
    %0 = arith.cmpi eq, %arg0, %c0_i32 : i32
    %1 = arith.extui %0 : i1 to i32
    %c0_i32_0 = arith.constant 0 : i32
    %2 = arith.cmpi ne, %1, %c0_i32_0 : i32
    scf.if %2 {
      %cst_10 = arith.constant 0.000000e+00 : f32
      %12 = vector.broadcast %cst_10 : f32 to vector<8x128xf32>
      %c0_11 = arith.constant 0 : index
      %c0_12 = arith.constant 0 : index
      %13 = vector.load %arg6[%c0_11, %c0_12] : memref<8x128xf32, #tpu.memory_space<vmem>>, vector<8x128xf32>
      tpu.vector_store %arg6[%c0_11, %c0_12], %12 {strides = array<i32>} : memref<8x128xf32, #tpu.memory_space<vmem>>, vector<8x128xf32>,
    } else {
    }
    %c0 = arith.constant 0 : index
    %c0_1 = arith.constant 0 : index
    %3 = vector.load %arg6[%c0, %c0_1] : memref<8x128xf32, #tpu.memory_space<vmem>>, vector<8x128xf32>
    %c0_2 = arith.constant 0 : index
    %c0_3 = arith.constant 0 : index
    %4 = vector.load %arg1[%c0_2, %c0_3] : memref<8x256xbf16, #tpu.memory_space<vmem>>, vector<8x256xbf16>
    %c0_4 = arith.constant 0 : index
    %c0_5 = arith.constant 0 : index
    %5 = vector.load %arg2[%c0_4, %c0_5] : memref<256x128xbf16, #tpu.memory_space<vmem>>, vector<256x128xbf16>
    %cst = arith.constant dense<0.000000e+00> : vector<8x128xf32>
    %6 = tpu.matmul %4, %5, %cst {dimension_numbers = #tpu.dot_dimension_numbers<[1], [0], [0], [1], [0, 0, 1, 1], [], []>} : vector<8x256xbf16>, vector<256x128xbf16>, vector<8x128xf32> -> vector<8x128xf32>
    %7 = arith.addf %3, %6 : vector<8x128xf32>
    %c0_6 = arith.constant 0 : index
    %c0_7 = arith.constant 0 : index
    %8 = vector.load %arg6[%c0_6, %c0_7] : memref<8x128xf32, #tpu.memory_space<vmem>>, vector<8x128xf32>
    tpu.vector_store %arg6[%c0_6, %c0_7], %7 {strides = array<i32>} : memref<8x128xf32, #tpu.memory_space<vmem>>, vector<8x128xf32>,
    %c0_i32_8 = arith.constant 0 : i32
    %9 = arith.cmpi eq, %arg0, %c0_i32_8 : i32
    %10 = arith.extui %9 : i1 to i32
    %c0_i32_9 = arith.constant 0 : i32
    %11 = arith.cmpi ne, %10, %c0_i32_9 : i32
    scf.if %11 {
      %c0_10 = arith.constant 0 : index
      %c0_11 = arith.constant 0 : index
      %12 = vector.load %arg6[%c0_10, %c0_11] : memref<8x128xf32, #tpu.memory_space<vmem>>, vector<8x128xf32>
      %13 = arith.truncf %12 : vector<8x128xf32> to vector<8x128xbf16>
      %c0_12 = arith.constant 0 : index
      %c0_13 = arith.constant 0 : index
      %14 = vector.load %arg3[%c0_12, %c0_13] : memref<128x128xbf16, #tpu.memory_space<vmem>>, vector<128x128xbf16>
      %cst_14 = arith.constant dense<0.000000e+00> : vector<8x128xf32>
      %15 = tpu.matmul %13, %14, %cst_14 {dimension_numbers = #tpu.dot_dimension_numbers<[1], [0], [0], [1], [0, 0, 1, 1], [], []>} : vector<8x128xbf16>, vector<128x128xbf16>, vector<8x128xf32> -> vector<8x128xf32>
      %c0_15 = arith.constant 0 : index
      %c0_16 = arith.constant 0 : index
      %16 = vector.load %arg4[%c0_15, %c0_16] : memref<1x128xf32, #tpu.memory_space<vmem>>, vector<1x128xf32>
      %17 = vector.broadcast %16 : vector<1x128xf32> to vector<8x128xf32>
      %18 = arith.addf %15, %17 : vector<8x128xf32>
      %c0_17 = arith.constant 0 : index
      %c0_18 = arith.constant 0 : index
      %19 = vector.load %arg5[%c0_17, %c0_18] : memref<8x128xf32, #tpu.memory_space<vmem>>, vector<8x128xf32>
      tpu.vector_store %arg5[%c0_17, %c0_18], %18 {strides = array<i32>} : memref<8x128xf32, #tpu.memory_space<vmem>>, vector<8x128xf32>,
    } else {
    }
    return
  }
  func.func @transform_0(%arg0: i32) -> (i32, i32) {
    %c0_i32 = arith.constant 0 : i32
    %c0_i32_0 = arith.constant 0 : i32
    return %c0_i32, %arg0 : i32, i32
  }
  func.func @transform_1(%arg0: i32) -> (i32, i32) {
    %c0_i32 = arith.constant 0 : i32
    %c0_i32_0 = arith.constant 0 : i32
    return %arg0, %c0_i32 : i32, i32
  }
  func.func @transform_2(%arg0: i32) -> (i32, i32) {
    %c0_i32 = arith.constant 0 : i32
    %c0_i32_0 = arith.constant 0 : i32
    %c0_i32_1 = arith.constant 0 : i32
    return %c0_i32, %c0_i32_0 : i32, i32
  }
  func.func @transform_3(%arg0: i32) -> (i32, i32) {
    %c0_i32 = arith.constant 0 : i32
    %c0_i32_0 = arith.constant 0 : i32
    %c0_i32_1 = arith.constant 0 : i32
    return %c0_i32, %c0_i32_0 : i32, i32
  }
  func.func @transform_4(%arg0: i32) -> (i32, i32) {
    %c0_i32 = arith.constant 0 : i32
    %c0_i32_0 = arith.constant 0 : i32
    %c0_i32_1 = arith.constant 0 : i32
    return %c0_i32, %c0_i32_0 : i32, i32
  }
}

</mosaic_0001>

<bundles_post_ra>
// kernel: attentive_fp_encoder.3
= control target key start
LH: loop header
LB: loop body
LE: loop exit
PB: predicated region body
PF: predicated region fallthrough
CT: control target
= control target key end

     0   :  { %s1609_s1 = inlined_call_operand.vmem [shape: bf16[128,128], index: 1, kind: input, shape index: {}]   ;;  %s1610_s0 = inlined_call_operand.vmem [shape: bf16[256,128], index: 0, kind: input, shape index: {}]   ;;  %s1611_s3 = inlined_call_operand.vmem [shape: bf16[128,128], index: 3, kind: input, shape index: {}]   ;;  %s1612_s2 = inlined_call_operand.vmem [shape: f32[1,128], index: 2, kind: input, shape index: {}]   ;;  %s1613_s4 = inlined_call_operand.vmem [shape: bf16[256,128], index: 4, kind: output, shape index: {0}]   ;;  %s1614_s5 = inlined_call_operand.vmem [shape: f32[256,2], index: 5, kind: output, shape index: {1}]  }
   0x1   :  { %v1238_v0 = vld [vmem:[%s1609_s1] sm:$0xff]   ;;  %v1239_v1 = vld [vmem:[%s1609_s1 + $0x8] sm:$0xff]   ;;  %v1240_v2 = vld [vmem:[%s1609_s1 + $0x10] sm:$0xff]  }
   0x2   :  { %1142 = vmatprep.subr.bf16.mxu0 %v1238_v0  ;;  %v1241_v3 = vld [vmem:[%s1609_s1 + $0x18] sm:$0xff]   ;;  %v1246_v4 = vld [vmem:[%s1610_s0] sm:$0xff]   ;;  %v1243_v6 = vld [vmem:[%s1609_s1 + $0x28] sm:$0xff]  }
   0x3   :  { %1143 = vmatpush3.bf16.msra.mxu0 %v1238_v0  ;;  %1158 = vmatprep.mubr.bf16.mxu0 %v1246_v4  ;;  %v1242_v5 = vld [vmem:[%s1609_s1 + $0x20] sm:$0xff]   ;;  %v1244_v7 = vld [vmem:[%s1609_s1 + $0x30] sm:$0xff]   ;;  %v1245_v8 = vld [vmem:[%s1609_s1 + $0x38] sm:$0xff]  }
   0x4   :  { %1144 = vmatprep.subr.bf16.mxu0 %v1239_v1  ;;  %v1262_v9 = vld [vmem:[%s1611_s3] sm:$0xff]   ;;  %v1263_v10 = vld [vmem:[%s1611_s3 + $0x8] sm:$0xff]   ;;  %v1264_v12 = vld [vmem:[%s1611_s3 + $0x10] sm:$0xff]  }
   0x5   :  { %1190 = vmatprep.subr.bf16.mxu1 %v1262_v9  ;;  %v1247_v11 = vld [vmem:[%s1610_s0 + $0x8] sm:$0xff]   ;;  %v1248_v13 = vld [vmem:[%s1610_s0 + $0x10] sm:$0xff]   ;;  %v1265_v14 = vld [vmem:[%s1611_s3 + $0x18] sm:$0xff]  }
   0x6   :  { %1191 = vmatpush3.bf16.msra.mxu1 %v1262_v9  ;;  %v1266_v15 = vld [vmem:[%s1611_s3 + $0x20] sm:$0xff]   ;;  %v1249_v16 = vld [vmem:[%s1610_s0 + $0x18] sm:$0xff]   ;;  %v1251_v18 = vld [vmem:[%s1610_s0 + $0x28] sm:$0xff]  }
   0x7   :  { %1145 = vmatpush3.bf16.msra.mxu0 %v1239_v1  ;;  %1192 = vmatprep.subr.bf16.mxu1 %v1263_v10  ;;  %v1250_v17 = vld [vmem:[%s1610_s0 + $0x20] sm:$0xff]   ;;  %v1252_v19 = vld [vmem:[%s1610_s0 + $0x30] sm:$0xff]   ;;  %v1253_v20 = vld [vmem:[%s1610_s0 + $0x38] sm:$0xff]  }
   0x8   :  { %1146 = vmatprep.subr.bf16.mxu0 %v1240_v2  ;;  %v1254_v21 = vld [vmem:[%s1610_s0 + $0x40] sm:$0xff]   ;;  %v1255_v22 = vld [vmem:[%s1610_s0 + $0x48] sm:$0xff]   ;;  %v1256_v23 = vld [vmem:[%s1610_s0 + $0x50] sm:$0xff]  }
   0x9   :  { %v1257_v24 = vld [vmem:[%s1610_s0 + $0x58] sm:$0xff]   ;;  %v1258_v25 = vld [vmem:[%s1610_s0 + $0x60] sm:$0xff]   ;;  %v1259_v26 = vld [vmem:[%s1610_s0 + $0x68] sm:$0xff]  }
   0xa   :  { %1193 = vmatpush3.bf16.msra.mxu1 %v1263_v10  ;;  %v1260_v27 = vld [vmem:[%s1610_s0 + $0x70] sm:$0xff]   ;;  %v1261_v28 = vld [vmem:[%s1610_s0 + $0x78] sm:$0xff]   ;;  %v1267_v29 = vld [vmem:[%s1611_s3 + $0x28] sm:$0xff]  }
   0xb   :  { %1147 = vmatpush3.bf16.msra.mxu0 %v1240_v2  ;;  %1194 = vmatprep.subr.bf16.mxu1 %v1264_v12  ;;  %v1268_v30 = vld [vmem:[%s1611_s3 + $0x30] sm:$0xff]   ;;  %v1269_v31 = vld [vmem:[%s1611_s3 + $0x38] sm:$0xff]   ;;  %v1399_v32 = vld [vmem:[%s1612_s2] ss:$0 sm:$0xff] }
   0xc   :  { %1148 = vmatprep.subr.bf16.mxu0 %v1241_v3 }
   0xe   :  { %1195 = vmatpush3.bf16.msra.mxu1 %v1264_v12 }
   0xf   :  { %1149 = vmatpush3.bf16.msra.mxu0 %v1241_v3  ;;  %1196 = vmatprep.subr.bf16.mxu1 %v1265_v14 }
  0x10   :  { %1150 = vmatprep.subr.bf16.mxu0 %v1242_v5 }
  0x12   :  { %1197 = vmatpush3.bf16.msra.mxu1 %v1265_v14 }
  0x13   :  { %1151 = vmatpush3.bf16.msra.mxu0 %v1242_v5  ;;  %1198 = vmatprep.subr.bf16.mxu1 %v1266_v15 }
  0x14   :  { %1152 = vmatprep.subr.bf16.mxu0 %v1243_v6 }
  0x16   :  { %1199 = vmatpush3.bf16.msra.mxu1 %v1266_v15 }
  0x17   :  { %1153 = vmatpush3.bf16.msra.mxu0 %v1243_v6  ;;  %1200 = vmatprep.subr.bf16.mxu1 %v1267_v29 }
  0x18   :  { %1154 = vmatprep.subr.bf16.mxu0 %v1244_v7 }
  0x1a   :  { %1201 = vmatpush3.bf16.msra.mxu1 %v1267_v29 }
  0x1b   :  { %1155 = vmatpush3.bf16.msra.mxu0 %v1244_v7  ;;  %1202 = vmatprep.subr.bf16.mxu1 %v1268_v30 }
  0x1c   :  { %1156 = vmatprep.subr.bf16.mxu0 %v1245_v8 }
  0x1e   :  { %1203 = vmatpush3.bf16.msra.mxu1 %v1268_v30 }
  0x1f   :  { %1157 = vmatpush3.bf16.msra.mxu0 %v1245_v8  ;;  %1204 = vmatprep.subr.bf16.mxu1 %v1269_v31 }
  0x22   :  { %1159 = vmatmul.mubr.bf16.vlgmr.msra.gmra.mrb[0].mxu0 %v1247_v11  ;;  %1205 = vmatpush3.bf16.msra.mxu1 %v1269_v31 }
  0x23   :  { %1162 = vmatprep.mubr.bf16.mxu0 %v1248_v13 }
  0x2a   :  { %1163 = vmatmul.mubr.bf16.gmra.mrb[4].mxu0 %v1249_v16 }
  0x2b   :  { %1166 = vmatprep.mubr.bf16.mxu0 %v1250_v17 }
  0x32   :  { %1167 = vmatmul.mubr.bf16.gmra.mrb[8].mxu0 %v1251_v18 }
  0x33   :  { %1170 = vmatprep.mubr.bf16.mxu0 %v1252_v19 }
  0x3a   :  { %1171 = vmatmul.mubr.bf16.gmra.mrb[12].mxu0 %v1253_v20 }
  0x3b   :  { %1174 = vmatprep.mubr.bf16.mxu0 %v1254_v21 }
  0x42   :  { %1175 = vmatmul.mubr.bf16.gmra.mrb[16].mxu0 %v1255_v22 }
  0x43   :  { %1178 = vmatprep.mubr.bf16.mxu0 %v1256_v23 }
  0x4a   :  { %1179 = vmatmul.mubr.bf16.gmra.mrb[20].mxu0 %v1257_v24 }
  0x4b   :  { %1182 = vmatprep.mubr.bf16.mxu0 %v1258_v25 }
  0x52   :  { %1183 = vmatmul.mubr.bf16.gmra.mrb[24].mxu0 %v1259_v26 }
  0x53   :  { %1186 = vmatprep.mubr.bf16.mxu0 %v1260_v27 }
  0x5a   :  { %1187 = vmatmul.mubr.bf16.gmra.mrb[28].mxu0 %v1261_v28 }
  0xf5   :  { %v1160_v33 = vpop.f32.mrb[0].mxu0 }
  0xf6   :  { %v262_v34 = vadd.f32 %v1160_v33, %v1399_v32  ;;  %v253_v35 = vpop.f32.mrb[1].mxu0 }
  0xf7   :  { %v254_v36 = vadd.f32 %v1399_v32, %v253_v35  ;;  %v1161_v37 = vpop.f32.mrb[2].mxu0 }
  0xf8   :  { %v414_v38 = vmul.f32 0.01, %v262_v34  ;;  %v265_v39 = vadd.f32 %v1161_v37, %v1399_v32  ;;  %v256_v40 = vpop.f32.mrb[3].mxu0  ;;  %vm382_vm0 = vcmp.gt.f32.partialorder %v262_v34, 0.0 }
  0xf9   :  { %v412_v41 = vmul.f32 0.01, %v254_v36  ;;  %v257_v42 = vadd.f32 %v1399_v32, %v256_v40  ;;  %vm380_vm2 = vcmp.gt.f32.partialorder %v254_v36, 0.0 }
  0xfa   :  { %vm383_vm1 = vcmp.gt.f32.partialorder %v265_v39, 0.0  ;;  %v415_v43 = vmul.f32 0.01, %v265_v39  ;;  %v446_v45 = vsel %vm382_vm0, %v262_v34, %v414_v38 }
  0xfb   :  { %v413_v44 = vmul.f32 0.01, %v257_v42  ;;  %vm381_vm3 = vcmp.gt.f32.partialorder %v257_v42, 0.0  ;;  %v444_v48 = vsel %vm380_vm2, %v254_v36, %v412_v41 }
  0xfc   :  { %v447_v46 = vsel %vm383_vm1, %v265_v39, %v415_v43 }
  0xfd   :  { %v1164_v47 = vpop.f32.mrb[4].mxu0  ;;  %v445_v49 = vsel %vm381_vm3, %v257_v42, %v413_v44  ;;  %v477_v50 = vpack.c.bf16 %v447_v46, %v446_v45 }
  0xfe   :  { %v278_v51 = vadd.f32 %v1164_v47, %v1399_v32  ;;  %v269_v52 = vpop.f32.mrb[5].mxu0  ;;  %v476_v53 = vpack.c.bf16 %v445_v49, %v444_v48 }
  0xff   :  { %v270_v54 = vadd.f32 %v1399_v32, %v269_v52  ;;  %v1165_v55 = vpop.f32.mrb[6].mxu0  ;;  %1079 = vst [vmem:[%s1613_s4 + $0x8] sm:$0xff] %v477_v50  }
 0x100   :  { %v418_v56 = vmul.f32 0.01, %v278_v51  ;;  %v281_v57 = vadd.f32 %v1165_v55, %v1399_v32  ;;  %v272_v58 = vpop.f32.mrb[7].mxu0  ;;  %1003 = vst [vmem:[%s1613_s4] sm:$0xff] %v476_v53   ;;  %1206 = vmatprep.mubr.bf16.mxu1 %v476_v53  ;;  %vm386_vm4 = vcmp.gt.f32.partialorder %v278_v51, 0.0 }
 0x101   :  { %v416_v59 = vmul.f32 0.01, %v270_v54  ;;  %v273_v60 = vadd.f32 %v1399_v32, %v272_v58  ;;  %1207 = vmatmul.mubr.bf16.vlgmr.msra.gmra.mrb[0].mxu1 %v477_v50  ;;  %vm384_vm5 = vcmp.gt.f32.partialorder %v270_v54, 0.0 }
 0x102   :  { %vm387_vm6 = vcmp.gt.f32.partialorder %v281_v57, 0.0  ;;  %v419_v61 = vmul.f32 0.01, %v281_v57  ;;  %v450_v63 = vsel %vm386_vm4, %v278_v51, %v418_v56 }
 0x103   :  { %vm385_vm7 = vcmp.gt.f32.partialorder %v273_v60, 0.0  ;;  %v417_v62 = vmul.f32 0.01, %v273_v60  ;;  %v448_v2 = vsel %vm384_vm5, %v270_v54, %v416_v59 }
 0x104   :  { %v451_v0 = vsel %vm387_vm6, %v281_v57, %v419_v61 }
 0x105   :  { %v1168_v1 = vpop.f32.mrb[8].mxu0  ;;  %v449_v3 = vsel %vm385_vm7, %v273_v60, %v417_v62  ;;  %v479_v4 = vpack.c.bf16 %v451_v0, %v450_v63 }
 0x106   :  { %v294_v5 = vadd.f32 %v1168_v1, %v1399_v32  ;;  %v285_v6 = vpop.f32.mrb[9].mxu0  ;;  %v478_v7 = vpack.c.bf16 %v449_v3, %v448_v2 }
 0x107   :  { %v286_v8 = vadd.f32 %v1399_v32, %v285_v6  ;;  %v1169_v9 = vpop.f32.mrb[10].mxu0  ;;  %1081 = vst [vmem:[%s1613_s4 + $0x18] sm:$0xff] %v479_v4  }
 0x108   :  { %v422_v10 = vmul.f32 0.01, %v294_v5  ;;  %v297_v11 = vadd.f32 %v1169_v9, %v1399_v32  ;;  %v288_v12 = vpop.f32.mrb[11].mxu0  ;;  %1080 = vst [vmem:[%s1613_s4 + $0x10] sm:$0xff] %v478_v7   ;;  %1210 = vmatprep.mubr.bf16.mxu1 %v478_v7  ;;  %vm390_vm8 = vcmp.gt.f32.partialorder %v294_v5, 0.0 }
 0x109   :  { %v420_v13 = vmul.f32 0.01, %v286_v8  ;;  %v289_v14 = vadd.f32 %v1399_v32, %v288_v12  ;;  %1211 = vmatmul.mubr.bf16.gmra.mrb[4].mxu1 %v479_v4  ;;  %vm388_vm9 = vcmp.gt.f32.partialorder %v286_v8, 0.0 }
 0x10a   :  { %vm391_vm10 = vcmp.gt.f32.partialorder %v297_v11, 0.0  ;;  %v423_v15 = vmul.f32 0.01, %v297_v11  ;;  %v454_v17 = vsel %vm390_vm8, %v294_v5, %v422_v10 }
 0x10b   :  { %vm389_vm11 = vcmp.gt.f32.partialorder %v289_v14, 0.0  ;;  %v421_v16 = vmul.f32 0.01, %v289_v14  ;;  %v452_v20 = vsel %vm388_vm9, %v286_v8, %v420_v13 }
 0x10c   :  { %v455_v18 = vsel %vm391_vm10, %v297_v11, %v423_v15 }
 0x10d   :  { %v1172_v19 = vpop.f32.mrb[12].mxu0  ;;  %v453_v21 = vsel %vm389_vm11, %v289_v14, %v421_v16  ;;  %v481_v22 = vpack.c.bf16 %v455_v18, %v454_v17 }
 0x10e   :  { %v310_v23 = vadd.f32 %v1172_v19, %v1399_v32  ;;  %v301_v24 = vpop.f32.mrb[13].mxu0  ;;  %v480_v25 = vpack.c.bf16 %v453_v21, %v452_v20 }
 0x10f   :  { %v302_v26 = vadd.f32 %v1399_v32, %v301_v24  ;;  %v1173_v27 = vpop.f32.mrb[14].mxu0  ;;  %1083 = vst [vmem:[%s1613_s4 + $0x28] sm:$0xff] %v481_v22  }
 0x110   :  { %v426_v28 = vmul.f32 0.01, %v310_v23  ;;  %v313_v29 = vadd.f32 %v1173_v27, %v1399_v32  ;;  %v304_v30 = vpop.f32.mrb[15].mxu0  ;;  %1082 = vst [vmem:[%s1613_s4 + $0x20] sm:$0xff] %v480_v25   ;;  %1214 = vmatprep.mubr.bf16.mxu1 %v480_v25  ;;  %vm394_vm12 = vcmp.gt.f32.partialorder %v310_v23, 0.0 }
 0x111   :  { %v424_v31 = vmul.f32 0.01, %v302_v26  ;;  %v305_v33 = vadd.f32 %v1399_v32, %v304_v30  ;;  %1215 = vmatmul.mubr.bf16.gmra.mrb[8].mxu1 %v481_v22  ;;  %vm392_vm13 = vcmp.gt.f32.partialorder %v302_v26, 0.0 }
 0x112   :  { %vm395_vm14 = vcmp.gt.f32.partialorder %v313_v29, 0.0  ;;  %v427_v34 = vmul.f32 0.01, %v313_v29  ;;  %v458_v36 = vsel %vm394_vm12, %v310_v23, %v426_v28 }
 0x113   :  { %vm393_vm15 = vcmp.gt.f32.partialorder %v305_v33, 0.0  ;;  %v425_v35 = vmul.f32 0.01, %v305_v33  ;;  %v456_v39 = vsel %vm392_vm13, %v302_v26, %v424_v31 }
 0x114   :  { %v459_v37 = vsel %vm395_vm14, %v313_v29, %v427_v34 }
 0x115   :  { %v1176_v38 = vpop.f32.mrb[16].mxu0  ;;  %v457_v40 = vsel %vm393_vm15, %v305_v33, %v425_v35  ;;  %v483_v41 = vpack.c.bf16 %v459_v37, %v458_v36 }
 0x116   :  { %v326_v42 = vadd.f32 %v1176_v38, %v1399_v32  ;;  %v317_v43 = vpop.f32.mrb[17].mxu0  ;;  %v482_v44 = vpack.c.bf16 %v457_v40, %v456_v39 }
 0x117   :  { %v318_v45 = vadd.f32 %v1399_v32, %v317_v43  ;;  %v1177_v46 = vpop.f32.mrb[18].mxu0  ;;  %1085 = vst [vmem:[%s1613_s4 + $0x38] sm:$0xff] %v483_v41  }
 0x118   :  { %v430_v47 = vmul.f32 0.01, %v326_v42  ;;  %v329_v48 = vadd.f32 %v1177_v46, %v1399_v32  ;;  %v320_v49 = vpop.f32.mrb[19].mxu0  ;;  %1084 = vst [vmem:[%s1613_s4 + $0x30] sm:$0xff] %v482_v44   ;;  %1218 = vmatprep.mubr.bf16.mxu1 %v482_v44  ;;  %vm398_vm0 = vcmp.gt.f32.partialorder %v326_v42, 0.0 }
 0x119   :  { %v428_v50 = vmul.f32 0.01, %v318_v45  ;;  %v321_v51 = vadd.f32 %v1399_v32, %v320_v49  ;;  %1219 = vmatmul.mubr.bf16.gmra.mrb[12].mxu1 %v483_v41  ;;  %vm396_vm1 = vcmp.gt.f32.partialorder %v318_v45, 0.0 }
 0x11a   :  { %vm399_vm2 = vcmp.gt.f32.partialorder %v329_v48, 0.0  ;;  %v431_v52 = vmul.f32 0.01, %v329_v48  ;;  %v462_v54 = vsel %vm398_vm0, %v326_v42, %v430_v47  ;;  %vm861_vm0 = vcmask 15360  }
 0x11b   :  { %vm397_vm3 = vcmp.gt.f32.partialorder %v321_v51, 0.0  ;;  %v429_v53 = vmul.f32 0.01, %v321_v51  ;;  %v460_v57 = vsel %vm396_vm1, %v318_v45, %v428_v50 }
 0x11c   :  { %v463_v55 = vsel %vm399_vm2, %v329_v48, %v431_v52 }
 0x11d   :  { %v1180_v56 = vpop.f32.mrb[20].mxu0  ;;  %v461_v58 = vsel %vm397_vm3, %v321_v51, %v429_v53  ;;  %v485_v59 = vpack.c.bf16 %v463_v55, %v462_v54 }
 0x11e   :  { %v342_v60 = vadd.f32 %v1180_v56, %v1399_v32  ;;  %v333_v61 = vpop.f32.mrb[21].mxu0  ;;  %v484_v62 = vpack.c.bf16 %v461_v58, %v460_v57 }
 0x11f   :  { %v334_v63 = vadd.f32 %v1399_v32, %v333_v61  ;;  %v1181_v0 = vpop.f32.mrb[22].mxu0  ;;  %1087 = vst [vmem:[%s1613_s4 + $0x48] sm:$0xff] %v485_v59  }
 0x120   :  { %v434_v1 = vmul.f32 0.01, %v342_v60  ;;  %v345_v2 = vadd.f32 %v1181_v0, %v1399_v32  ;;  %v336_v3 = vpop.f32.mrb[23].mxu0  ;;  %1086 = vst [vmem:[%s1613_s4 + $0x40] sm:$0xff] %v484_v62   ;;  %1222 = vmatprep.mubr.bf16.mxu1 %v484_v62  ;;  %vm402_vm4 = vcmp.gt.f32.partialorder %v342_v60, 0.0 }
 0x121   :  { %v432_v4 = vmul.f32 0.01, %v334_v63  ;;  %v337_v5 = vadd.f32 %v1399_v32, %v336_v3  ;;  %1223 = vmatmul.mubr.bf16.gmra.mrb[16].mxu1 %v485_v59  ;;  %vm400_vm5 = vcmp.gt.f32.partialorder %v334_v63, 0.0 }
 0x122   :  { %vm403_vm6 = vcmp.gt.f32.partialorder %v345_v2, 0.0  ;;  %v435_v6 = vmul.f32 0.01, %v345_v2  ;;  %v466_v8 = vsel %vm402_vm4, %v342_v60, %v434_v1 }
 0x123   :  { %vm401_vm7 = vcmp.gt.f32.partialorder %v337_v5, 0.0  ;;  %v433_v7 = vmul.f32 0.01, %v337_v5  ;;  %v464_v11 = vsel %vm400_vm5, %v334_v63, %v432_v4 }
 0x124   :  { %v467_v9 = vsel %vm403_vm6, %v345_v2, %v435_v6 }
 0x125   :  { %v1184_v10 = vpop.f32.mrb[24].mxu0  ;;  %v465_v12 = vsel %vm401_vm7, %v337_v5, %v433_v7  ;;  %v487_v13 = vpack.c.bf16 %v467_v9, %v466_v8 }
 0x126   :  { %v358_v14 = vadd.f32 %v1184_v10, %v1399_v32  ;;  %v349_v15 = vpop.f32.mrb[25].mxu0  ;;  %v486_v16 = vpack.c.bf16 %v465_v12, %v464_v11 }
 0x127   :  { %v350_v17 = vadd.f32 %v1399_v32, %v349_v15  ;;  %v1185_v18 = vpop.f32.mrb[26].mxu0  ;;  %1089 = vst [vmem:[%s1613_s4 + $0x58] sm:$0xff] %v487_v13  }
 0x128   :  { %v438_v19 = vmul.f32 0.01, %v358_v14  ;;  %v361_v20 = vadd.f32 %v1185_v18, %v1399_v32  ;;  %v352_v21 = vpop.f32.mrb[27].mxu0  ;;  %1088 = vst [vmem:[%s1613_s4 + $0x50] sm:$0xff] %v486_v16   ;;  %1226 = vmatprep.mubr.bf16.mxu1 %v486_v16  ;;  %vm406_vm8 = vcmp.gt.f32.partialorder %v358_v14, 0.0 }
 0x129   :  { %v436_v22 = vmul.f32 0.01, %v350_v17  ;;  %v353_v23 = vadd.f32 %v1399_v32, %v352_v21  ;;  %1227 = vmatmul.mubr.bf16.gmra.mrb[20].mxu1 %v487_v13  ;;  %vm404_vm9 = vcmp.gt.f32.partialorder %v350_v17, 0.0 }
 0x12a   :  { %vm407_vm10 = vcmp.gt.f32.partialorder %v361_v20, 0.0  ;;  %v439_v24 = vmul.f32 0.01, %v361_v20  ;;  %v470_v26 = vsel %vm406_vm8, %v358_v14, %v438_v19 }
 0x12b   :  { %vm405_vm11 = vcmp.gt.f32.partialorder %v353_v23, 0.0  ;;  %v437_v25 = vmul.f32 0.01, %v353_v23  ;;  %v468_v29 = vsel %vm404_vm9, %v350_v17, %v436_v22 }
 0x12c   :  { %v471_v27 = vsel %vm407_vm10, %v361_v20, %v439_v24 }
 0x12d   :  { %v1188_v28 = vpop.f32.mrb[28].mxu0  ;;  %v469_v30 = vsel %vm405_vm11, %v353_v23, %v437_v25  ;;  %v489_v31 = vpack.c.bf16 %v471_v27, %v470_v26 }
 0x12e   :  { %v374_v33 = vadd.f32 %v1188_v28, %v1399_v32  ;;  %v365_v34 = vpop.f32.mrb[29].mxu0  ;;  %v488_v35 = vpack.c.bf16 %v469_v30, %v468_v29 }
 0x12f   :  { %v366_v36 = vadd.f32 %v1399_v32, %v365_v34  ;;  %v1189_v37 = vpop.f32.mrb[30].mxu0  ;;  %1091 = vst [vmem:[%s1613_s4 + $0x68] sm:$0xff] %v489_v31  }
 0x130   :  { %v442_v38 = vmul.f32 0.01, %v374_v33  ;;  %v377_v39 = vadd.f32 %v1189_v37, %v1399_v32  ;;  %v368_v40 = vpop.f32.mrb[31].mxu0  ;;  %1090 = vst [vmem:[%s1613_s4 + $0x60] sm:$0xff] %v488_v35   ;;  %1230 = vmatprep.mubr.bf16.mxu1 %v488_v35  ;;  %vm410_vm12 = vcmp.gt.f32.partialorder %v374_v33, 0.0 }
 0x131   :  { %v440_v41 = vmul.f32 0.01, %v366_v36  ;;  %v369_v42 = vadd.f32 %v1399_v32, %v368_v40  ;;  %1231 = vmatmul.mubr.bf16.gmra.mrb[24].mxu1 %v489_v31  ;;  %vm408_vm13 = vcmp.gt.f32.partialorder %v366_v36, 0.0 }
 0x132   :  { %vm411_vm14 = vcmp.gt.f32.partialorder %v377_v39, 0.0  ;;  %v443_v43 = vmul.f32 0.01, %v377_v39  ;;  %v474_v45 = vsel %vm410_vm12, %v374_v33, %v442_v38 }
 0x133   :  { %vm409_vm15 = vcmp.gt.f32.partialorder %v369_v42, 0.0  ;;  %v441_v44 = vmul.f32 0.01, %v369_v42  ;;  %v472_v47 = vsel %vm408_vm13, %v366_v36, %v440_v41 }
 0x134   :  { %v475_v46 = vsel %vm411_vm14, %v377_v39, %v443_v43 }
 0x135   :  { %v473_v48 = vsel %vm409_vm15, %v369_v42, %v441_v44  ;;  %v491_v49 = vpack.c.bf16 %v475_v46, %v474_v45 }
 0x136   :  { %v490_v50 = vpack.c.bf16 %v473_v48, %v472_v47 }
 0x137   :  { %1093 = vst [vmem:[%s1613_s4 + $0x78] sm:$0xff] %v491_v49  }
 0x138   :  { %1092 = vst [vmem:[%s1613_s4 + $0x70] sm:$0xff] %v490_v50   ;;  %1234 = vmatprep.mubr.bf16.mxu1 %v490_v50 }
 0x139   :  { %1235 = vmatmul.mubr.bf16.gmra.mrb[28].mxu1 %v491_v49 }
 0x1d4   :  { %v1208_v32 = vpop.f32.mrb[0].mxu1 }
 0x1d5   :  { %864 = vst.msk [vmem:[%s1614_s5 + $0x10] sm:$0xff] %vm861_vm0, %v1208_v32  ;;  %v734_v51 = vpop.f32.mrb[1].mxu1 }
 0x1d6   :  { %862 = vst.msk [vmem:[%s1614_s5] sm:$0xff] %vm861_vm0, %v734_v51  ;;  %v1209_v52 = vpop.f32.mrb[2].mxu1 }
 0x1d7   :  { %865 = vst.msk [vmem:[%s1614_s5 + $0x18] sm:$0xff] %vm861_vm0, %v1209_v52  ;;  %v737_v53 = vpop.f32.mrb[3].mxu1 }
 0x1d8   :  { %863 = vst.msk [vmem:[%s1614_s5 + $0x8] sm:$0xff] %vm861_vm0, %v737_v53 }
 0x1dc   :  { %v1212_v54 = vpop.f32.mrb[4].mxu1 }
 0x1dd   :  { %868 = vst.msk [vmem:[%s1614_s5 + $0x30] sm:$0xff] %vm861_vm0, %v1212_v54  ;;  %v750_v55 = vpop.f32.mrb[5].mxu1 }
 0x1de   :  { %866 = vst.msk [vmem:[%s1614_s5 + $0x20] sm:$0xff] %vm861_vm0, %v750_v55  ;;  %v1213_v56 = vpop.f32.mrb[6].mxu1 }
 0x1df   :  { %869 = vst.msk [vmem:[%s1614_s5 + $0x38] sm:$0xff] %vm861_vm0, %v1213_v56  ;;  %v753_v57 = vpop.f32.mrb[7].mxu1 }
 0x1e0   :  { %867 = vst.msk [vmem:[%s1614_s5 + $0x28] sm:$0xff] %vm861_vm0, %v753_v57 }
 0x1e4   :  { %v1216_v58 = vpop.f32.mrb[8].mxu1 }
 0x1e5   :  { %872 = vst.msk [vmem:[%s1614_s5 + $0x50] sm:$0xff] %vm861_vm0, %v1216_v58  ;;  %v766_v59 = vpop.f32.mrb[9].mxu1 }
 0x1e6   :  { %870 = vst.msk [vmem:[%s1614_s5 + $0x40] sm:$0xff] %vm861_vm0, %v766_v59  ;;  %v1217_v60 = vpop.f32.mrb[10].mxu1 }
 0x1e7   :  { %873 = vst.msk [vmem:[%s1614_s5 + $0x58] sm:$0xff] %vm861_vm0, %v1217_v60  ;;  %v769_v61 = vpop.f32.mrb[11].mxu1 }
 0x1e8   :  { %871 = vst.msk [vmem:[%s1614_s5 + $0x48] sm:$0xff] %vm861_vm0, %v769_v61 }
 0x1ec   :  { %v1220_v62 = vpop.f32.mrb[12].mxu1 }
 0x1ed   :  { %876 = vst.msk [vmem:[%s1614_s5 + $0x70] sm:$0xff] %vm861_vm0, %v1220_v62  ;;  %v782_v63 = vpop.f32.mrb[13].mxu1 }
 0x1ee   :  { %874 = vst.msk [vmem:[%s1614_s5 + $0x60] sm:$0xff] %vm861_vm0, %v782_v63  ;;  %v1221_v0 = vpop.f32.mrb[14].mxu1 }
 0x1ef   :  { %877 = vst.msk [vmem:[%s1614_s5 + $0x78] sm:$0xff] %vm861_vm0, %v1221_v0  ;;  %v785_v1 = vpop.f32.mrb[15].mxu1 }
 0x1f0   :  { %875 = vst.msk [vmem:[%s1614_s5 + $0x68] sm:$0xff] %vm861_vm0, %v785_v1 }
 0x1f4   :  { %v1224_v2 = vpop.f32.mrb[16].mxu1 }
 0x1f5   :  { %880 = vst.msk [vmem:[%s1614_s5 + $0x90] sm:$0xff] %vm861_vm0, %v1224_v2  ;;  %v798_v3 = vpop.f32.mrb[17].mxu1 }
 0x1f6   :  { %878 = vst.msk [vmem:[%s1614_s5 + $0x80] sm:$0xff] %vm861_vm0, %v798_v3  ;;  %v1225_v4 = vpop.f32.mrb[18].mxu1 }
 0x1f7   :  { %881 = vst.msk [vmem:[%s1614_s5 + $0x98] sm:$0xff] %vm861_vm0, %v1225_v4  ;;  %v801_v5 = vpop.f32.mrb[19].mxu1 }
 0x1f8   :  { %879 = vst.msk [vmem:[%s1614_s5 + $0x88] sm:$0xff] %vm861_vm0, %v801_v5 }
 0x1fc   :  { %v1228_v6 = vpop.f32.mrb[20].mxu1 }
 0x1fd   :  { %884 = vst.msk [vmem:[%s1614_s5 + $0xb0] sm:$0xff] %vm861_vm0, %v1228_v6  ;;  %v814_v7 = vpop.f32.mrb[21].mxu1 }
 0x1fe   :  { %882 = vst.msk [vmem:[%s1614_s5 + $0xa0] sm:$0xff] %vm861_vm0, %v814_v7  ;;  %v1229_v8 = vpop.f32.mrb[22].mxu1 }
 0x1ff   :  { %885 = vst.msk [vmem:[%s1614_s5 + $0xb8] sm:$0xff] %vm861_vm0, %v1229_v8  ;;  %v817_v9 = vpop.f32.mrb[23].mxu1 }
 0x200   :  { %883 = vst.msk [vmem:[%s1614_s5 + $0xa8] sm:$0xff] %vm861_vm0, %v817_v9 }
 0x204   :  { %v1232_v10 = vpop.f32.mrb[24].mxu1 }
 0x205   :  { %888 = vst.msk [vmem:[%s1614_s5 + $0xd0] sm:$0xff] %vm861_vm0, %v1232_v10  ;;  %v830_v11 = vpop.f32.mrb[25].mxu1 }
 0x206   :  { %886 = vst.msk [vmem:[%s1614_s5 + $0xc0] sm:$0xff] %vm861_vm0, %v830_v11  ;;  %v1233_v12 = vpop.f32.mrb[26].mxu1 }
 0x207   :  { %889 = vst.msk [vmem:[%s1614_s5 + $0xd8] sm:$0xff] %vm861_vm0, %v1233_v12  ;;  %v833_v13 = vpop.f32.mrb[27].mxu1 }
 0x208   :  { %887 = vst.msk [vmem:[%s1614_s5 + $0xc8] sm:$0xff] %vm861_vm0, %v833_v13 }
 0x20c   :  { %v1236_v14 = vpop.f32.mrb[28].mxu1 }
 0x20d   :  { %892 = vst.msk [vmem:[%s1614_s5 + $0xf0] sm:$0xff] %vm861_vm0, %v1236_v14  ;;  %v846_v15 = vpop.f32.mrb[29].mxu1 }
 0x20e   :  { %890 = vst.msk [vmem:[%s1614_s5 + $0xe0] sm:$0xff] %vm861_vm0, %v846_v15  ;;  %v1237_v16 = vpop.f32.mrb[30].mxu1 }
 0x20f   :  { %893 = vst.msk [vmem:[%s1614_s5 + $0xf8] sm:$0xff] %vm861_vm0, %v1237_v16  ;;  %v849_v17 = vpop.f32.mrb[31].mxu1 }
 0x210   :  { %891 = vst.msk [vmem:[%s1614_s5 + $0xe8] sm:$0xff] %vm861_vm0, %v849_v17 }

// kernel: attentive_fp_encoder.5
= control target key start
LH: loop header
LB: loop body
LE: loop exit
PB: predicated region body
PF: predicated region fallthrough
CT: control target
= control target key end

     0   :  { %v429_v1 = vmov 0.0   ;;  %vm430_vm0 = vmmov 0   ;;  %s546_s1 = inlined_call_operand.vmem [shape: bf16[256,128], index: 1, kind: input, shape index: {}]   ;;  %s547_s0 = inlined_call_operand.vmem [shape: bf16[8,256], index: 0, kind: input, shape index: {}]   ;;  %s548_s2 = inlined_call_operand.vmem [shape: bf16[128,128], index: 2, kind: input, shape index: {}]   ;;  %s549_s3 = inlined_call_operand.vmem [shape: f32[1,128], index: 3, kind: input, shape index: {}]   ;;  %s550_s4 = inlined_call_operand.vmem [shape: f32[8,128], index: 4, kind: output, shape index: {}]  }
   0x1   :  { %v403_v0 = vld [vmem:[%s546_s1 + $0x40] sm:$0xff]   ;;  %381 = vmatprep.subr.bf16.mxu1 %v429_v1  ;;  %v405_v3 = vld [vmem:[%s546_s1 + $0x48] sm:$0xff]   ;;  %v407_v5 = vld [vmem:[%s546_s1 + $0x50] sm:$0xff]   ;;  %397 = vmatprep.mubr.msk.bf16.mxu1 %vm430_vm0, %v429_v1 }
   0x2   :  { %v404_v2 = vld [vmem:[%s546_s1] sm:$0xff]   ;;  %350 = vmatprep.subr.bf16.mxu0 %v403_v0  ;;  %v406_v4 = vld [vmem:[%s546_s1 + $0x8] sm:$0xff]   ;;  %v408_v6 = vld [vmem:[%s546_s1 + $0x10] sm:$0xff]  }
   0x3   :  { %351 = vmatpush3.bf16.msra.mxu0 %v404_v2  ;;  %v409_v7 = vld [vmem:[%s546_s1 + $0x58] sm:$0xff]   ;;  %v411_v9 = vld [vmem:[%s546_s1 + $0x60] sm:$0xff]   ;;  %v413_v11 = vld [vmem:[%s546_s1 + $0x68] sm:$0xff]  }
   0x4   :  { %352 = vmatprep.subr.bf16.mxu0 %v405_v3  ;;  %v410_v8 = vld [vmem:[%s546_s1 + $0x18] sm:$0xff]   ;;  %v412_v10 = vld [vmem:[%s546_s1 + $0x20] sm:$0xff]   ;;  %v414_v15 = vld [vmem:[%s546_s1 + $0x28] sm:$0xff]  }
   0x5   :  { %v24_v12 = vld [vmem:[%s547_s0] sm:$0xff]  ;;  %v415_v16 = vld [vmem:[%s546_s1 + $0x70] sm:$0xff]   ;;  %v422_v17 = vld [vmem:[%s548_s2 + $0x8] sm:$0xff]  }
   0x6   :  { %v324_v13 = vcombine.high %v24_v12, %v24_v12  ;;  %v421_v14 = vld [vmem:[%s548_s2] sm:$0xff]   ;;  %v416_v18 = vld [vmem:[%s546_s1 + $0x30] sm:$0xff]   ;;  %v417_v19 = vld [vmem:[%s546_s1 + $0x78] sm:$0xff]   ;;  %v323_v23 = vcombine.low %v24_v12, %v24_v12 }
   0x7   :  { %353 = vmatpush3.bf16.msra.mxu0 %v406_v4  ;;  %382 = vmatpush3.bf16.msra.mxu1 %v421_v14  ;;  %v423_v20 = vld [vmem:[%s548_s2 + $0x10] sm:$0xff]   ;;  %v418_v21 = vld [vmem:[%s546_s1 + $0x38] sm:$0xff]   ;;  %v425_v24 = vld [vmem:[%s548_s2 + $0x20] sm:$0xff]  }
   0x8   :  { %354 = vmatprep.subr.bf16.mxu0 %v407_v5  ;;  %192 = vmatprep.mubr.bf16.mxu0 %v324_v13  ;;  %v424_v22 = vld [vmem:[%s548_s2 + $0x18] sm:$0xff]   ;;  %v426_v25 = vld [vmem:[%s548_s2 + $0x28] sm:$0xff]   ;;  %v427_v26 = vld [vmem:[%s548_s2 + $0x30] sm:$0xff]  }
   0x9   :  { %383 = vmatprep.subr.bf16.mxu1 %v429_v1  ;;  %v428_v27 = vld [vmem:[%s548_s2 + $0x38] sm:$0xff]   ;;  %v341_v34 = vld [vmem:[%s549_s3] ss:$0 sm:$0xff] }
   0xb   :  { %355 = vmatpush3.bf16.msra.mxu0 %v408_v6  ;;  %384 = vmatpush3.bf16.msra.mxu1 %v422_v17 }
   0xc   :  { %356 = vmatprep.subr.bf16.mxu0 %v409_v7  ;;  %385 = vmatprep.subr.bf16.mxu1 %v429_v1 }
   0xf   :  { %357 = vmatpush3.bf16.msra.mxu0 %v410_v8  ;;  %386 = vmatpush3.bf16.msra.mxu1 %v423_v20 }
  0x10   :  { %358 = vmatprep.subr.bf16.mxu0 %v411_v9  ;;  %387 = vmatprep.subr.bf16.mxu1 %v429_v1 }
  0x13   :  { %359 = vmatpush3.bf16.msra.mxu0 %v412_v10  ;;  %388 = vmatpush3.bf16.msra.mxu1 %v424_v22 }
  0x14   :  { %360 = vmatprep.subr.bf16.mxu0 %v413_v11  ;;  %389 = vmatprep.subr.bf16.mxu1 %v429_v1 }
  0x17   :  { %361 = vmatpush3.bf16.msra.mxu0 %v414_v15  ;;  %390 = vmatpush3.bf16.msra.mxu1 %v425_v24 }
  0x18   :  { %362 = vmatprep.subr.bf16.mxu0 %v415_v16  ;;  %391 = vmatprep.subr.bf16.mxu1 %v429_v1 }
  0x1b   :  { %363 = vmatpush3.bf16.msra.mxu0 %v416_v18  ;;  %392 = vmatpush3.bf16.msra.mxu1 %v426_v25 }
  0x1c   :  { %364 = vmatprep.subr.bf16.mxu0 %v417_v19  ;;  %393 = vmatprep.subr.bf16.mxu1 %v429_v1 }
  0x1f   :  { %365 = vmatpush3.bf16.msra.mxu0 %v418_v21  ;;  %394 = vmatpush3.bf16.msra.mxu1 %v427_v26 }
  0x20   :  { %395 = vmatprep.subr.bf16.mxu1 %v429_v1 }
  0x22   :  { %193 = vmatmul.mubr.bf16.vlgmr.msra.gmra.mrb[0].mxu0 %v323_v23 }
  0x23   :  { %396 = vmatpush3.bf16.msra.mxu1 %v428_v27 }
  0xf5   :  { %v366_v28 = vpop.f32.mrb[0].mxu0 }
  0xf6   :  { %v367_v29 = vpop.f32.mrb[1].mxu0 }
  0xf7   :  { %v368_v30 = vadd.f32 %v367_v29, %v366_v28  ;;  %v369_v31 = vpop.f32.mrb[2].mxu0 }
  0xf8   :  { %v370_v32 = vpop.f32.mrb[3].mxu0 }
  0xf9   :  { %v206_v33 = vpack.c.bf16 %v368_v30, %v368_v30 }
  0xfb   :  { %398 = vmatmul.mubr.bf16.vlgmr.msra.gmra.mrb[0].mxu1 %v206_v33 }
 0x1ce   :  { %v312_v35 = vpop.f32.mrb[0].mxu1 }
 0x1cf   :  { %v313_v36 = vadd.f32 %v341_v34, %v312_v35  ;;  %v399_v37 = vpop.f32.mrb[1].mxu1 }
 0x1d0   :  { %v315_v38 = vpop.f32.mrb[2].mxu1 }
 0x1d1   :  { %318 = vst [vmem:[%s550_s4] sm:$0xff] %v313_v36  ;;  %v400_v39 = vpop.f32.mrb[3].mxu1 }

// kernel: attentive_fp_encoder.4
= control target key start
LH: loop header
LB: loop body
LE: loop exit
PB: predicated region body
PF: predicated region fallthrough
CT: control target
= control target key end

     0   :  { %s4049_s0 = inlined_call_operand.vmem [shape: s32[2], index: 0, kind: input, shape index: {}]   ;;  %s4050_s1 = inlined_call_operand.vmem [shape: f32[256,1], index: 1, kind: input, shape index: {}]   ;;  %s4051_s2 = inlined_call_operand.vmem [shape: f32[1,256], index: 2, kind: input, shape index: {}]   ;;  %s4052_s3 = inlined_call_operand.vmem [shape: s8[256,256], index: 3, kind: input, shape index: {}]   ;;  %s4053_s4 = inlined_call_operand.vmem [shape: bf16[256,128], index: 4, kind: input, shape index: {}]   ;;  %s4054_s5 = inlined_call_operand.vmem [shape: f32[1,128], index: 5, kind: input, shape index: {}]   ;;  %s4055_s6 = inlined_call_operand.vmem [shape: bf16[128,128], index: 6, kind: input, shape index: {}]   ;;  %s4056_s7 = inlined_call_operand.vmem [shape: f32[1,128], index: 7, kind: input, shape index: {}]   ;;  %s4057_s8 = inlined_call_operand.vmem [shape: bf16[256,128], index: 8, kind: output, shape index: {}]  }
   0x1   :  { %s13_s29 = sshll.u32 %s4049_s0, 4  ;;  %s14_s29 = int_to_ptr.vmem [resolvable:$true] %s13_s29 }
   0x2   :  { %s2744_s30 = scalar_lea.vmem %s14_s29, 16  ;;  %p2749_p1 = scmp.lt.s32.totalorder %s14_s29, %s14_s29 }
   0x3   :  { %p2745_p0 = scmp.ne.s32.totalorder %s14_s29, %s2744_s30  ;;  %p2750_p2 = scmp.lt.s32.totalorder %s2744_s30, %s2744_s30 }
   0x5   :  { %p2751_p3 = por %p2750_p2, %p2749_p1 }
   0x7   :  { %p2752_p4 = pnand %p2751_p3, %p2745_p0 }
   0x9   :  { %2755 = shalt.err (!%p2752_p4)  }
   0xa   :  { %s2782_s9 = smov [#allocation6]  }
   0xb   :  { %16 = dma.vmem_to_smem %s14_s29, 16, %s2782_s9, [#allocation5] }
   0xc   :  { %2768 = dma.done.wait [#allocation5], 16 }
   0xd   :  { %2769 = vsyncadd [#allocation5], 4294967280 }
   0xe   :  { %18 = sfence }
   0xf   :  { %s2835_s10 = smov 0   ;;  %s2837_s11 = smov 0  }
  0x10   :  { %s2839_s12 = smov 0  }
  0x11 LB: > { %s36_s0 = sadd.s32 1, %s2776_s11  ;;  %p2250_p5 = scmp.ge.s32.totalorder %s2780_s12, 1  ;;  %s2780_s12 = sphi %s2839_s12, %s24_s12   ;;  %s2776_s11 = sphi %s2837_s11, %s4173_s11   ;;  %s2772_s10 = sphi %s2835_s10, %s4172_s10  }
  0x12   : > { %p38_p6 = scmp.ge.s32.totalorder %s36_s0, 2  ;;  %p286_p7 = scmp.lt.s32.totalorder %s2780_s12, 3 }
  0x14   : > { %s4175_s0 = smov (%p38_p6, %s36_s0), 0  ;;  %p287_p8 = pnand %p2250_p5, %p286_p7 }
  0x15   : > { %s2251_s13 = sshll.u32 (!%p287_p8), %s2772_s10, 4  ;;  %vm4059_vm0 = vcmask (!%p287_p8), 7168   ;;  %s2857_s14 = sld [smem:[#allocation6 + %s2772_s10]] (!%p287_p8)  ;;  %v2783_v0 = vmov (!%p287_p8), -inf   ;;  %v2784_v1 = vmov (!%p287_p8), 0.0  }
  0x16   : > { %290 = sbr.rel (%p287_p8) target bundleno = 1158 (0x486), region = 48  ;;  %p2861_p9 = scmp.lt.s32.totalorder (!%p287_p8), %s2251_s13, 31  ;;  %369 = vst.msk [vmem:[#allocation2] sm:$0xff] (!%p287_p8), %vm4059_vm0, %v2783_v0  ;;  %370 = vst.msk [vmem:[#allocation2 + $0x8] sm:$0xff] (!%p287_p8), %vm4059_vm0, %v2783_v0 }
  0x17   : > { %371 = vst.msk [vmem:[#allocation2 + $0x10] sm:$0xff] (!%p287_p8), %vm4059_vm0, %v2783_v0  ;;  %372 = vst.msk [vmem:[#allocation2 + $0x18] sm:$0xff] (!%p287_p8), %vm4059_vm0, %v2783_v0 }
  0x18   : > { %373 = vst.msk [vmem:[#allocation2 + $0x20] sm:$0xff] (!%p287_p8), %vm4059_vm0, %v2783_v0  ;;  %374 = vst.msk [vmem:[#allocation2 + $0x28] sm:$0xff] (!%p287_p8), %vm4059_vm0, %v2783_v0 }
  0x19   : > { %375 = vst.msk [vmem:[#allocation2 + $0x30] sm:$0xff] (!%p287_p8), %vm4059_vm0, %v2783_v0  ;;  %376 = vst.msk [vmem:[#allocation2 + $0x38] sm:$0xff] (!%p287_p8), %vm4059_vm0, %v2783_v0 }
  0x1a   : > { %377 = vst.msk [vmem:[#allocation2 + $0x40] sm:$0xff] (!%p287_p8), %vm4059_vm0, %v2783_v0  ;;  %378 = vst.msk [vmem:[#allocation2 + $0x48] sm:$0xff] (!%p287_p8), %vm4059_vm0, %v2783_v0 }
  0x1b   : > { %379 = vst.msk [vmem:[#allocation2 + $0x50] sm:$0xff] (!%p287_p8), %vm4059_vm0, %v2783_v0  ;;  %380 = vst.msk [vmem:[#allocation2 + $0x58] sm:$0xff] (!%p287_p8), %vm4059_vm0, %v2783_v0  ;;  %p2258_p10 = scmp.eq.s32.totalorder (!%p287_p8), %s2857_s14, 0 }
  0x1c   : > { %381 = vst.msk [vmem:[#allocation2 + $0x60] sm:$0xff] (!%p287_p8), %vm4059_vm0, %v2783_v0  ;;  %382 = vst.msk [vmem:[#allocation2 + $0x68] sm:$0xff] (!%p287_p8), %vm4059_vm0, %v2783_v0 }
  0x1d   : > { %383 = vst.msk [vmem:[#allocation2 + $0x70] sm:$0xff] %vm4059_vm0, %v2783_v0  ;;  %384 = vst.msk [vmem:[#allocation2 + $0x78] sm:$0xff] %vm4059_vm0, %v2783_v0  ;;  %s4177_s13 = smov (!%p2861_p9, %s2251_s13), 31 }
  0x1e   : > { %385 = vst.msk [vmem:[#allocation3] sm:$0xff] %vm4059_vm0, %v2784_v1  ;;  %386 = vst.msk [vmem:[#allocation3 + $0x8] sm:$0xff] %vm4059_vm0, %v2784_v1  ;;  %s2252_s16 = sshll.u32 %s4177_s13, 3  ;;  %s2319_s17 = sshll.u32 %s4177_s13, 2 }
  0x1f   : > { %387 = vst.msk [vmem:[#allocation3 + $0x10] sm:$0xff] %vm4059_vm0, %v2784_v1  ;;  %388 = vst.msk [vmem:[#allocation3 + $0x18] sm:$0xff] %vm4059_vm0, %v2784_v1  ;;  %s2904_s20 = scalar_lea.vmem %s4050_s1, %s2252_s16  ;;  %s2909_s23 = scalar_lea.vmem %s4052_s3, %s2319_s17 }
  0x20   : > { %389 = vst.msk [vmem:[#allocation3 + $0x20] sm:$0xff] %vm4059_vm0, %v2784_v1  ;;  %390 = vst.msk [vmem:[#allocation3 + $0x28] sm:$0xff] %vm4059_vm0, %v2784_v1  ;;  %s2914_s26 = scalar_lea.vmem %s4057_s8, %s2319_s17 }
  0x21   : > { %391 = vst.msk [vmem:[#allocation3 + $0x30] sm:$0xff] %vm4059_vm0, %v2784_v1  ;;  %392 = vst.msk [vmem:[#allocation3 + $0x38] sm:$0xff] %vm4059_vm0, %v2784_v1 }
  0x22   : > { %393 = vst.msk [vmem:[#allocation3 + $0x40] sm:$0xff] %vm4059_vm0, %v2784_v1  ;;  %394 = vst.msk [vmem:[#allocation3 + $0x48] sm:$0xff] %vm4059_vm0, %v2784_v1 }
  0x23   : > { %395 = vst.msk [vmem:[#allocation3 + $0x50] sm:$0xff] %vm4059_vm0, %v2784_v1  ;;  %396 = vst.msk [vmem:[#allocation3 + $0x58] sm:$0xff] %vm4059_vm0, %v2784_v1 }
  0x24   : > { %397 = vst.msk [vmem:[#allocation3 + $0x60] sm:$0xff] %vm4059_vm0, %v2784_v1  ;;  %398 = vst.msk [vmem:[#allocation3 + $0x68] sm:$0xff] %vm4059_vm0, %v2784_v1 }
  0x25   : > { %399 = vst.msk [vmem:[#allocation3 + $0x70] sm:$0xff] %vm4059_vm0, %v2784_v1  ;;  %400 = vst.msk [vmem:[#allocation3 + $0x78] sm:$0xff] %vm4059_vm0, %v2784_v1 }
  0x26   : > { %401 = vst [vmem:[#allocation4] sm:$0xff] %v2784_v1  ;;  %402 = vst [vmem:[#allocation4 + $0x8] sm:$0xff] %v2784_v1 }
  0x27   : > { %403 = vst [vmem:[#allocation4 + $0x10] sm:$0xff] %v2784_v1  ;;  %404 = vst [vmem:[#allocation4 + $0x18] sm:$0xff] %v2784_v1  ;;  %422 = sbr.rel (%p2258_p10) target bundleno = 745 (0x2e9), region = 56 }
  0x28   : > { %405 = vst [vmem:[#allocation4 + $0x20] sm:$0xff] %v2784_v1  ;;  %406 = vst [vmem:[#allocation4 + $0x28] sm:$0xff] %v2784_v1 }
  0x29   : > { %407 = vst [vmem:[#allocation4 + $0x30] sm:$0xff] %v2784_v1  ;;  %408 = vst [vmem:[#allocation4 + $0x38] sm:$0xff] %v2784_v1 }
  0x2a   : > { %409 = vst [vmem:[#allocation4 + $0x40] sm:$0xff] %v2784_v1  ;;  %410 = vst [vmem:[#allocation4 + $0x48] sm:$0xff] %v2784_v1 }
  0x2b   : > { %411 = vst [vmem:[#allocation4 + $0x50] sm:$0xff] %v2784_v1  ;;  %412 = vst [vmem:[#allocation4 + $0x58] sm:$0xff] %v2784_v1 }
  0x2c   : > { %413 = vst [vmem:[#allocation4 + $0x60] sm:$0xff] %v2784_v1  ;;  %414 = vst [vmem:[#allocation4 + $0x68] sm:$0xff] %v2784_v1 }
  0x2d   : > { %415 = vst [vmem:[#allocation4 + $0x70] sm:$0xff] %v2784_v1  ;;  %416 = vst [vmem:[#allocation4 + $0x78] sm:$0xff] %v2784_v1 }
  0x2e   : > { %v468_v2 = vld [vmem:[%s2904_s20 + $0x40] sm:$0xff]  ;;  %v2785_v4 = vmov 0   ;;  %v469_v5 = vld [vmem:[%s2904_s20 + $0x48] sm:$0xff]  ;;  %v463_v7 = vld [vmem:[%s2904_s20 + $0x18] sm:$0xff]  ;;  %v558_v19 = vlaneseq }
  0x2f   : > { %v460_v3 = vld [vmem:[%s2904_s20] sm:$0xff]  ;;  %2557 = vset.pattern.permute.xlu1 %v2785_v4  ;;  %2556 = vset.pattern.permute.xlu0 %v2785_v4  ;;  %v461_v6 = vld [vmem:[%s2904_s20 + $0x8] sm:$0xff]  ;;  %v462_v8 = vld [vmem:[%s2904_s20 + $0x10] sm:$0xff] }
  0x30   : > { %519 = vperm.xlu1 %2557, %v468_v2   ;;  %479 = vperm.xlu0 %2556, %v460_v3   ;;  %v471_v9 = vld [vmem:[%s2904_s20 + $0x58] sm:$0xff]  ;;  %v470_v10 = vld [vmem:[%s2904_s20 + $0x50] sm:$0xff]  ;;  %v465_v11 = vld [vmem:[%s2904_s20 + $0x28] sm:$0xff]  ;;  %v559_v20 = vshrl.u32 %v558_v19, 7 }
  0x31   : > { %v464_v12 = vld [vmem:[%s2904_s20 + $0x20] sm:$0xff]  ;;  %v473_v13 = vld [vmem:[%s2904_s20 + $0x68] sm:$0xff]  ;;  %v467_v15 = vld [vmem:[%s2904_s20 + $0x38] sm:$0xff] }
  0x32   : > { %v472_v14 = vld [vmem:[%s2904_s20 + $0x60] sm:$0xff]  ;;  %v466_v16 = vld [vmem:[%s2904_s20 + $0x30] sm:$0xff]  ;;  %v475_v17 = vld [vmem:[%s2904_s20 + $0x78] sm:$0xff]  ;;  %v560_v25 = vsub.s32 0, %v559_v20  ;;  %v564_v28 = vsub.s32 1, %v559_v20 }
  0x33   : > { %v474_v18 = vld [vmem:[%s2904_s20 + $0x70] sm:$0xff]  ;;  %v696_v21 = vld [vmem:[%s2909_s23] sm:$0xf]  ;;  %v697_v23 = vld [vmem:[%s2909_s23 + $0x4] sm:$0xf] }
  0x34   : > { %524 = vperm.xlu1 %2557, %v469_v5   ;;  %484 = vperm.xlu0 %2556, %v461_v6   ;;  %v704_v22 = vld [vmem:[%s2909_s23 + $0x20] sm:$0xf]  ;;  %vm712_vm1 = vnez %v696_v21  ;;  %v705_v24 = vld [vmem:[%s2909_s23 + $0x24] sm:$0xf]  ;;  %v698_v26 = vld [vmem:[%s2909_s23 + $0x8] sm:$0xf]  ;;  %vm713_vm3 = vnez %v697_v23 }
  0x35   : > { %vm720_vm2 = vnez %v704_v22  ;;  %v476_v27 = vld [vmem:[%s4051_s2] sm:$0x3]  ;;  %v699_v29 = vld [vmem:[%s2909_s23 + $0xc] sm:$0xf]  ;;  %v728_v30 = vsel %vm712_vm1, 16843009, %v2785_v4  ;;  %vm721_vm4 = vnez %v705_v24  ;;  %vm714_vm5 = vnez %v698_v26 }
  0x36   : > { %v706_v31 = vld [vmem:[%s2909_s23 + $0x28] sm:$0xf]  ;;  %v736_v32 = vsel %vm720_vm2, 16843009, %v2785_v4  ;;  %v707_v33 = vld [vmem:[%s2909_s23 + $0x2c] sm:$0xf]  ;;  %v2948_v34 = vrot.slane %v476_v27, %v560_v25  ;;  %vm715_vm6 = vnez %v699_v29  ;;  %v2953_v36 = vrot.slane %v476_v27, %v564_v28 }
  0x37   : > { %v2951_v35 = vsel %vm713_vm3, 16843009, %v2785_v4  ;;  %v744_v37 = vunpack.c.0.s8 %v728_v30  ;;  %v2956_v38 = vsel %vm721_vm4, 16843009, %v2785_v4  ;;  %vm722_vm7 = vnez %v706_v31  ;;  %v700_v39 = vld [vmem:[%s2909_s23 + $0x10] sm:$0xf] }
  0x38   : > { %494 = vperm.xlu1 %2557, %v463_v7   ;;  %489 = vperm.xlu0 %2556, %v462_v8   ;;  %v701_v40 = vld [vmem:[%s2909_s23 + $0x14] sm:$0xf]  ;;  %v745_v41 = vunpack.c.1.s8 %v728_v30  ;;  %v760_v42 = vunpack.c.0.s8 %v736_v32  ;;  %v2961_v43 = vsel %vm714_vm5, 16843009, %v2785_v4  ;;  %vm723_vm8 = vnez %v707_v33  ;;  %v708_v44 = vld [vmem:[%s2909_s23 + $0x30] sm:$0xf] }
  0x39   : > { %v761_v45 = vunpack.c.1.s8 %v736_v32  ;;  %v746_v46 = vunpack.c.0.s8 %v2951_v35  ;;  %v747_v47 = vunpack.c.1.s8 %v2951_v35  ;;  %v2967_v48 = vsel %vm715_vm6, 16843009, %v2785_v4  ;;  %v709_v49 = vld [vmem:[%s2909_s23 + $0x34] sm:$0xf]  ;;  %v702_v50 = vld [vmem:[%s2909_s23 + $0x18] sm:$0xf] }
  0x3a   : > { %v762_v51 = vunpack.c.0.s8 %v2956_v38  ;;  %v2973_v52 = vsel %vm722_vm7, 16843009, %v2785_v4  ;;  %vm716_vm9 = vnez %v700_v39  ;;  %vm717_vm10 = vnez %v701_v40  ;;  %v703_v56 = vld [vmem:[%s2909_s23 + $0x1c] sm:$0xf]  ;;  %v710_v59 = vld [vmem:[%s2909_s23 + $0x38] sm:$0xf] }
  0x3b   : > { %v763_v53 = vunpack.c.1.s8 %v2956_v38  ;;  %v748_v54 = vunpack.c.0.s8 %v2961_v43  ;;  %v2978_v55 = vsel %vm723_vm8, 16843009, %v2785_v4  ;;  %vm724_vm11 = vnez %v708_v44  ;;  %v711_v3 = vld [vmem:[%s2909_s23 + $0x3c] sm:$0xf] }
  0x3c   : > { %534 = vperm.xlu1 %2557, %v471_v9   ;;  %529 = vperm.xlu0 %2556, %v470_v10   ;;  %v749_v57 = vunpack.c.1.s8 %v2961_v43  ;;  %v750_v58 = vunpack.c.0.s8 %v2967_v48  ;;  %vm725_vm12 = vnez %v709_v49  ;;  %vm718_vm13 = vnez %v702_v50 }
  0x3d   : > { %v751_v60 = vunpack.c.1.s8 %v2967_v48  ;;  %v764_v61 = vunpack.c.0.s8 %v2973_v52  ;;  %v2987_v62 = vsel %vm716_vm9, 16843009, %v2785_v4  ;;  %v2990_v63 = vsel %vm717_vm10, 16843009, %v2785_v4 }
  0x3e   : > { %v765_v0 = vunpack.c.1.s8 %v2973_v52  ;;  %v766_v1 = vunpack.c.0.s8 %v2978_v55  ;;  %v2995_v2 = vsel %vm724_vm11, 16843009, %v2785_v4  ;;  %vm719_vm14 = vnez %v703_v56 }
  0x3f   : > { %vm2998_vm15 = vcmp.ne.s32.totalorder %v744_v37, 0  ;;  %vm3002_vm1 = vcmp.ne.s32.totalorder %v745_v41, 0  ;;  %v767_v7 = vunpack.c.1.s8 %v2978_v55  ;;  %v3008_v8 = vsel %vm725_vm12, 16843009, %v2785_v4 }
  0x40   : > { %504 = vperm.xlu1 %2557, %v465_v11   ;;  %499 = vperm.xlu0 %2556, %v464_v12   ;;  %v3011_v9 = vsel %vm718_vm13, 16843009, %v2785_v4  ;;  %vm726_vm2 = vnez %v710_v59  ;;  %v752_v10 = vunpack.c.0.s8 %v2987_v62  ;;  %v753_v11 = vunpack.c.1.s8 %v2987_v62 }
  0x41   : > { %v754_v12 = vunpack.c.0.s8 %v2990_v63  ;;  %vm3017_vm3 = vcmp.ne.s32.totalorder %v760_v42, 0  ;;  %vm3021_vm4 = vcmp.ne.s32.totalorder %v761_v45, 0  ;;  %vm727_vm5 = vnez %v711_v3 }
  0x42   : > { %v3036_v24 = vsel %vm726_vm2, 16843009, %v2785_v4  ;;  %v3046_v32 = vsel %vm727_vm5, 16843009, %v2785_v4  ;;  %vm3048_vm6 = vcmp.ne.s32.totalorder %v746_v46, 0  ;;  %vm3059_vm10 = vcmp.ne.s32.totalorder %v747_v47, 0 }
  0x43   : > { %vm3065_vm11 = vcmp.ne.s32.totalorder %v762_v51, 0  ;;  %vm3071_vm13 = vcmp.ne.s32.totalorder %v763_v53, 0 }
  0x44   : > { %544 = vperm.xlu1 %2557, %v473_v13   ;;  %539 = vperm.xlu0 %2556, %v472_v14   ;;  %v755_v13 = vunpack.c.1.s8 %v2990_v63 }
  0x48   : > { %514 = vperm.xlu1 %2557, %v467_v15   ;;  %509 = vperm.xlu0 %2556, %v466_v16  }
  0x4c   : > { %554 = vperm.xlu1 %2557, %v475_v17   ;;  %549 = vperm.xlu0 %2556, %v474_v18   ;;  %v3029_v18 = vsel %vm719_vm14, 16843009, %v2785_v4 }
  0xaf   : > { %v520_v19 = vpop.permute.xlu1 %519  ;;  %v480_v20 = vpop.permute.xlu0 %479 }
  0xb0   : > { %v584_v25 = vadd.f32 %v2948_v34, %v520_v19  ;;  %v585_v26 = vadd.f32 %v2953_v36, %v520_v19  ;;  %v568_v27 = vadd.f32 %v2948_v34, %v480_v20  ;;  %v569_v28 = vadd.f32 %v2953_v36, %v480_v20 }
  0xb2   : > { %v648_v33 = vmul.f32 0.01, %v584_v25  ;;  %v649_v37 = vmul.f32 0.01, %v585_v26  ;;  %v632_v39 = vmul.f32 0.01, %v568_v27 }
  0xb3   : > { %v633_v42 = vmul.f32 0.01, %v569_v28  ;;  %v525_v44 = vpop.permute.xlu1 %524  ;;  %v485_v45 = vpop.permute.xlu0 %484  ;;  %vm600_vm7 = vcmp.gt.f32.partialorder %v568_v27, 0.0  ;;  %vm601_vm8 = vcmp.gt.f32.partialorder %v569_v28, 0.0  ;;  %vm616_vm9 = vcmp.gt.f32.partialorder %v584_v25, 0.0 }
  0xb4   : > { %v586_v49 = vadd.f32 %v2948_v34, %v525_v44  ;;  %v587_v4 = vadd.f32 %v2953_v36, %v525_v44  ;;  %v570_v50 = vadd.f32 %v2948_v34, %v485_v45  ;;  %v571_v56 = vadd.f32 %v2953_v36, %v485_v45 }
  0xb5   : > { %v664_v3 = vsel %vm600_vm7, %v568_v27, %v632_v39  ;;  %v665_v19 = vsel %vm601_vm8, %v569_v28, %v633_v42  ;;  %vm617_vm12 = vcmp.gt.f32.partialorder %v585_v26, 0.0  ;;  %v680_v20 = vsel %vm616_vm9, %v584_v25, %v648_v33 }
  0xb6   : > { %v650_v44 = vmul.f32 0.01, %v586_v49  ;;  %v651_v41 = vmul.f32 0.01, %v587_v4  ;;  %v634_v31 = vmul.f32 0.01, %v570_v50  ;;  %v681_v45 = vsel %vm617_vm12, %v585_v26, %v649_v37 }
  0xb7   : > { %v635_v47 = vmul.f32 0.01, %v571_v56  ;;  %v495_v30 = vpop.permute.xlu1 %494  ;;  %v490_v51 = vpop.permute.xlu0 %489  ;;  %v3077_v29 = vsel %vm2998_vm15, %v664_v3, -1e+30  ;;  %v3081_v25 = vsel %vm3002_vm1, %v665_v19, -1e+30 }
  0xb8   : > { %v3085_v26 = vadd.f32 %v2948_v34, %v495_v30  ;;  %v3088_v38 = vadd.f32 %v2953_v36, %v495_v30  ;;  %v572_v53 = vadd.f32 %v2948_v34, %v490_v51  ;;  %v573_v28 = vadd.f32 %v2953_v36, %v490_v51 }
  0xb9   : > { %v856_v5 = vmax.f32 %v3077_v29, %v3081_v25  ;;  %v3096_v6 = vsel %vm3017_vm3, %v680_v20, -1e+30  ;;  %v3100_v33 = vsel %vm3021_vm4, %v681_v45, -1e+30  ;;  %vm602_vm14 = vcmp.gt.f32.partialorder %v570_v50, 0.0 }
  0xba   : > { %vm3104_vm15 = vcmp.ne.s32.totalorder %v748_v54, 0  ;;  %vm3110_vm1 = vcmp.ne.s32.totalorder %v749_v57, 0  ;;  %v3115_v14 = vmul.f32 0.01, %v3085_v26  ;;  %v3118_v15 = vmul.f32 0.01, %v3088_v38 }
  0xbb   : > { %v636_v39 = vmul.f32 0.01, %v572_v53  ;;  %v880_v42 = vmax.f32 %v3096_v6, %v3100_v33  ;;  %v637_v54 = vmul.f32 0.01, %v573_v28  ;;  %857 = vmax.xlane.f32.xlu0 %v856_v5  ;;  %v535_v3 = vpop.permute.xlu1 %534  ;;  %v530_v19 = vpop.permute.xlu0 %529  ;;  %vm603_vm2 = vcmp.gt.f32.partialorder %v571_v56, 0.0 }
  0xbc   : > { %v666_v43 = vsel %vm602_vm14, %v570_v50, %v634_v31  ;;  %vm618_vm3 = vcmp.gt.f32.partialorder %v586_v49, 0.0  ;;  %v3123_v57 = vadd.f32 %v2948_v34, %v535_v3  ;;  %v3126_v20 = vadd.f32 %v2953_v36, %v535_v3 }
  0xbd   : > { %v3129_v45 = vadd.f32 %v2948_v34, %v530_v19  ;;  %v3132_v51 = vadd.f32 %v2953_v36, %v530_v19  ;;  %vm3136_vm4 = vcmp.ne.s32.totalorder %v750_v58, 0  ;;  %v667_v31 = vsel %vm603_vm2, %v571_v56, %v635_v47 }
  0xbe   : > { %v3142_v50 = vsel %vm3048_vm6, %v666_v43, -1e+30  ;;  %vm619_vm5 = vcmp.gt.f32.partialorder %v587_v4, 0.0  ;;  %v682_v3 = vsel %vm618_vm3, %v586_v49, %v650_v44  ;;  %vm3146_vm7 = vcmp.ne.s32.totalorder %v751_v60, 0 }
  0xbf   : > { %v3151_v19 = vmul.f32 0.01, %v3123_v57  ;;  %v3154_v58 = vmul.f32 0.01, %v3126_v20  ;;  %v652_v56 = vmul.f32 0.01, %v3129_v45  ;;  %v683_v47 = vsel %vm619_vm5, %v587_v4, %v651_v41  ;;  %881 = vmax.xlane.f32.xlu0 %v880_v42  ;;  %v505_v48 = vpop.permute.xlu1 %504  ;;  %v500_v60 = vpop.permute.xlu0 %499 }
  0xc0   : > { %v653_v40 = vmul.f32 0.01, %v3132_v51  ;;  %v3160_v49 = vsel %vm3059_vm10, %v667_v31, -1e+30  ;;  %v3164_v44 = vsel %vm3065_vm11, %v682_v3, -1e+30  ;;  %v3182_v59 = vadd.f32 %v2948_v34, %v505_v48 }
  0xc1   : > { %vm3168_vm6 = vcmp.ne.s32.totalorder %v764_v61, 0  ;;  %vm3174_vm8 = vcmp.ne.s32.totalorder %v765_v0, 0  ;;  %v859_v46 = vmax.f32 %v3142_v50, %v3160_v49  ;;  %v3185_v42 = vadd.f32 %v2953_v36, %v505_v48 }
  0xc2   : > { %v3188_v61 = vadd.f32 %v2948_v34, %v500_v60  ;;  %v3191_v52 = vadd.f32 %v2953_v36, %v500_v60  ;;  %v3195_v0 = vsel %vm3071_vm13, %v683_v47, -1e+30  ;;  %vm604_vm9 = vcmp.gt.f32.partialorder %v572_v53, 0.0 }
  0xc3   : > { %vm605_vm10 = vcmp.gt.f32.partialorder %v573_v28, 0.0  ;;  %860 = vmax.xlane.f32.xlu1 %v859_v46  ;;  %v3198_v31 = vmul.f32 0.01, %v3182_v59  ;;  %v3201_v3 = vmul.f32 0.01, %v3185_v42  ;;  %v883_v60 = vmax.f32 %v3164_v44, %v3195_v0  ;;  %v545_v23 = vpop.permute.xlu1 %544  ;;  %v540_v22 = vpop.permute.xlu0 %539 }
  0xc4   : > { %v3204_v48 = vmul.f32 0.01, %v3188_v61  ;;  %vm3210_vm11 = vcmp.ne.s32.totalorder %v766_v1, 0  ;;  %v3215_v47 = vmul.f32 0.01, %v3191_v52  ;;  %v668_v46 = vsel %vm604_vm9, %v572_v53, %v636_v39 }
  0xc5   : > { %v669_v4 = vsel %vm605_vm10, %v573_v28, %v637_v54  ;;  %vm606_vm12 = vcmp.gt.f32.partialorder %v3085_v26, 0.0  ;;  %vm3220_vm13 = vcmp.ne.s32.totalorder %v767_v7, 0  ;;  %884 = vmax.xlane.f32.xlu0 %v883_v60  ;;  %v3226_v1 = vsel %vm3104_vm15, %v668_v46, -1e+30 }
  0xc6   : > { %v3230_v17 = vsel %vm3110_vm1, %v669_v4, -1e+30  ;;  %v3233_v53 = vadd.f32 %v2948_v34, %v545_v23  ;;  %v3236_v28 = vadd.f32 %v2953_v36, %v545_v23  ;;  %vm3240_vm14 = vcmp.ne.s32.totalorder %v752_v10, 0 }
  0xc7   : > { %vm3246_vm15 = vcmp.ne.s32.totalorder %v753_v11, 0  ;;  %v862_v30 = vmax.f32 %v3226_v1, %v3230_v17  ;;  %v3253_v37 = vadd.f32 %v2948_v34, %v540_v22  ;;  %v3256_v23 = vadd.f32 %v2953_v36, %v540_v22  ;;  %v515_v60 = vpop.permute.xlu1 %514  ;;  %v510_v46 = vpop.permute.xlu0 %509 }
  0xc8   : > { %vm607_vm1 = vcmp.gt.f32.partialorder %v3088_v38, 0.0  ;;  %v3260_v10 = vmul.f32 0.01, %v3233_v53  ;;  %v3263_v62 = vmul.f32 0.01, %v3236_v28  ;;  %v670_v11 = vsel %vm606_vm12, %v3085_v26, %v3115_v14 }
  0xc9   : > { %v671_v39 = vsel %vm607_vm1, %v3088_v38, %v3118_v15  ;;  %863 = vmax.xlane.f32.xlu1 %v862_v30  ;;  %v3270_v54 = vmul.f32 0.01, %v3253_v37  ;;  %v3273_v22 = vmul.f32 0.01, %v3256_v23  ;;  %v3277_v4 = vsel %vm3136_vm4, %v670_v11, -1e+30 }
  0xca   : > { %v3282_v26 = vsel %vm3146_vm7, %v671_v39, -1e+30  ;;  %vm620_vm2 = vcmp.gt.f32.partialorder %v3129_v45, 0.0  ;;  %vm621_vm3 = vcmp.gt.f32.partialorder %v3132_v51, 0.0  ;;  %v3287_v38 = vadd.f32 %v2948_v34, %v515_v60 }
  0xcb   : > { %vm3291_vm5 = vcmp.ne.s32.totalorder %v754_v12, 0  ;;  %vm3297_vm4 = vcmp.ne.s32.totalorder %v755_v13, 0  ;;  %v865_v27 = vmax.f32 %v3277_v4, %v3282_v26  ;;  %v684_v5 = vsel %vm620_vm2, %v3129_v45, %v652_v56 }
  0xcc   : > { %v685_v30 = vsel %vm621_vm3, %v3132_v51, %v653_v40  ;;  %v3306_v11 = vadd.f32 %v2953_v36, %v515_v60  ;;  %v4102_v12 = vunpack.c.0.s8 %v2995_v2  ;;  %v3316_v63 = vsel %vm3168_vm6, %v684_v5, -1e+30  ;;  %v555_v5 = vpop.permute.xlu1 %554 }
  0xcd   : > { %v3320_v13 = vsel %vm3174_vm8, %v685_v30, -1e+30  ;;  %v3323_v45 = vmul.f32 0.01, %v3287_v38  ;;  %v3326_v51 = vadd.f32 %v2948_v34, %v510_v46  ;;  %v4106_v56 = vunpack.c.1.s8 %v2995_v2  ;;  %866 = vmax.xlane.f32.xlu0 %v865_v27 }
  0xce   : > { %vm3310_vm7 = vcmp.ne.s32.totalorder %v4102_v12, 0  ;;  %4105 = vst [vmem:[#allocation8_spill] sm:$0xff] %v3320_v13  ;;  %v886_v43 = vmax.f32 %v3316_v63, %v3320_v13  ;;  %v3337_v41 = vmul.f32 0.01, %v3306_v11  ;;  %v3340_v60 = vadd.f32 %v2953_v36, %v510_v46 }
  0xcf   : > { %vm3330_vm9 = vcmp.ne.s32.totalorder %v4106_v56, 0  ;;  %vm622_vm6 = vcmp.gt.f32.partialorder %v3123_v57, 0.0  ;;  %v4109_v30 = vunpack.c.0.s8 %v3008_v8  ;;  %v644_v27 = vmul.f32 0.01, %v3326_v51 }
  0xd0   : > { %vm623_vm10 = vcmp.gt.f32.partialorder %v3126_v20, 0.0  ;;  %v686_v12 = vsel %vm622_vm6, %v3123_v57, %v3151_v19  ;;  %vm608_vm12 = vcmp.gt.f32.partialorder %v3188_v61, 0.0  ;;  %v4112_v46 = vunpack.c.1.s8 %v3008_v8  ;;  %887 = vmax.xlane.f32.xlu1 %v886_v43  ;;  %v550_v57 = vpop.permute.xlu0 %549 }
  0xd1   : > { %vm3345_vm8 = vcmp.ne.s32.totalorder %v4109_v30, 0  ;;  %v645_v30 = vmul.f32 0.01, %v3340_v60  ;;  %v687_v16 = vsel %vm623_vm10, %v3126_v20, %v3154_v58  ;;  %v3365_v13 = vsel %vm3210_vm11, %v686_v12, -1e+30 }
  0xd2   : > { %vm3356_vm1 = vcmp.ne.s32.totalorder %v4112_v46, 0  ;;  %vm609_vm2 = vcmp.gt.f32.partialorder %v3191_v52, 0.0  ;;  %v4115_v19 = vunpack.c.0.s8 %v3011_v9  ;;  %v4118_v43 = vunpack.c.1.s8 %v3011_v9 }
  0xd3   : > { %v3382_v20 = vsel %vm3220_vm13, %v687_v16, -1e+30  ;;  %v672_v58 = vsel %vm608_vm12, %v3188_v61, %v3204_v48  ;;  %v673_v35 = vsel %vm609_vm2, %v3191_v52, %v3215_v47  ;;  %v3389_v12 = vadd.f32 %v2948_v34, %v555_v5 }
  0xd4   : > { %vm3370_vm3 = vcmp.ne.s32.totalorder %v4115_v19, 0  ;;  %vm3376_vm6 = vcmp.ne.s32.totalorder %v4118_v43, 0  ;;  %v889_v9 = vmax.f32 %v3365_v13, %v3382_v20  ;;  %v3395_v19 = vsel %vm3240_vm14, %v672_v58, -1e+30 }
  0xd5   : > { %v3399_v16 = vsel %vm3246_vm15, %v673_v35, -1e+30  ;;  %v3402_v21 = vadd.f32 %v2953_v36, %v555_v5  ;;  %v4122_v61 = vunpack.c.0.s8 %v3029_v18  ;;  %v4125_v48 = vunpack.c.1.s8 %v3029_v18  ;;  %v3557_v35 = vld [vmem:[#allocation2] sm:$0xff] }
  0xd6   : > { %4121 = vst [vmem:[#allocation9_spill] sm:$0xff] %v3399_v16  ;;  %v868_v55 = vmax.f32 %v3395_v19, %v3399_v16  ;;  %v662_v7 = vmul.f32 0.01, %v3389_v12  ;;  %v596_v5 = vadd.f32 %v2948_v34, %v550_v57  ;;  %v597_v43 = vadd.f32 %v2953_v36, %v550_v57  ;;  %890 = vmax.xlane.f32.xlu0 %v889_v9  ;;  %v2560_v16 = vld [vmem:[%s4053_s4 + $0x48] sm:$0xff]  }
  0xd7   : > { %vm3406_vm11 = vcmp.ne.s32.totalorder %v4122_v61, 0  ;;  %vm3412_vm13 = vcmp.ne.s32.totalorder %v4125_v48, 0  ;;  %v4128_v58 = vunpack.c.0.s8 %v3036_v24  ;;  %v663_v18 = vmul.f32 0.01, %v3402_v21 }
  0xd8   : > { %vm610_vm15 = vcmp.gt.f32.partialorder %v3182_v59, 0.0  ;;  %vm611_vm10 = vcmp.gt.f32.partialorder %v3185_v42, 0.0  ;;  %vm624_vm12 = vcmp.gt.f32.partialorder %v3253_v37, 0.0  ;;  %v4131_v61 = vunpack.c.1.s8 %v3036_v24  ;;  %869 = vmax.xlane.f32.xlu1 %v868_v55 }
  0xd9   : > { %vm3423_vm14 = vcmp.ne.s32.totalorder %v4128_v58, 0  ;;  %v4132_v34 = vmov 0  ;;  %v660_v36 = vmul.f32 0.01, %v596_v5  ;;  %v661_v57 = vmul.f32 0.01, %v597_v43 }
  0xda   : > { %vm3433_vm2 = vcmp.ne.s32.totalorder %v4131_v61, 0  ;;  %v674_v9 = vsel %vm610_vm15, %v3182_v59, %v3198_v31  ;;  %v675_v48 = vsel %vm611_vm10, %v3185_v42, %v3201_v3  ;;  %v4134_v58 = vunpack.c.0.s8 %v3046_v32 }
  0xdb   : > { %v4133_v34 = vsel %vm3433_vm2, 4294967295, %v4132_v34  ;;  %v3449_v24 = vsel %vm3291_vm5, %v674_v9, -1e+30  ;;  %v3453_v55 = vsel %vm3297_vm4, %v675_v48, -1e+30  ;;  %vm625_vm2 = vcmp.gt.f32.partialorder %v3256_v23, 0.0 }
  0xdc   : > { %vm3443_vm0 = vcmp.ne.s32.totalorder %v4134_v58, 0  ;;  %v688_v59 = vsel %vm624_vm12, %v3253_v37, %v3270_v54  ;;  %v871_v42 = vmax.f32 %v3449_v24, %v3453_v55  ;;  %v689_v31 = vsel %vm625_vm2, %v3256_v23, %v3273_v22  ;;  %v3575_v58 = vld [vmem:[#allocation2 + $0x48] sm:$0xff] }
  0xdd   : > { %v3464_v3 = vsel %vm3310_vm7, %v688_v59, -1e+30  ;;  %vm626_vm5 = vcmp.gt.f32.partialorder %v3233_v53, 0.0  ;;  %v3469_v14 = vsel %vm3330_vm9, %v689_v31, -1e+30  ;;  %vm627_vm4 = vcmp.gt.f32.partialorder %v3236_v28, 0.0 }
  0xde   : > { %v690_v37 = vsel %vm626_vm5, %v3233_v53, %v3260_v10  ;;  %vm612_vm15 = vcmp.gt.f32.partialorder %v3326_v51, 0.0  ;;  %872 = vmax.xlane.f32.xlu0 %v871_v42  ;;  %v892_v23 = vmax.f32 %v3464_v3, %v3469_v14  ;;  %v691_v54 = vsel %vm627_vm4, %v3236_v28, %v3263_v62  ;;  %v2563_v42 = vld [vmem:[%s4053_s4 + $0x10] sm:$0xff]   ;;  %v2564_v31 = vld [vmem:[%s4053_s4 + $0x58] sm:$0xff]  }
  0xdf   : > { %v3481_v22 = vsel %vm3345_vm8, %v690_v37, -1e+30  ;;  %vm613_vm7 = vcmp.gt.f32.partialorder %v3340_v60, 0.0  ;;  %v3486_v15 = vsel %vm3356_vm1, %v691_v54, -1e+30  ;;  %v676_v53 = vsel %vm612_vm15, %v3326_v51, %v644_v27 }
  0xe0   : > { %v677_v10 = vsel %vm613_vm7, %v3340_v60, %v645_v30  ;;  %vm614_vm9 = vcmp.gt.f32.partialorder %v3287_v38, 0.0  ;;  %893 = vmax.xlane.f32.xlu1 %v892_v23  ;;  %v895_v28 = vmax.f32 %v3481_v22, %v3486_v15  ;;  %v3495_v62 = vsel %vm3370_vm3, %v676_v53, -1e+30  ;;  %v3589_v23 = vld [vmem:[#allocation2 + $0x10] sm:$0xff] }
  0xe1   : > { %v3499_v39 = vsel %vm3376_vm6, %v677_v10, -1e+30  ;;  %vm615_vm8 = vcmp.gt.f32.partialorder %v3306_v11, 0.0  ;;  %v678_v40 = vsel %vm614_vm9, %v3287_v38, %v3323_v45  ;;  %vm628_vm1 = vcmp.gt.f32.partialorder %v596_v5, 0.0 }
  0xe2   : > { %v874_v51 = vmax.f32 %v3495_v62, %v3499_v39  ;;  %v679_v60 = vsel %vm615_vm8, %v3306_v11, %v3337_v41  ;;  %896 = vmax.xlane.f32.xlu0 %v895_v28  ;;  %v3510_v2 = vsel %vm3406_vm11, %v678_v40, -1e+30  ;;  %vm629_vm3 = vcmp.gt.f32.partialorder %v597_v43, 0.0  ;;  %v3600_v28 = vld [vmem:[#allocation2 + $0x18] sm:$0xff]  ;;  %v2566_v40 = vld [vmem:[%s4053_s4 + $0x60] sm:$0xff]  }
  0xe3   : > { %v3514_v27 = vsel %vm3412_vm13, %v679_v60, -1e+30  ;;  %v692_v56 = vsel %vm628_vm1, %v596_v5, %v660_v36  ;;  %v693_v30 = vsel %vm629_vm3, %v597_v43, %v661_v57  ;;  %vm630_vm6 = vcmp.gt.f32.partialorder %v3389_v12, 0.0  ;;  %v2562_v43 = vld [vmem:[%s4053_s4 + $0x50] sm:$0xff]   ;;  %v3567_v57 = vld [vmem:[#allocation2 + $0x8] sm:$0xff] }
  0xe4   : > { %v3518_v8 = vsel %vm3423_vm14, %v692_v56, -1e+30  ;;  %v4137_v38 = vunpack.c.1.s8 %v3046_v32  ;;  %875 = vmax.xlane.f32.xlu1 %v874_v51  ;;  %v877_v11 = vmax.f32 %v3510_v2, %v3514_v27  ;;  %vm4138_vm11 = vnez %v4133_v34  ;;  %v3562_v34 = vld [vmem:[#allocation2 + $0x40] sm:$0xff]  ;;  %v2565_v51 = vld [vmem:[%s4053_s4 + $0x18] sm:$0xff]   ;;  %v3611_v60 = vld [vmem:[#allocation2 + $0x50] sm:$0xff] }
  0xe5   : > { %v3527_v45 = vsel %vm4138_vm11, %v693_v30, -1e+30  ;;  %vm631_vm13 = vcmp.gt.f32.partialorder %v3402_v21, 0.0  ;;  %v694_v41 = vsel %vm630_vm6, %v3389_v12, %v662_v7  ;;  %v2558_v12 = vld [vmem:[%s4053_s4 + $0x40] sm:$0xff]   ;;  %v2561_v7 = vld [vmem:[%s4053_s4 + $0x8] sm:$0xff]  }
  0xe6   : > { %vm807_vm10 = vcmp.ne.s32.totalorder %v4137_v38, 0  ;;  %v898_v46 = vmax.f32 %v3518_v8, %v3527_v45  ;;  %v695_v52 = vsel %vm631_vm13, %v3402_v21, %v663_v18  ;;  %v3536_v32 = vsel %vm3443_vm0, %v694_v41, -1e+30  ;;  %878 = vmax.xlane.f32.xlu0 %v877_v11  ;;  %v2559_v21 = vld [vmem:[%s4053_s4] sm:$0xff]   ;;  %2383 = vmatprep.subr.bf16.mxu0 %v2558_v12  ;;  %v3622_v41 = vld [vmem:[#allocation2 + $0x58] sm:$0xff] }
  0xe7   : > { %v3538_v47 = vsel %vm807_vm10, %v695_v52, -1e+30  ;;  %2495 = vmatprep.subr.bf16.mxu1 %v2558_v12  ;;  %2384 = vmatpush3.bf16.msra.mxu0 %v2559_v21  ;;  %vm4139_vm0 = vcmask 7168   ;;  %v2568_v52 = vld [vmem:[%s4053_s4 + $0x68] sm:$0xff]  }
  0xe8   : > { %899 = vmax.xlane.f32.xlu1 %v898_v46  ;;  %v901_v5 = vmax.f32 %v3536_v32, %v3538_v47  ;;  %2503 = vmatpush3.bf16.msra.mxu1 %v2559_v21  ;;  %vm4140_vm14 = vmmov %vm4139_vm0  ;;  %v2567_v46 = vld [vmem:[%s4053_s4 + $0x20] sm:$0xff]  }
  0xe9   : > { %2385 = vmatprep.subr.bf16.mxu0 %v2560_v16  ;;  %2496 = vmatprep.subr.bf16.mxu1 %v2560_v16  ;;  %vm4141_vm12 = vmmov %vm4139_vm0 }
  0xea   : > { %902 = vmax.xlane.f32.xlu0 %v901_v5  ;;  %vm4142_vm2 = vmmov %vm4139_vm0  ;;  %v844_v5 = vld [vmem:[#allocation2 + $0x20] sm:$0xff] }
  0xeb   : > { %2386 = vmatpush3.bf16.msra.mxu0 %v2561_v7  ;;  %vm4143_vm5 = vmmov %vm4139_vm0 }
  0xec   : > { %2504 = vmatpush3.bf16.msra.mxu1 %v2561_v7  ;;  %2387 = vmatprep.subr.bf16.mxu0 %v2562_v43  ;;  %vm4144_vm4 = vmmov %vm4139_vm0 }
  0xed   : > { %2497 = vmatprep.subr.bf16.mxu1 %v2562_v43  ;;  %vm4145_vm15 = vmmov %vm4139_vm0  ;;  %v2569_v43 = vld [vmem:[%s4053_s4 + $0x28] sm:$0xff]  }
  0xee   : > { %vm4146_vm7 = vmmov %vm4139_vm0 }
  0xef   : > { %2388 = vmatpush3.bf16.msra.mxu0 %v2563_v42  ;;  %vm4147_vm9 = vmmov %vm4139_vm0 }
  0xf0   : > { %2389 = vmatprep.subr.bf16.mxu0 %v2564_v31  ;;  %2505 = vmatpush3.bf16.msra.mxu1 %v2563_v42  ;;  %vm4148_vm8 = vmmov %vm4139_vm0 }
  0xf1   : > { %2498 = vmatprep.subr.bf16.mxu1 %v2564_v31  ;;  %v3652_v31 = vld [vmem:[#allocation2 + $0x60] sm:$0xff]  ;;  %vm4149_vm1 = vmmov %vm4139_vm0 }
  0xf2   : > { %vm4150_vm3 = vmmov %vm4139_vm0 }
  0xf3   : > { %2390 = vmatpush3.bf16.msra.mxu0 %v2565_v51  ;;  %vm4151_vm6 = vmmov %vm4139_vm0 }
  0xf4   : > { %2506 = vmatpush3.bf16.msra.mxu1 %v2565_v51  ;;  %2391 = vmatprep.subr.bf16.mxu0 %v2566_v40  ;;  %vm4152_vm10 = vmmov %vm4139_vm0 }
  0xf5   : > { %2499 = vmatprep.subr.bf16.mxu1 %v2566_v40  ;;  %vm4153_vm11 = vmmov %vm4139_vm0 }
  0xf6   : > { %vm4154_vm13 = vmmov %vm4139_vm0 }
  0xf7   : > { %2392 = vmatpush3.bf16.msra.mxu0 %v2567_v46 }
  0xf8   : > { %2507 = vmatpush3.bf16.msra.mxu1 %v2567_v46  ;;  %2393 = vmatprep.subr.bf16.mxu0 %v2568_v52  ;;  %v846_v46 = vld [vmem:[#allocation2 + $0x30] sm:$0xff] }
  0xf9   : > { %2500 = vmatprep.subr.bf16.mxu1 %v2568_v52 }
  0xfb   : > { %2394 = vmatpush3.bf16.msra.mxu0 %v2569_v43 }
  0xfc   : > { %2508 = vmatpush3.bf16.msra.mxu1 %v2569_v43 }
 0x148   : > { %v858_v18 = vpop.xlane.xlu0 %857 }
 0x149   : > { %v3560_v61 = vmax.f32 %v3557_v35, %v858_v18 }
 0x14b   : > { %1610 = vst.msk [vmem:[#allocation2] sm:$0xff] %vm4139_vm0, %v3560_v61  ;;  %970 = vperm.xlu1 %2557, %v3560_v61   ;;  %v920_v42 = vsub.f32 %v3557_v35, %v3560_v61 }
 0x14c   : > { %v882_v36 = vpop.xlane.xlu0 %881 }
 0x14d   : > { %v3570_v9 = vmax.f32 %v3562_v34, %v882_v36  ;;  %v3644_v36 = vld [vmem:[#allocation2 + $0x28] sm:$0xff]  ;;  %v936_v61 = vmul.f32 1.442695, %v920_v42  ;;  %v3687_v42 = vld [vmem:[#allocation2 + $0x70] sm:$0xff] }
 0x14f   : > { %1618 = vst.msk [vmem:[#allocation2 + $0x40] sm:$0xff] %vm4140_vm14, %v3570_v9  ;;  %1010 = vperm.xlu1 %2557, %v3570_v9   ;;  %vm4157_vm14 = vmmov %vm4139_vm0 }
 0x150   : > { %v861_v48 = vpop.xlane.xlu1 %860 }
 0x151   : > { %v3578_v59 = vmax.f32 %v3567_v57, %v861_v48  ;;  %v2570_v48 = vld [vmem:[%s4053_s4 + $0x70] sm:$0xff]  }
 0x152   : > { %v885_v37 = vpop.xlane.xlu0 %884  ;;  %2395 = vmatprep.subr.bf16.mxu0 %v2570_v48  ;;  %2501 = vmatprep.subr.bf16.mxu1 %v2570_v48 }
 0x153   : > { %1611 = vst.msk [vmem:[#allocation2 + $0x8] sm:$0xff] %vm4141_vm12, %v3578_v59  ;;  %975 = vperm.xlu0 %2556, %v3578_v59   ;;  %v3592_v54 = vmax.f32 %v3575_v58, %v885_v37  ;;  %v921_v18 = vsub.f32 %v3567_v57, %v3578_v59  ;;  %v2571_v37 = vld [vmem:[%s4053_s4 + $0x30] sm:$0xff]   ;;  %vm4158_vm12 = vmmov %vm4139_vm0 }
 0x154   : > { %2396 = vmatpush3.bf16.msra.mxu0 %v2571_v37  ;;  %2509 = vmatpush3.bf16.msra.mxu1 %v2571_v37 }
 0x155   : > { %1619 = vst.msk [vmem:[#allocation2 + $0x48] sm:$0xff] %vm4142_vm2, %v3592_v54  ;;  %1015 = vperm.xlu1 %2557, %v3592_v54   ;;  %vm4159_vm2 = vmmov %vm4139_vm0 }
 0x156   : > { %v864_v53 = vpop.xlane.xlu1 %863 }
 0x157   : > { %v3598_v10 = vmax.f32 %v3589_v23, %v864_v53  ;;  %v938_v53 = vmul.f32 1.442695, %v921_v18 }
 0x159   : > { %1612 = vst.msk [vmem:[#allocation2 + $0x10] sm:$0xff] %vm4143_vm5, %v3598_v10  ;;  %980 = vperm.xlu0 %2556, %v3598_v10   ;;  %2574 = vpow2.f32 %v938_v53  ;;  %vm4160_vm5 = vmmov %vm4139_vm0 }
 0x15a   : > { %v867_v56 = vpop.xlane.xlu0 %866  ;;  %2576 = vpow2.f32 %v936_v61 }
 0x15b   : > { %v3614_v30 = vmax.f32 %v3600_v28, %v867_v56  ;;  %v3660_v56 = vld [vmem:[#allocation2 + $0x68] sm:$0xff] }
 0x15d   : > { %v888_v38 = vpop.xlane.xlu1 %887  ;;  %1613 = vst.msk [vmem:[#allocation2 + $0x18] sm:$0xff] %vm4144_vm4, %v3614_v30  ;;  %985 = vperm.xlu1 %2557, %v3614_v30   ;;  %v923_v48 = vsub.f32 %v3600_v28, %v3614_v30  ;;  %vm4161_vm4 = vmmov %vm4139_vm0 }
 0x15e   : > { %v3617_v11 = vmax.f32 %v3611_v60, %v888_v38  ;;  %v922_v38 = vsub.f32 %v3589_v23, %v3598_v10 }
 0x15f   : > { %v942_v28 = vmul.f32 1.442695, %v923_v48  ;;  %v929_v48 = vsub.f32 %v3575_v58, %v3592_v54 }
 0x160   : > { %1620 = vst.msk [vmem:[#allocation2 + $0x50] sm:$0xff] %vm4145_vm15, %v3617_v11  ;;  %1020 = vperm.xlu0 %2556, %v3617_v11   ;;  %v940_v18 = vmul.f32 1.442695, %v922_v38  ;;  %vm4162_vm15 = vmmov %vm4139_vm0 }
 0x163   : > { %v891_v12 = vpop.xlane.xlu0 %890 }
 0x164   : > { %v3634_v16 = vmax.f32 %v3622_v41, %v891_v12 }
 0x165   : > { %v870_v21 = vpop.xlane.xlu1 %869 }
 0x166   : > { %v908_v7 = vmax.f32 %v844_v5, %v870_v21  ;;  %1621 = vst.msk [vmem:[#allocation2 + $0x58] sm:$0xff] %vm4146_vm7, %v3634_v16  ;;  %1025 = vperm.xlu1 %2557, %v3634_v16   ;;  %v2573_v21 = vld [vmem:[%s4053_s4 + $0x38] sm:$0xff]   ;;  %vm4163_vm7 = vmmov %vm4139_vm0 }
 0x168   : > { %1614 = vst.msk [vmem:[#allocation2 + $0x20] sm:$0xff] %vm4147_vm9, %v908_v7  ;;  %990 = vperm.xlu0 %2556, %v908_v7   ;;  %v924_v51 = vsub.f32 %v844_v5, %v908_v7  ;;  %v2572_v5 = vld [vmem:[%s4053_s4 + $0x78] sm:$0xff]   ;;  %vm4164_vm9 = vmmov %vm4139_vm0 }
 0x169   : > { %v847_v7 = vld [vmem:[#allocation2 + $0x38] sm:$0xff]  ;;  %2397 = vmatprep.subr.bf16.mxu0 %v2572_v5  ;;  %2502 = vmatprep.subr.bf16.mxu1 %v2572_v5 }
 0x16a   : > { %v944_v23 = vmul.f32 1.442695, %v924_v51  ;;  %2398 = vmatpush3.bf16.msra.mxu0 %v2573_v21  ;;  %2510 = vmatpush3.bf16.msra.mxu1 %v2573_v21  ;;  %v928_v51 = vsub.f32 %v3562_v34, %v3570_v9  ;;  %v930_v21 = vsub.f32 %v3611_v60, %v3617_v11 }
 0x16b   : > { %v873_v57 = vpop.xlane.xlu0 %872 }
 0x16c   : > { %v3655_v59 = vmax.f32 %v3644_v36, %v873_v57  ;;  %2578 = vpow2.f32 %v944_v23  ;;  %v952_v5 = vmul.f32 1.442695, %v928_v51 }
 0x16d   : > { %v894_v40 = vpop.xlane.xlu1 %893  ;;  %2580 = vpow2.f32 %v940_v18  ;;  %v956_v18 = vmul.f32 1.442695, %v930_v21 }
 0x16e   : > { %v3663_v35 = vmax.f32 %v3652_v31, %v894_v40  ;;  %1615 = vst.msk [vmem:[#allocation2 + $0x28] sm:$0xff] %vm4148_vm8, %v3655_v59  ;;  %995 = vperm.xlu1 %2557, %v3655_v59   ;;  %v925_v30 = vsub.f32 %v3644_v36, %v3655_v59  ;;  %v3715_v59 = vpop.eup %2574  ;;  %vm4165_vm8 = vmmov %vm4139_vm0 }
 0x16f   : > { %v897_v52 = vpop.xlane.xlu0 %896 }
 0x170   : > { %1622 = vst.msk [vmem:[#allocation2 + $0x60] sm:$0xff] %vm4149_vm1, %v3663_v35  ;;  %1030 = vperm.xlu0 %2556, %v3663_v35   ;;  %v3677_v12 = vmax.f32 %v3660_v56, %v897_v52  ;;  %v3692_v52 = vld [vmem:[#allocation2 + $0x78] sm:$0xff]  ;;  %v946_v23 = vmul.f32 1.442695, %v925_v30  ;;  %v932_v60 = vsub.f32 %v3652_v31, %v3663_v35  ;;  %v954_v31 = vmul.f32 1.442695, %v929_v48  ;;  %vm4166_vm1 = vmmov %vm4139_vm0 }
 0x171   : > { %v876_v10 = vpop.xlane.xlu1 %875  ;;  %v931_v35 = vsub.f32 %v3622_v41, %v3634_v16 }
 0x172   : > { %v910_v43 = vmax.f32 %v846_v46, %v876_v10  ;;  %1623 = vst.msk [vmem:[#allocation2 + $0x68] sm:$0xff] %vm4150_vm3, %v3677_v12  ;;  %1035 = vperm.xlu1 %2557, %v3677_v12   ;;  %vm4167_vm3 = vmmov %vm4139_vm0 }
 0x173   : > { %v879_v57 = vpop.xlane.xlu0 %878  ;;  %v958_v51 = vmul.f32 1.442695, %v931_v35 }
 0x174   : > { %v926_v37 = vsub.f32 %v846_v46, %v910_v43  ;;  %1616 = vst.msk [vmem:[#allocation2 + $0x30] sm:$0xff] %vm4151_vm6, %v910_v43  ;;  %1000 = vperm.xlu0 %2556, %v910_v43   ;;  %v911_v53 = vmax.f32 %v847_v7, %v879_v57  ;;  %v3718_v43 = vpop.eup %2576  ;;  %vm4168_vm6 = vmmov %vm4139_vm0 }
 0x175   : > { %v900_v40 = vpop.xlane.xlu1 %899 }
 0x176   : > { %v948_v61 = vmul.f32 1.442695, %v926_v37  ;;  %v3695_v38 = vmax.f32 %v3687_v42, %v900_v40  ;;  %1617 = vst.msk [vmem:[#allocation2 + $0x38] sm:$0xff] %vm4152_vm10, %v911_v53  ;;  %1005 = vperm.xlu1 %2557, %v911_v53   ;;  %v927_v10 = vsub.f32 %v847_v7, %v911_v53  ;;  %v3723_v11 = vpop.eup %2578  ;;  %v960_v37 = vmul.f32 1.442695, %v932_v60  ;;  %vm4169_vm10 = vmmov %vm4139_vm0 }
 0x177   : > { %v903_v46 = vpop.xlane.xlu0 %902  ;;  %v3728_v7 = vpop.eup %2580  ;;  %v933_v40 = vsub.f32 %v3660_v56, %v3677_v12 }
 0x178   : > { %2582 = vpow2.f32 %v948_v61  ;;  %v934_v34 = vsub.f32 %v3687_v42, %v3695_v38  ;;  %1624 = vst.msk [vmem:[#allocation2 + $0x70] sm:$0xff] %vm4153_vm11, %v3695_v38  ;;  %1040 = vperm.xlu0 %2556, %v3695_v38   ;;  %v3706_v9 = vmax.f32 %v3692_v52, %v903_v46  ;;  %v950_v57 = vmul.f32 1.442695, %v927_v10  ;;  %vm4170_vm11 = vmmov %vm4139_vm0 }
 0x179   : > { %2584 = vpow2.f32 %v942_v28  ;;  %v962_v16 = vmul.f32 1.442695, %v933_v40 }
 0x17a   : > { %v935_v36 = vsub.f32 %v3692_v52, %v3706_v9  ;;  %1625 = vst.msk [vmem:[#allocation2 + $0x78] sm:$0xff] %vm4154_vm13, %v3706_v9  ;;  %1045 = vperm.xlu1 %2557, %v3706_v9   ;;  %2586 = vpow2.f32 %v952_v5  ;;  %vm4171_vm13 = vmmov %vm4139_vm0 }
 0x17b   : > { %2588 = vpow2.f32 %v946_v23 }
 0x17c   : > { %1280 = vperm.xlu0 %2556, %v3715_v59   ;;  %2590 = vpow2.f32 %v956_v18 }
 0x17d   : > { %2592 = vpow2.f32 %v950_v57 }
 0x17e   : > { %1275 = vperm.xlu1 %2557, %v3718_v43   ;;  %2594 = vpow2.f32 %v960_v37 }
 0x17f   : > { %2596 = vpow2.f32 %v954_v31 }
 0x180   : > { %1295 = vperm.xlu0 %2556, %v3723_v11   ;;  %2598 = vpow2.f32 %v958_v51 }
 0x181   : > { %2600 = vpow2.f32 %v962_v16 }
 0x182   : > { %v3730_v53 = vpop.eup %2582  ;;  %1285 = vperm.xlu1 %2557, %v3728_v7  }
 0x183   : > { %v3736_v58 = vpop.eup %2584 }
 0x184   : > { %1305 = vperm.xlu0 %2556, %v3730_v53   ;;  %v3739_v54 = vpop.eup %2586 }
 0x185   : > { %v3744_v61 = vpop.eup %2588 }
 0x186   : > { %1290 = vperm.xlu1 %2557, %v3736_v58   ;;  %v3747_v41 = vpop.eup %2590 }
 0x187   : > { %v3750_v28 = vpop.eup %2592 }
 0x188   : > { %1315 = vperm.xlu0 %2556, %v3739_v54   ;;  %v3753_v30 = vpop.eup %2594 }
 0x189   : > { %v3756_v56 = vpop.eup %2596 }
 0x18a   : > { %1300 = vperm.xlu1 %2557, %v3744_v61   ;;  %v3759_v12 = vpop.eup %2598 }
 0x18b   : > { %v3762_v46 = vpop.eup %2600 }
 0x18c   : > { %1325 = vperm.xlu0 %2556, %v3747_v41  }
 0x18e   : > { %1310 = vperm.xlu1 %2557, %v3750_v28  }
 0x190   : > { %1335 = vperm.xlu0 %2556, %v3753_v30  }
 0x192   : > { %1320 = vperm.xlu1 %2557, %v3756_v56  }
 0x196   : > { %1330 = vperm.xlu1 %2557, %v3759_v12  }
 0x19a   : > { %1340 = vperm.xlu1 %2557, %v3762_v46  }
 0x1ca   : > { %v971_v5 = vpop.permute.xlu1 %970 }
 0x1cb   : > { %v1048_v21 = vsub.f32 %v3077_v29, %v971_v5  ;;  %v1049_v23 = vsub.f32 %v3081_v25, %v971_v5 }
 0x1cd   : > { %v1080_v10 = vmul.f32 1.442695, %v1048_v21  ;;  %v1082_v18 = vmul.f32 1.442695, %v1049_v23 }
 0x1ce   : > { %v1011_v60 = vpop.permute.xlu1 %1010 }
 0x1cf   : > { %2602 = vpow2.f32 %v1080_v10  ;;  %v1064_v48 = vsub.f32 %v3096_v6, %v1011_v60  ;;  %v1065_v57 = vsub.f32 %v3100_v33, %v1011_v60 }
 0x1d0   : > { %2604 = vpow2.f32 %v1082_v18 }
 0x1d1   : > { %v1112_v37 = vmul.f32 1.442695, %v1064_v48  ;;  %v1114_v31 = vmul.f32 1.442695, %v1065_v57 }
 0x1d2   : > { %v976_v35 = vpop.permute.xlu0 %975 }
 0x1d3   : > { %v1050_v51 = vsub.f32 %v3142_v50, %v976_v35  ;;  %v1051_v40 = vsub.f32 %v3160_v49, %v976_v35  ;;  %2606 = vpow2.f32 %v1112_v37 }
 0x1d4   : > { %v1016_v16 = vpop.permute.xlu1 %1015  ;;  %2608 = vpow2.f32 %v1114_v31 }
 0x1d5   : > { %v1084_v29 = vmul.f32 1.442695, %v1050_v51  ;;  %v1086_v25 = vmul.f32 1.442695, %v1051_v40  ;;  %v1066_v5 = vsub.f32 %v3164_v44, %v1016_v16  ;;  %v1067_v21 = vsub.f32 %v3195_v0, %v1016_v16 }
 0x1d7   : > { %2610 = vpow2.f32 %v1084_v29  ;;  %v1116_v6 = vmul.f32 1.442695, %v1066_v5  ;;  %v1118_v23 = vmul.f32 1.442695, %v1067_v21 }
 0x1d8   : > { %v981_v33 = vpop.permute.xlu0 %980  ;;  %2612 = vpow2.f32 %v1086_v25 }
 0x1d9   : > { %v1052_v10 = vsub.f32 %v3226_v1, %v981_v33  ;;  %v1053_v50 = vsub.f32 %v3230_v17, %v981_v33  ;;  %2614 = vpow2.f32 %v1116_v6  ;;  %v2603_v49 = vpop.eup %2602  ;;  %v4155_v17 = vld [vmem:[#allocation8_spill] sm:$0xff] }
 0x1da   : > { %2616 = vpow2.f32 %v1118_v23  ;;  %v2605_v48 = vpop.eup %2604 }
 0x1db   : > { %v1088_v18 = vmul.f32 1.442695, %v1052_v10  ;;  %v1090_v60 = vmul.f32 1.442695, %v1053_v50  ;;  %v1176_v37 = vadd.f32 %v2605_v48, %v2603_v49 }
 0x1dc   : > { %v986_v57 = vpop.permute.xlu1 %985 }
 0x1dd   : > { %2618 = vpow2.f32 %v1088_v18  ;;  %v1054_v44 = vsub.f32 %v3277_v4, %v986_v57  ;;  %v1055_v0 = vsub.f32 %v3282_v26, %v986_v57  ;;  %1177 = vadd.xlane.f32.xlu0 %v1176_v37  ;;  %v3779_v16 = vpop.eup %2606  ;;  %v4156_v18 = vld [vmem:[#allocation9_spill] sm:$0xff] }
 0x1de   : > { %2620 = vpow2.f32 %v1090_v60  ;;  %v3781_v29 = vpop.eup %2608 }
 0x1df   : > { %v1021_v31 = vpop.permute.xlu0 %1020  ;;  %v1092_v35 = vmul.f32 1.442695, %v1054_v44  ;;  %v1094_v51 = vmul.f32 1.442695, %v1055_v0 }
 0x1e0   : > { %v1068_v1 = vsub.f32 %v3316_v63, %v1021_v31  ;;  %v1069_v40 = vsub.f32 %v4155_v17, %v1021_v31 }
 0x1e1   : > { %2622 = vpow2.f32 %v1092_v35  ;;  %v2611_v5 = vpop.eup %2610 }
 0x1e2   : > { %v1120_v25 = vmul.f32 1.442695, %v1068_v1  ;;  %2624 = vpow2.f32 %v1094_v51  ;;  %v1122_v4 = vmul.f32 1.442695, %v1069_v40  ;;  %v2613_v21 = vpop.eup %2612  ;;  %v1369_v63 = vpack.c.bf16 %v2611_v5, %v2603_v49 }
 0x1e3   : > { %v3785_v10 = vpop.eup %2614  ;;  %v1370_v57 = vpack.c.bf16 %v2613_v21, %v2605_v48  ;;  %v1179_v31 = vadd.f32 %v2613_v21, %v2611_v5 }
 0x1e4   : > { %2626 = vpow2.f32 %v1120_v25  ;;  %v3789_v44 = vpop.eup %2616 }
 0x1e5   : > { %v1026_v26 = vpop.permute.xlu1 %1025  ;;  %2628 = vpow2.f32 %v1122_v4  ;;  %1513 = vmatprep.mubr.bf16.mxu0 %v1370_v57  ;;  %v1378_v49 = vpack.c.bf16 %v3789_v44, %v3781_v29  ;;  %1180 = vadd.xlane.f32.xlu1 %v1179_v31 }
 0x1e6   : > { %v1070_v6 = vsub.f32 %v3365_v13, %v1026_v26  ;;  %v1071_v33 = vsub.f32 %v3382_v20, %v1026_v26  ;;  %v1377_v13 = vpack.c.bf16 %v3785_v10, %v3779_v16  ;;  %1514 = vmatmul.mubr.bf16.vlgmr.msra.gmra.mrb[0].mxu0 %v1369_v63 }
 0x1e7   : > { %v991_v23 = vpop.permute.xlu0 %990  ;;  %v2619_v51 = vpop.eup %2618  ;;  %1545 = vmatprep.mubr.bf16.mxu1 %v1378_v49 }
 0x1e8   : > { %v1056_v50 = vsub.f32 %v3395_v19, %v991_v23  ;;  %v1057_v60 = vsub.f32 %v4156_v18, %v991_v23  ;;  %v1124_v0 = vmul.f32 1.442695, %v1070_v6  ;;  %v1126_v37 = vmul.f32 1.442695, %v1071_v33  ;;  %v2621_v48 = vpop.eup %2620  ;;  %1546 = vmatmul.mubr.bf16.vlgmr.msra.gmra.mrb[0].mxu1 %v1377_v13 }
 0x1e9   : > { %v1182_v25 = vadd.f32 %v2621_v48, %v2619_v51 }
 0x1ea   : > { %v1096_v20 = vmul.f32 1.442695, %v1056_v50  ;;  %v1098_v35 = vmul.f32 1.442695, %v1057_v60  ;;  %2630 = vpow2.f32 %v1124_v0 }
 0x1eb   : > { %2632 = vpow2.f32 %v1126_v37  ;;  %v2623_v21 = vpop.eup %2622  ;;  %1183 = vadd.xlane.f32.xlu0 %v1182_v25 }
 0x1ec   : > { %2634 = vpow2.f32 %v1096_v20  ;;  %v2625_v23 = vpop.eup %2624 }
 0x1ed   : > { %v996_v19 = vpop.permute.xlu1 %995  ;;  %2636 = vpow2.f32 %v1098_v35  ;;  %v1185_v60 = vadd.f32 %v2625_v23, %v2623_v21  ;;  %v1372_v57 = vpack.c.bf16 %v2625_v23, %v2621_v48 }
 0x1ee   : > { %v1058_v1 = vsub.f32 %v3449_v24, %v996_v19  ;;  %v1059_v17 = vsub.f32 %v3453_v55, %v996_v19  ;;  %v3801_v0 = vpop.eup %2626 }
 0x1ef   : > { %v1031_v40 = vpop.permute.xlu0 %1030  ;;  %1186 = vadd.xlane.f32.xlu0 %v1185_v60  ;;  %1521 = vmatprep.mubr.bf16.mxu0 %v1372_v57 }
 0x1f0   : > { %v1100_v5 = vmul.f32 1.442695, %v1058_v1  ;;  %v1102_v4 = vmul.f32 1.442695, %v1059_v17  ;;  %v1072_v26 = vsub.f32 %v3464_v3, %v1031_v40  ;;  %v1073_v6 = vsub.f32 %v3469_v14, %v1031_v40 }
 0x1f1   : > { %v1036_v33 = vpop.permute.xlu1 %1035 }
 0x1f2   : > { %2638 = vpow2.f32 %v1100_v5  ;;  %v1128_v24 = vmul.f32 1.442695, %v1072_v26  ;;  %v1074_v55 = vsub.f32 %v3481_v22, %v1036_v33  ;;  %v1075_v63 = vsub.f32 %v3486_v15, %v1036_v33  ;;  %v3805_v15 = vpop.eup %2628 }
 0x1f3   : > { %2640 = vpow2.f32 %v1102_v4  ;;  %v1130_v50 = vmul.f32 1.442695, %v1073_v6  ;;  %v1001_v18 = vpop.permute.xlu0 %1000  ;;  %v1371_v22 = vpack.c.bf16 %v2623_v21, %v2619_v51 }
 0x1f4   : > { %2642 = vpow2.f32 %v1128_v24  ;;  %v1132_v3 = vmul.f32 1.442695, %v1074_v55  ;;  %v1134_v37 = vmul.f32 1.442695, %v1075_v63  ;;  %v1060_v14 = vsub.f32 %v3495_v62, %v1001_v18  ;;  %v3809_v19 = vpop.eup %2630 }
 0x1f5   : > { %2644 = vpow2.f32 %v1130_v50  ;;  %v1061_v31 = vsub.f32 %v3499_v39, %v1001_v18  ;;  %v1006_v13 = vpop.permute.xlu1 %1005  ;;  %1522 = vmatmul.mubr.bf16.gmra.mrb[4].mxu0 %v1371_v22  ;;  %v3811_v1 = vpop.eup %2632  ;;  %v1379_v5 = vpack.c.bf16 %v3809_v19, %v3801_v0 }
 0x1f6   : > { %2646 = vpow2.f32 %v1132_v3  ;;  %v1104_v20 = vmul.f32 1.442695, %v1060_v14  ;;  %v1062_v35 = vsub.f32 %v3510_v2, %v1006_v13  ;;  %v1063_v49 = vsub.f32 %v3514_v27, %v1006_v13  ;;  %v2635_v40 = vpop.eup %2634 }
 0x1f7   : > { %2648 = vpow2.f32 %v1134_v37  ;;  %v1106_v48 = vmul.f32 1.442695, %v1061_v31  ;;  %v1041_v62 = vpop.permute.xlu0 %1040  ;;  %v1380_v27 = vpack.c.bf16 %v3811_v1, %v3805_v15  ;;  %v2637_v4 = vpop.eup %2636 }
 0x1f8   : > { %2650 = vpow2.f32 %v1104_v20  ;;  %v1108_v39 = vmul.f32 1.442695, %v1062_v35  ;;  %v1110_v17 = vmul.f32 1.442695, %v1063_v49  ;;  %v1076_v51 = vsub.f32 %v3518_v8, %v1041_v62 }
 0x1f9   : > { %2652 = vpow2.f32 %v1106_v48  ;;  %v1077_v25 = vsub.f32 %v3527_v45, %v1041_v62  ;;  %v1046_v2 = vpop.permute.xlu1 %1045  ;;  %v1188_v33 = vadd.f32 %v2637_v4, %v2635_v40  ;;  %1553 = vmatprep.mubr.bf16.mxu1 %v1380_v27 }
 0x1fa   : > { %2654 = vpow2.f32 %v1108_v39  ;;  %v1136_v26 = vmul.f32 1.442695, %v1076_v51  ;;  %v1078_v21 = vsub.f32 %v3536_v32, %v1046_v2  ;;  %v1079_v6 = vsub.f32 %v3538_v47, %v1046_v2  ;;  %1554 = vmatmul.mubr.bf16.gmra.mrb[4].mxu1 %v1379_v5 }
 0x1fb   : > { %2656 = vpow2.f32 %v1110_v17  ;;  %v1138_v8 = vmul.f32 1.442695, %v1077_v25  ;;  %1189 = vadd.xlane.f32.xlu1 %v1188_v33  ;;  %v1200_v51 = vadd.f32 %v3781_v29, %v3779_v16  ;;  %v1203_v2 = vadd.f32 %v3789_v44, %v3785_v10 }
 0x1fc   : > { %v2639_v23 = vpop.eup %2638  ;;  %2658 = vpow2.f32 %v1136_v26  ;;  %v1140_v45 = vmul.f32 1.442695, %v1078_v21  ;;  %v1142_v24 = vmul.f32 1.442695, %v1079_v6  ;;  %v1206_v5 = vadd.f32 %v3805_v15, %v3801_v0 }
 0x1fd   : > { %v2641_v55 = vpop.eup %2640  ;;  %2660 = vpow2.f32 %v1138_v8  ;;  %v1373_v63 = vpack.c.bf16 %v2639_v23, %v2635_v40  ;;  %v966_v10 = vmul.f32 1.442695, %v935_v36  ;;  %v964_v44 = vmul.f32 1.442695, %v934_v34 }
 0x1fe   : > { %v2643_v50 = vpop.eup %2642  ;;  %2662 = vpow2.f32 %v1140_v45  ;;  %v1191_v18 = vadd.f32 %v2641_v55, %v2639_v23  ;;  %v1374_v60 = vpack.c.bf16 %v2641_v55, %v2637_v4  ;;  %v1209_v4 = vadd.f32 %v3811_v1, %v3809_v19  ;;  %v3841_v19 = vpop.permute.xlu1 %1275  ;;  %v1144_v45 = vld [vmem:[#allocation3] sm:$0xff] }
 0x1ff   : > { %v2645_v32 = vpop.eup %2644  ;;  %2664 = vpow2.f32 %v1142_v24  ;;  %v3843_v1 = vpop.permute.xlu0 %1280  ;;  %v1160_v55 = vmul.f32 %v3718_v43, %v1144_v45 }
 0x200   : > { %v2647_v47 = vpop.eup %2646  ;;  %1192 = vadd.xlane.f32.xlu0 %v1191_v18  ;;  %1529 = vmatprep.mubr.bf16.mxu0 %v1374_v60  ;;  %v1212_v16 = vadd.f32 %v2645_v32, %v2643_v50  ;;  %2666 = vpow2.f32 %v966_v10  ;;  %v1145_v60 = vld [vmem:[#allocation3 + $0x8] sm:$0xff] }
 0x201   : > { %v2649_v57 = vpop.eup %2648  ;;  %1530 = vmatmul.mubr.bf16.gmra.mrb[8].mxu0 %v1373_v63  ;;  %v1381_v3 = vpack.c.bf16 %v2647_v47, %v2643_v50  ;;  %2668 = vpow2.f32 %v964_v44  ;;  %v1155_v44 = vld [vmem:[#allocation3 + $0x58] sm:$0xff] }
 0x202   : > { %v2651_v37 = vpop.eup %2650  ;;  %v1382_v14 = vpack.c.bf16 %v2649_v57, %v2645_v32  ;;  %v1215_v29 = vadd.f32 %v2649_v57, %v2647_v47  ;;  %v3845_v52 = vpop.permute.xlu1 %1285  ;;  %v1161_v32 = vmul.f32 %v3715_v59, %v1145_v60  ;;  %v1146_v57 = vld [vmem:[#allocation3 + $0x10] sm:$0xff] }
 0x203   : > { %v2653_v31 = vpop.eup %2652  ;;  %v3847_v9 = vpop.permute.xlu0 %1295 }
 0x204   : > { %v2655_v13 = vpop.eup %2654  ;;  %v1194_v22 = vadd.f32 %v2653_v31, %v2651_v37  ;;  %1561 = vmatprep.mubr.bf16.mxu1 %v1382_v14 }
 0x205   : > { %v2657_v20 = vpop.eup %2656  ;;  %1562 = vmatmul.mubr.bf16.gmra.mrb[8].mxu1 %v1381_v3  ;;  %v1375_v35 = vpack.c.bf16 %v2655_v13, %v2651_v37  ;;  %v1162_v37 = vmul.f32 %v3728_v7, %v1146_v57 }
 0x206   : > { %v2659_v49 = vpop.eup %2658  ;;  %1195 = vadd.xlane.f32.xlu1 %v1194_v22  ;;  %v1197_v48 = vadd.f32 %v2657_v20, %v2655_v13  ;;  %v1376_v62 = vpack.c.bf16 %v2657_v20, %v2653_v31  ;;  %v3849_v36 = vpop.permute.xlu1 %1290  ;;  %v1147_v31 = vld [vmem:[#allocation3 + $0x18] sm:$0xff] }
 0x207   : > { %v2661_v39 = vpop.eup %2660  ;;  %v3851_v42 = vpop.permute.xlu0 %1305  ;;  %v1163_v43 = vmul.f32 %v3736_v58, %v1147_v31  ;;  %v1151_v58 = vld [vmem:[#allocation3 + $0x38] sm:$0xff] }
 0x208   : > { %v2663_v17 = vpop.eup %2662  ;;  %1198 = vadd.xlane.f32.xlu0 %v1197_v48  ;;  %1537 = vmatprep.mubr.bf16.mxu0 %v1376_v62  ;;  %v1218_v26 = vadd.f32 %v2661_v39, %v2659_v49  ;;  %v1159_v31 = vld [vmem:[#allocation3 + $0x78] sm:$0xff] }
 0x209   : > { %v2665_v40 = vpop.eup %2664  ;;  %1538 = vmatmul.mubr.bf16.gmra.mrb[12].mxu0 %v1375_v35  ;;  %v1383_v25 = vpack.c.bf16 %v2663_v17, %v2659_v49  ;;  %v1148_v35 = vld [vmem:[#allocation3 + $0x20] sm:$0xff]  ;;  %v1149_v49 = vld [vmem:[#allocation3 + $0x28] sm:$0xff] }
 0x20a   : > { %1201 = vadd.xlane.f32.xlu1 %v1200_v51  ;;  %v1384_v27 = vpack.c.bf16 %v2665_v40, %v2661_v39  ;;  %v1221_v21 = vadd.f32 %v2665_v40, %v2663_v17  ;;  %v3835_v0 = vpop.eup %2666  ;;  %v3853_v38 = vpop.permute.xlu1 %1300  ;;  %v1164_v59 = vmul.f32 %v3723_v11, %v1148_v35  ;;  %v1165_v39 = vmul.f32 %v3744_v61, %v1149_v49  ;;  %v1150_v51 = vld [vmem:[#allocation3 + $0x30] sm:$0xff] }
 0x20b   : > { %v3838_v15 = vpop.eup %2668  ;;  %v3855_v34 = vpop.permute.xlu0 %1315  ;;  %v1166_v40 = vmul.f32 %v3730_v53, %v1150_v51  ;;  %v1167_v11 = vmul.f32 %v3750_v28, %v1151_v58  ;;  %v1266_v58 = vld [vmem:[#allocation4 + $0x48] sm:$0xff] }
 0x20c   : > { %1204 = vadd.xlane.f32.xlu0 %v1203_v2  ;;  %1569 = vmatprep.mubr.bf16.mxu1 %v1384_v27  ;;  %v1152_v2 = vld [vmem:[#allocation3 + $0x40] sm:$0xff] }
 0x20d   : > { %1570 = vmatmul.mubr.bf16.gmra.mrb[12].mxu1 %v1383_v25  ;;  %v1168_v61 = vmul.f32 %v3739_v54, %v1152_v2  ;;  %v1171_v54 = vmul.f32 %v3759_v12, %v1155_v44 }
 0x20e   : > { %1207 = vadd.xlane.f32.xlu1 %v1206_v5  ;;  %v3857_v6 = vpop.permute.xlu1 %1310 }
 0x20f   : > { %v3859_v8 = vpop.permute.xlu0 %1325 }
 0x210   : > { %1210 = vadd.xlane.f32.xlu0 %v1209_v4  ;;  %v1153_v4 = vld [vmem:[#allocation3 + $0x48] sm:$0xff] }
 0x211   : > { %v1169_v10 = vmul.f32 %v3756_v56, %v1153_v4 }
 0x212   : > { %1213 = vadd.xlane.f32.xlu1 %v1212_v16  ;;  %v3861_v33 = vpop.permute.xlu1 %1320 }
 0x213   : > { %v3863_v23 = vpop.permute.xlu0 %1335 }
 0x214   : > { %1216 = vadd.xlane.f32.xlu0 %v1215_v29 }
 0x216   : > { %1219 = vadd.xlane.f32.xlu1 %v1218_v26  ;;  %v3865_v24 = vpop.permute.xlu1 %1330  ;;  %v1154_v26 = vld [vmem:[#allocation3 + $0x50] sm:$0xff] }
 0x217   : > { %v1170_v28 = vmul.f32 %v3747_v41, %v1154_v26 }
 0x218   : > { %1222 = vadd.xlane.f32.xlu0 %v1221_v21 }
 0x21a   : > { %v3869_v18 = vpop.permute.xlu1 %1340 }
 0x227   : > { %1350 = vperm.xlu1 %2557, %v3835_v0  }
 0x22e   : > { %1345 = vperm.xlu0 %2556, %v3838_v15  }
 0x26a   : > { %v1178_v63 = vpop.xlane.xlu0 %1177 }
 0x26b   : > { %v1224_v50 = vadd.f32 %v1178_v63, %v1160_v55  ;;  %v1156_v63 = vld [vmem:[#allocation3 + $0x60] sm:$0xff] }
 0x26c   : > { %v1172_v56 = vmul.f32 %v3753_v30, %v1156_v63  ;;  %v1175_v30 = vmul.f32 %v3835_v0, %v1159_v31 }
 0x26d   : > { %1241 = vst.msk [vmem:[#allocation3] sm:$0xff] %vm4139_vm0, %v1224_v50 }
 0x272   : > { %v1181_v47 = vpop.xlane.xlu1 %1180 }
 0x273   : > { %v1225_v3 = vadd.f32 %v1181_v47, %v1161_v32  ;;  %v1157_v32 = vld [vmem:[#allocation3 + $0x68] sm:$0xff] }
 0x274   : > { %v1173_v41 = vmul.f32 %v3762_v46, %v1157_v32  ;;  %v1257_v46 = vld [vmem:[#allocation4] sm:$0xff] }
 0x275   : > { %1242 = vst.msk [vmem:[#allocation3 + $0x8] sm:$0xff] %vm4157_vm14, %v1225_v3  ;;  %v1158_v3 = vld [vmem:[#allocation3 + $0x70] sm:$0xff] }
 0x276   : > { %v1174_v12 = vmul.f32 %v3838_v15, %v1158_v3  ;;  %v1353_v15 = vmul.f32 %v3841_v19, %v1257_v46 }
 0x278   : > { %v1184_v14 = vpop.xlane.xlu0 %1183 }
 0x279   : > { %v1226_v13 = vadd.f32 %v1184_v14, %v1162_v37 }
 0x27b   : > { %1243 = vst.msk [vmem:[#allocation3 + $0x10] sm:$0xff] %vm4158_vm12, %v1226_v13 }
 0x27c   : > { %v1187_v22 = vpop.xlane.xlu0 %1186 }
 0x27d   : > { %v1227_v20 = vadd.f32 %v1187_v22, %v1163_v43 }
 0x27f   : > { %1244 = vst.msk [vmem:[#allocation3 + $0x18] sm:$0xff] %vm4159_vm2, %v1227_v20 }
 0x288   : > { %v1190_v48 = vpop.xlane.xlu1 %1189 }
 0x289   : > { %v1228_v62 = vadd.f32 %v1190_v48, %v1164_v59  ;;  %v1258_v59 = vld [vmem:[#allocation4 + $0x8] sm:$0xff]  ;;  %v1265_v48 = vld [vmem:[#allocation4 + $0x40] sm:$0xff] }
 0x28a   : > { %v1354_v51 = vmul.f32 %v3843_v1, %v1258_v59  ;;  %v1259_v1 = vld [vmem:[#allocation4 + $0x10] sm:$0xff] }
 0x28b   : > { %1245 = vst.msk [vmem:[#allocation3 + $0x20] sm:$0xff] %vm4160_vm5, %v1228_v62 }
 0x28d   : > { %v1193_v7 = vpop.xlane.xlu0 %1192 }
 0x28e   : > { %v1229_v17 = vadd.f32 %v1193_v7, %v1165_v39 }
 0x290   : > { %1246 = vst.msk [vmem:[#allocation3 + $0x28] sm:$0xff] %vm4161_vm4, %v1229_v17 }
 0x293   : > { %v1196_v25 = vpop.xlane.xlu1 %1195 }
 0x294   : > { %v1230_v27 = vadd.f32 %v1196_v25, %v1166_v40  ;;  %v1361_v25 = vmul.f32 %v3855_v34, %v1265_v48  ;;  %v1355_v34 = vmul.f32 %v3845_v52, %v1259_v1  ;;  %v1261_v52 = vld [vmem:[#allocation4 + $0x20] sm:$0xff]  ;;  %v1272_v1 = vld [vmem:[#allocation4 + $0x78] sm:$0xff] }
 0x295   : > { %v1199_v5 = vpop.xlane.xlu0 %1198 }
 0x296   : > { %1247 = vst.msk [vmem:[#allocation3 + $0x30] sm:$0xff] %vm4162_vm15, %v1230_v27  ;;  %v1231_v16 = vadd.f32 %v1199_v5, %v1167_v11 }
 0x297   : > { %v1202_v29 = vpop.xlane.xlu1 %1201 }
 0x298   : > { %v1232_v21 = vadd.f32 %v1202_v29, %v1168_v61  ;;  %1248 = vst.msk [vmem:[#allocation3 + $0x38] sm:$0xff] %vm4163_vm7, %v1231_v16  ;;  %v1362_v61 = vmul.f32 %v3861_v33, %v1266_v58  ;;  %v1267_v33 = vld [vmem:[#allocation4 + $0x50] sm:$0xff] }
 0x299   : > { %v1205_v53 = vpop.xlane.xlu0 %1204 }
 0x29a   : > { %1249 = vst.msk [vmem:[#allocation3 + $0x40] sm:$0xff] %vm4164_vm9, %v1232_v21  ;;  %v1233_v45 = vadd.f32 %v1205_v53, %v1169_v10  ;;  %v1260_v10 = vld [vmem:[#allocation4 + $0x18] sm:$0xff] }
 0x29b   : > { %v1208_v55 = vpop.xlane.xlu1 %1207 }
 0x29c   : > { %v1234_v50 = vadd.f32 %v1208_v55, %v1170_v28  ;;  %1250 = vst.msk [vmem:[#allocation3 + $0x48] sm:$0xff] %vm4165_vm8, %v1233_v45  ;;  %v1356_v55 = vmul.f32 %v3849_v36, %v1260_v10 }
 0x29d   : > { %v1211_v60 = vpop.xlane.xlu0 %1210 }
 0x29e   : > { %1251 = vst.msk [vmem:[#allocation3 + $0x50] sm:$0xff] %vm4166_vm1, %v1234_v50  ;;  %v1235_v47 = vadd.f32 %v1211_v60, %v1171_v54  ;;  %v1268_v60 = vld [vmem:[#allocation4 + $0x58] sm:$0xff] }
 0x29f   : > { %v1214_v57 = vpop.xlane.xlu1 %1213 }
 0x2a0   : > { %v1236_v37 = vadd.f32 %v1214_v57, %v1172_v56  ;;  %1252 = vst.msk [vmem:[#allocation3 + $0x58] sm:$0xff] %vm4167_vm3, %v1235_v47  ;;  %v1363_v47 = vmul.f32 %v3859_v8, %v1267_v33 }
 0x2a1   : > { %v1217_v14 = vpop.xlane.xlu0 %1216 }
 0x2a2   : > { %1253 = vst.msk [vmem:[#allocation3 + $0x60] sm:$0xff] %vm4168_vm6, %v1236_v37  ;;  %v1237_v13 = vadd.f32 %v1217_v14, %v1173_v41  ;;  %v1364_v41 = vmul.f32 %v3865_v24, %v1268_v60  ;;  %v1270_v24 = vld [vmem:[#allocation4 + $0x68] sm:$0xff] }
 0x2a3   : > { %v1220_v43 = vpop.xlane.xlu1 %1219  ;;  %v1366_v58 = vmul.f32 %v3869_v18, %v1270_v24 }
 0x2a4   : > { %v1238_v22 = vadd.f32 %v1220_v43, %v1174_v12  ;;  %1254 = vst.msk [vmem:[#allocation3 + $0x68] sm:$0xff] %vm4169_vm10, %v1237_v13  ;;  %v1262_v12 = vld [vmem:[#allocation4 + $0x28] sm:$0xff] }
 0x2a5   : > { %v1223_v20 = vpop.xlane.xlu0 %1222  ;;  %v1358_v46 = vmul.f32 %v3853_v38, %v1262_v12  ;;  %v1264_v38 = vld [vmem:[#allocation4 + $0x38] sm:$0xff] }
 0x2a6   : > { %1255 = vst.msk [vmem:[#allocation3 + $0x70] sm:$0xff] %vm4170_vm11, %v1238_v22  ;;  %v1239_v35 = vadd.f32 %v1223_v20, %v1175_v30  ;;  %v1357_v22 = vmul.f32 %v3847_v9, %v1261_v52 }
 0x2a8   : > { %1256 = vst.msk [vmem:[#allocation3 + $0x78] sm:$0xff] %vm4171_vm13, %v1239_v35  ;;  %v1269_v35 = vld [vmem:[#allocation4 + $0x60] sm:$0xff] }
 0x2b9   : > { %v2399_v49 = vpop.f32.mrb[0].mxu0 }
 0x2ba   : > { %v2400_v62 = vpop.f32.mrb[1].mxu0 }
 0x2bb   : > { %v2401_v39 = vadd.f32 %v2400_v62, %v2399_v49  ;;  %v2402_v7 = vpop.f32.mrb[2].mxu0  ;;  %v2423_v17 = vpop.f32.mrb[0].mxu1 }
 0x2bc   : > { %v2403_v0 = vpop.f32.mrb[3].mxu0  ;;  %v2424_v40 = vpop.f32.mrb[1].mxu1 }
 0x2bd   : > { %v1578_v2 = vadd.f32 %v2401_v39, %v1353_v15  ;;  %v2404_v27 = vadd.f32 %v2403_v0, %v2402_v7  ;;  %v2425_v11 = vadd.f32 %v2424_v40, %v2423_v17  ;;  %v2426_v5 = vpop.f32.mrb[2].mxu1  ;;  %v1365_v15 = vmul.f32 %v3863_v23, %v1269_v35 }
 0x2be   : > { %v2427_v4 = vpop.f32.mrb[3].mxu1 }
 0x2bf   : > { %1594 = vst [vmem:[#allocation4] sm:$0xff] %v1578_v2  ;;  %v1579_v16 = vadd.f32 %v2404_v27, %v1354_v51  ;;  %v1586_v19 = vadd.f32 %v2425_v11, %v1361_v25  ;;  %v2428_v29 = vadd.f32 %v2427_v4, %v2426_v5  ;;  %v1263_v51 = vld [vmem:[#allocation4 + $0x30] sm:$0xff] }
 0x2c0   : > { %v1359_v27 = vmul.f32 %v3851_v42, %v1263_v51  ;;  %v1271_v4 = vld [vmem:[#allocation4 + $0x70] sm:$0xff] }
 0x2c1   : > { %1595 = vst [vmem:[#allocation4 + $0x8] sm:$0xff] %v1579_v16  ;;  %1602 = vst [vmem:[#allocation4 + $0x40] sm:$0xff] %v1586_v19  ;;  %v1587_v26 = vadd.f32 %v2428_v29, %v1362_v61  ;;  %v1346_v61 = vpop.permute.xlu0 %1345  ;;  %v1360_v19 = vmul.f32 %v3857_v6, %v1264_v38 }
 0x2c3   : > { %1603 = vst [vmem:[#allocation4 + $0x48] sm:$0xff] %v1587_v26 }
 0x2c8   : > { %v2405_v21 = vpop.f32.mrb[4].mxu0 }
 0x2c9   : > { %v2406_v53 = vpop.f32.mrb[5].mxu0 }
 0x2ca   : > { %v2407_v44 = vadd.f32 %v2406_v53, %v2405_v21  ;;  %v2408_v28 = vpop.f32.mrb[6].mxu0  ;;  %v1351_v21 = vpop.permute.xlu1 %1350  ;;  %v1367_v53 = vmul.f32 %v1346_v61, %v1271_v4 }
 0x2cb   : > { %v2409_v45 = vpop.f32.mrb[7].mxu0 }
 0x2cc   : > { %v1580_v63 = vadd.f32 %v2407_v44, %v1355_v34  ;;  %v2410_v50 = vadd.f32 %v2409_v45, %v2408_v28  ;;  %v1368_v45 = vmul.f32 %v1351_v21, %v1272_v1 }
 0x2cd   : > { %v2429_v54 = vpop.f32.mrb[4].mxu1 }
 0x2ce   : > { %1596 = vst [vmem:[#allocation4 + $0x10] sm:$0xff] %v1580_v63  ;;  %v1581_v32 = vadd.f32 %v2410_v50, %v1356_v55  ;;  %v2430_v56 = vpop.f32.mrb[5].mxu1 }
 0x2cf   : > { %v2431_v57 = vadd.f32 %v2430_v56, %v2429_v54  ;;  %v2432_v3 = vpop.f32.mrb[6].mxu1 }
 0x2d0   : > { %1597 = vst [vmem:[#allocation4 + $0x18] sm:$0xff] %v1581_v32  ;;  %v2433_v37 = vpop.f32.mrb[7].mxu1 }
 0x2d1   : > { %v1588_v14 = vadd.f32 %v2431_v57, %v1363_v47  ;;  %v2434_v31 = vadd.f32 %v2433_v37, %v2432_v3 }
 0x2d3   : > { %1604 = vst [vmem:[#allocation4 + $0x50] sm:$0xff] %v1588_v14  ;;  %v1589_v13 = vadd.f32 %v2434_v31, %v1364_v41 }
 0x2d4   : > { %v2411_v36 = vpop.f32.mrb[8].mxu0 }
 0x2d5   : > { %v2412_v43 = vpop.f32.mrb[9].mxu0  ;;  %1605 = vst [vmem:[#allocation4 + $0x58] sm:$0xff] %v1589_v13 }
 0x2d6   : > { %v2413_v30 = vadd.f32 %v2412_v43, %v2411_v36  ;;  %v2414_v20 = vpop.f32.mrb[10].mxu0 }
 0x2d7   : > { %v2415_v8 = vpop.f32.mrb[11].mxu0 }
 0x2d8   : > { %v1582_v59 = vadd.f32 %v2413_v30, %v1357_v22  ;;  %v2416_v49 = vadd.f32 %v2415_v8, %v2414_v20  ;;  %v2435_v48 = vpop.f32.mrb[8].mxu1 }
 0x2d9   : > { %v2436_v62 = vpop.f32.mrb[9].mxu1 }
 0x2da   : > { %1598 = vst [vmem:[#allocation4 + $0x20] sm:$0xff] %v1582_v59  ;;  %v1583_v39 = vadd.f32 %v2416_v49, %v1358_v46  ;;  %v2437_v7 = vadd.f32 %v2436_v62, %v2435_v48  ;;  %v2438_v17 = vpop.f32.mrb[10].mxu1 }
 0x2db   : > { %v2439_v9 = vpop.f32.mrb[11].mxu1 }
 0x2dc   : > { %1599 = vst [vmem:[#allocation4 + $0x28] sm:$0xff] %v1583_v39  ;;  %v1590_v0 = vadd.f32 %v2437_v7, %v1365_v15  ;;  %v2440_v40 = vadd.f32 %v2439_v9, %v2438_v17  ;;  %v2417_v25 = vpop.f32.mrb[12].mxu0 }
 0x2dd   : > { %v2418_v2 = vpop.f32.mrb[13].mxu0 }
 0x2de   : > { %1606 = vst [vmem:[#allocation4 + $0x60] sm:$0xff] %v1590_v0  ;;  %v1591_v11 = vadd.f32 %v2440_v40, %v1366_v58  ;;  %v2419_v5 = vadd.f32 %v2418_v2, %v2417_v25  ;;  %v2420_v23 = vpop.f32.mrb[14].mxu0 }
 0x2df   : > { %v2421_v16 = vpop.f32.mrb[15].mxu0 }
 0x2e0   : > { %1607 = vst [vmem:[#allocation4 + $0x68] sm:$0xff] %v1591_v11  ;;  %v1584_v29 = vadd.f32 %v2419_v5, %v1359_v27  ;;  %v2422_v18 = vadd.f32 %v2421_v16, %v2420_v23  ;;  %v2441_v26 = vpop.f32.mrb[12].mxu1 }
 0x2e1   : > { %v2442_v10 = vpop.f32.mrb[13].mxu1 }
 0x2e2   : > { %1600 = vst [vmem:[#allocation4 + $0x30] sm:$0xff] %v1584_v29  ;;  %v1585_v34 = vadd.f32 %v2422_v18, %v1360_v19  ;;  %v2443_v42 = vadd.f32 %v2442_v10, %v2441_v26  ;;  %v2444_v44 = vpop.f32.mrb[14].mxu1 }
 0x2e3   : > { %v2445_v28 = vpop.f32.mrb[15].mxu1 }
 0x2e4   : > { %1601 = vst [vmem:[#allocation4 + $0x38] sm:$0xff] %v1585_v34  ;;  %v1592_v55 = vadd.f32 %v2443_v42, %v1367_v53  ;;  %v2446_v33 = vadd.f32 %v2445_v28, %v2444_v44 }
 0x2e6   : > { %1608 = vst [vmem:[#allocation4 + $0x70] sm:$0xff] %v1592_v55  ;;  %v1593_v63 = vadd.f32 %v2446_v33, %v1368_v45 }
 0x2e8   : > { %1609 = vst [vmem:[#allocation4 + $0x78] sm:$0xff] %v1593_v63 }
 0x2e9 PF: > { %v1637_v6 = vld [vmem:[#allocation3 + $0x40] sm:$0xff]  ;;  %v1638_v54 = vld [vmem:[#allocation3 + $0x48] sm:$0xff]  ;;  %v2786_v60 = vmov 0   ;;  %v1632_v56 = vld [vmem:[#allocation3 + $0x18] sm:$0xff] }
 0x2ea   : > { %v1629_v50 = vld [vmem:[#allocation3] sm:$0xff]  ;;  %2671 = vset.pattern.permute.xlu1 %v2786_v60  ;;  %2670 = vset.pattern.permute.xlu0 %v2786_v60  ;;  %2680 = vrcp.f32 %v1637_v6  ;;  %v1630_v32 = vld [vmem:[#allocation3 + $0x8] sm:$0xff]  ;;  %v1631_v47 = vld [vmem:[#allocation3 + $0x10] sm:$0xff] }
 0x2eb   : > { %2682 = vrcp.f32 %v1629_v50  ;;  %v1640_v57 = vld [vmem:[#allocation3 + $0x58] sm:$0xff]  ;;  %v2672_v3 = vld [vmem:[%s4055_s6] sm:$0xff]   ;;  %v1639_v37 = vld [vmem:[#allocation3 + $0x50] sm:$0xff] }
 0x2ec   : > { %2684 = vrcp.f32 %v1638_v54  ;;  %2463 = vmatprep.subr.bf16.mxu0 %v2672_v3  ;;  %2511 = vmatprep.subr.bf16.mxu1 %v2672_v3  ;;  %v1634_v14 = vld [vmem:[#allocation3 + $0x28] sm:$0xff]  ;;  %v1633_v36 = vld [vmem:[#allocation3 + $0x20] sm:$0xff]  ;;  %v2674_v20 = vld [vmem:[%s4055_s6 + $0x10] sm:$0xff]  }
 0x2ed   : > { %2686 = vrcp.f32 %v1630_v32  ;;  %2464 = vmatpush3.bf16.msra.mxu0 %v2672_v3  ;;  %2519 = vmatpush3.bf16.msra.mxu1 %v2672_v3  ;;  %v2673_v12 = vld [vmem:[%s4055_s6 + $0x8] sm:$0xff]   ;;  %v1641_v30 = vld [vmem:[#allocation3 + $0x60] sm:$0xff]  ;;  %v1636_v8 = vld [vmem:[#allocation3 + $0x38] sm:$0xff] }
 0x2ee   : > { %2688 = vrcp.f32 %v1632_v56  ;;  %2465 = vmatprep.subr.bf16.mxu0 %v2673_v12  ;;  %2512 = vmatprep.subr.bf16.mxu1 %v2673_v12  ;;  %v1642_v43 = vld [vmem:[#allocation3 + $0x68] sm:$0xff]  ;;  %v1635_v59 = vld [vmem:[#allocation3 + $0x30] sm:$0xff]  ;;  %v2675_v49 = vld [vmem:[%s4055_s6 + $0x18] sm:$0xff]  }
 0x2ef   : > { %2690 = vrcp.f32 %v1631_v47  ;;  %v1644_v24 = vld [vmem:[#allocation3 + $0x78] sm:$0xff]  ;;  %v1643_v15 = vld [vmem:[#allocation3 + $0x70] sm:$0xff]  ;;  %v2676_v39 = vld [vmem:[%s4055_s6 + $0x20] sm:$0xff]  }
 0x2f0   : > { %2692 = vrcp.f32 %v1640_v57  ;;  %v2677_v51 = vld [vmem:[%s4055_s6 + $0x28] sm:$0xff]   ;;  %v2678_v0 = vld [vmem:[%s4055_s6 + $0x30] sm:$0xff]   ;;  %v2679_v38 = vld [vmem:[%s4055_s6 + $0x38] sm:$0xff]  }
 0x2f1   : > { %2694 = vrcp.f32 %v1639_v37  ;;  %2466 = vmatpush3.bf16.msra.mxu0 %v2673_v12  ;;  %2520 = vmatpush3.bf16.msra.mxu1 %v2673_v12  ;;  %v1669_v27 = vld [vmem:[#allocation4 + $0x40] sm:$0xff]  ;;  %v1670_v19 = vld [vmem:[#allocation4 + $0x48] sm:$0xff]  ;;  %v1664_v44 = vld [vmem:[#allocation4 + $0x18] sm:$0xff] }
 0x2f2   : > { %2696 = vrcp.f32 %v1634_v14  ;;  %2467 = vmatprep.subr.bf16.mxu0 %v2674_v20  ;;  %2513 = vmatprep.subr.bf16.mxu1 %v2674_v20  ;;  %v1661_v11 = vld [vmem:[#allocation4] sm:$0xff]  ;;  %v1662_v18 = vld [vmem:[#allocation4 + $0x8] sm:$0xff]  ;;  %v1663_v45 = vld [vmem:[#allocation4 + $0x10] sm:$0xff] }
 0x2f3   : > { %2698 = vrcp.f32 %v1633_v36  ;;  %v3942_v5 = vld [vmem:[%s4054_s5] ss:$0 sm:$0xff]  ;;  %v1672_v32 = vld [vmem:[#allocation4 + $0x58] sm:$0xff]  ;;  %v1671_v47 = vld [vmem:[#allocation4 + $0x50] sm:$0xff] }
 0x2f4   : > { %v2681_v52 = vpop.eup %2680  ;;  %2700 = vrcp.f32 %v1642_v43  ;;  %v1666_v36 = vld [vmem:[#allocation4 + $0x28] sm:$0xff] }
 0x2f5   : > { %v2683_v41 = vpop.eup %2682  ;;  %1719 = vperm.xlu1 %2671, %v2681_v52   ;;  %2702 = vrcp.f32 %v1641_v30  ;;  %2468 = vmatpush3.bf16.msra.mxu0 %v2674_v20 }
 0x2f6   : > { %v2685_v31 = vpop.eup %2684  ;;  %1679 = vperm.xlu0 %2670, %v2683_v41   ;;  %2521 = vmatpush3.bf16.msra.mxu1 %v2674_v20  ;;  %2704 = vrcp.f32 %v1636_v8 }
 0x2f7   : > { %v2687_v13 = vpop.eup %2686  ;;  %2469 = vmatprep.subr.bf16.mxu0 %v2675_v49  ;;  %2514 = vmatprep.subr.bf16.mxu1 %v2675_v49  ;;  %2706 = vrcp.f32 %v1635_v59 }
 0x2f8   : > { %v2689_v22 = vpop.eup %2688  ;;  %2708 = vrcp.f32 %v1644_v24 }
 0x2f9   : > { %1724 = vperm.xlu1 %2671, %v2685_v31   ;;  %v2691_v35 = vpop.eup %2690  ;;  %2470 = vmatpush3.bf16.msra.mxu0 %v2675_v49  ;;  %2710 = vrcp.f32 %v1643_v15 }
 0x2fa   : > { %1684 = vperm.xlu0 %2670, %v2687_v13   ;;  %v2693_v46 = vpop.eup %2692  ;;  %2522 = vmatpush3.bf16.msra.mxu1 %v2675_v49  ;;  %v1665_v13 = vld [vmem:[#allocation4 + $0x20] sm:$0xff]  ;;  %v1674_v49 = vld [vmem:[#allocation4 + $0x68] sm:$0xff] }
 0x2fb   : > { %v2695_v48 = vpop.eup %2694  ;;  %2471 = vmatprep.subr.bf16.mxu0 %v2676_v39  ;;  %2515 = vmatprep.subr.bf16.mxu1 %v2676_v39 }
 0x2fc   : > { %v2697_v62 = vpop.eup %2696 }
 0x2fd   : > { %1694 = vperm.xlu1 %2671, %v2689_v22   ;;  %v2699_v7 = vpop.eup %2698  ;;  %2472 = vmatpush3.bf16.msra.mxu0 %v2676_v39 }
 0x2fe   : > { %1689 = vperm.xlu0 %2670, %v2691_v35   ;;  %v2701_v17 = vpop.eup %2700  ;;  %2523 = vmatpush3.bf16.msra.mxu1 %v2676_v39 }
 0x2ff   : > { %v2703_v9 = vpop.eup %2702  ;;  %2473 = vmatprep.subr.bf16.mxu0 %v2677_v51  ;;  %2516 = vmatprep.subr.bf16.mxu1 %v2677_v51 }
 0x300   : > { %v2705_v58 = vpop.eup %2704 }
 0x301   : > { %1734 = vperm.xlu1 %2671, %v2693_v46   ;;  %2474 = vmatpush3.bf16.msra.mxu0 %v2677_v51  ;;  %v2707_v40 = vpop.eup %2706 }
 0x302   : > { %1729 = vperm.xlu0 %2670, %v2695_v48   ;;  %2524 = vmatpush3.bf16.msra.mxu1 %v2677_v51  ;;  %v2709_v25 = vpop.eup %2708 }
 0x303   : > { %2475 = vmatprep.subr.bf16.mxu0 %v2678_v0  ;;  %2517 = vmatprep.subr.bf16.mxu1 %v2678_v0  ;;  %v2711_v2 = vpop.eup %2710 }
 0x305   : > { %1704 = vperm.xlu1 %2671, %v2697_v62   ;;  %2476 = vmatpush3.bf16.msra.mxu0 %v2678_v0  ;;  %v1673_v62 = vld [vmem:[#allocation4 + $0x60] sm:$0xff] }
 0x306   : > { %1699 = vperm.xlu0 %2670, %v2699_v7   ;;  %2525 = vmatpush3.bf16.msra.mxu1 %v2678_v0 }
 0x307   : > { %2477 = vmatprep.subr.bf16.mxu0 %v2679_v38  ;;  %2518 = vmatprep.subr.bf16.mxu1 %v2679_v38 }
 0x309   : > { %1744 = vperm.xlu1 %2671, %v2701_v17   ;;  %2478 = vmatpush3.bf16.msra.mxu0 %v2679_v38 }
 0x30a   : > { %1739 = vperm.xlu0 %2670, %v2703_v9   ;;  %2526 = vmatpush3.bf16.msra.mxu1 %v2679_v38  ;;  %v1668_v38 = vld [vmem:[#allocation4 + $0x38] sm:$0xff] }
 0x30d   : > { %1714 = vperm.xlu1 %2671, %v2705_v58  }
 0x30e   : > { %1709 = vperm.xlu0 %2670, %v2707_v40  }
 0x311   : > { %1754 = vperm.xlu1 %2671, %v2709_v25  }
 0x312   : > { %1749 = vperm.xlu0 %2670, %v2711_v2  }
 0x374   : > { %v1720_v23 = vpop.permute.xlu1 %1719 }
 0x375   : > { %v1765_v4 = vmul.f32 %v1720_v23, %v1669_v27  ;;  %v1680_v61 = vpop.permute.xlu0 %1679  ;;  %v1667_v23 = vld [vmem:[#allocation4 + $0x30] sm:$0xff] }
 0x376   : > { %v1757_v16 = vmul.f32 %v1680_v61, %v1661_v11 }
 0x377   : > { %v3945_v29 = vadd.f32 %v3942_v5, %v1765_v4 }
 0x378   : > { %v3948_v26 = vadd.f32 %v3942_v5, %v1757_v16  ;;  %v1725_v1 = vpop.permute.xlu1 %1724 }
 0x379   : > { %v1828_v21 = vmul.f32 1.442695, %v3945_v29  ;;  %v1766_v10 = vmul.f32 %v1725_v1, %v1670_v19  ;;  %v1685_v53 = vpop.permute.xlu0 %1684  ;;  %vm1804_vm0 = vcmp.gt.f32.partialorder %v3945_v29, 0.0 }
 0x37a   : > { %v1812_v34 = vmul.f32 1.442695, %v3948_v26  ;;  %v1758_v42 = vmul.f32 %v1685_v53, %v1662_v18  ;;  %vm1796_vm14 = vcmp.gt.f32.partialorder %v3948_v26, 0.0 }
 0x37b   : > { %v3953_v28 = vadd.f32 %v3942_v5, %v1766_v10 }
 0x37c   : > { %2712 = vpow2.f32 %v1812_v34  ;;  %v3956_v55 = vadd.f32 %v3942_v5, %v1758_v42  ;;  %v1695_v33 = vpop.permute.xlu1 %1694 }
 0x37d   : > { %2714 = vpow2.f32 %v1828_v21  ;;  %v1830_v63 = vmul.f32 1.442695, %v3953_v28  ;;  %v1760_v6 = vmul.f32 %v1695_v33, %v1664_v44  ;;  %v1690_v50 = vpop.permute.xlu0 %1689  ;;  %vm1805_vm12 = vcmp.gt.f32.partialorder %v3953_v28, 0.0 }
 0x37e   : > { %v1814_v54 = vmul.f32 1.442695, %v3956_v55  ;;  %v1759_v60 = vmul.f32 %v1690_v50, %v1663_v45  ;;  %vm1797_vm2 = vcmp.gt.f32.partialorder %v3956_v55, 0.0 }
 0x37f   : > { %2716 = vpow2.f32 %v1830_v63  ;;  %v3961_v56 = vadd.f32 %v3942_v5, %v1760_v6  ;;  %v1676_v63 = vld [vmem:[#allocation4 + $0x78] sm:$0xff] }
 0x380   : > { %2718 = vpow2.f32 %v1814_v54  ;;  %v3964_v57 = vadd.f32 %v3942_v5, %v1759_v60  ;;  %v1735_v3 = vpop.permute.xlu1 %1734  ;;  %v1675_v54 = vld [vmem:[#allocation4 + $0x70] sm:$0xff] }
 0x381   : > { %v1818_v37 = vmul.f32 1.442695, %v3961_v56  ;;  %v1768_v52 = vmul.f32 %v1735_v3, %v1672_v32  ;;  %v1730_v41 = vpop.permute.xlu0 %1729  ;;  %vm1799_vm4 = vcmp.gt.f32.partialorder %v3961_v56, 0.0 }
 0x382   : > { %v1816_v14 = vmul.f32 1.442695, %v3964_v57  ;;  %v1767_v31 = vmul.f32 %v1730_v41, %v1671_v47  ;;  %vm1798_vm5 = vcmp.gt.f32.partialorder %v3964_v57, 0.0 }
 0x383   : > { %2720 = vpow2.f32 %v1818_v37  ;;  %v3969_v12 = vadd.f32 %v3942_v5, %v1768_v52 }
 0x384   : > { %2722 = vpow2.f32 %v1816_v14  ;;  %v3972_v43 = vadd.f32 %v3942_v5, %v1767_v31  ;;  %v1705_v22 = vpop.permute.xlu1 %1704 }
 0x385   : > { %v1834_v30 = vmul.f32 1.442695, %v3969_v12  ;;  %v1762_v20 = vmul.f32 %v1705_v22, %v1666_v36  ;;  %v1700_v35 = vpop.permute.xlu0 %1699  ;;  %vm1807_vm7 = vcmp.gt.f32.partialorder %v3969_v12, 0.0 }
 0x386   : > { %v2713_v8 = vpop.eup %2712  ;;  %v1832_v46 = vmul.f32 1.442695, %v3972_v43  ;;  %v1761_v59 = vmul.f32 %v1700_v35, %v1665_v13  ;;  %vm1806_vm15 = vcmp.gt.f32.partialorder %v3972_v43, 0.0 }
 0x387   : > { %v2715_v48 = vpop.eup %2714  ;;  %2724 = vpow2.f32 %v1834_v30  ;;  %v3977_v24 = vadd.f32 %v3942_v5, %v1762_v20  ;;  %v2276_v58 = vadd.f32 -1.0, %v2713_v8 }
 0x388   : > { %2726 = vpow2.f32 %v1832_v46  ;;  %v3980_v15 = vadd.f32 %v3942_v5, %v1761_v59  ;;  %v1745_v39 = vpop.permute.xlu1 %1744  ;;  %v2284_v2 = vadd.f32 -1.0, %v2715_v48 }
 0x389   : > { %v2717_v7 = vpop.eup %2716  ;;  %v1822_v17 = vmul.f32 1.442695, %v3977_v24  ;;  %v1770_v51 = vmul.f32 %v1745_v39, %v1674_v49  ;;  %v1740_v9 = vpop.permute.xlu0 %1739  ;;  %v1860_v53 = vsel %vm1796_vm14, %v3948_v26, %v2276_v58  ;;  %vm1801_vm9 = vcmp.gt.f32.partialorder %v3977_v24, 0.0 }
 0x38a   : > { %v2719_v0 = vpop.eup %2718  ;;  %v1820_v40 = vmul.f32 1.442695, %v3980_v15  ;;  %v1769_v25 = vmul.f32 %v1740_v9, %v1673_v62  ;;  %v2285_v27 = vadd.f32 -1.0, %v2717_v7  ;;  %vm1800_vm8 = vcmp.gt.f32.partialorder %v3980_v15, 0.0 }
 0x38b   : > { %2728 = vpow2.f32 %v1822_v17  ;;  %v3987_v11 = vadd.f32 %v3942_v5, %v1770_v51  ;;  %v2277_v4 = vadd.f32 -1.0, %v2719_v0 }
 0x38c   : > { %2730 = vpow2.f32 %v1820_v40  ;;  %v3991_v61 = vadd.f32 %v3942_v5, %v1769_v25  ;;  %v1715_v16 = vpop.permute.xlu1 %1714  ;;  %v1869_v19 = vsel %vm1805_vm12, %v3953_v28, %v2285_v27  ;;  %v1868_v28 = vsel %vm1804_vm0, %v3945_v29, %v2284_v2 }
 0x38d   : > { %v2721_v18 = vpop.eup %2720  ;;  %v1838_v1 = vmul.f32 1.442695, %v3987_v11  ;;  %v1764_v21 = vmul.f32 %v1715_v16, %v1668_v38  ;;  %v1710_v10 = vpop.permute.xlu0 %1709  ;;  %v1861_v34 = vsel %vm1797_vm2, %v3956_v55, %v2277_v4  ;;  %v1880_v50 = vpack.c.bf16 %v1869_v19, %v1868_v28 }
 0x38e   : > { %v2723_v42 = vpop.eup %2722  ;;  %v1836_v44 = vmul.f32 1.442695, %v3991_v61  ;;  %v1763_v45 = vmul.f32 %v1710_v10, %v1667_v23  ;;  %v1876_v33 = vpack.c.bf16 %v1861_v34, %v1860_v53  ;;  %v2279_v32 = vadd.f32 -1.0, %v2721_v18 }
 0x38f   : > { %2732 = vpow2.f32 %v1838_v1  ;;  %v4005_v6 = vadd.f32 %v3942_v5, %v1764_v21  ;;  %v2278_v60 = vadd.f32 -1.0, %v2723_v42  ;;  %2487 = vmatprep.mubr.bf16.mxu1 %v1880_v50  ;;  %vm1809_vm1 = vcmp.gt.f32.partialorder %v3987_v11, 0.0  ;;  %v2292_v21 = vld [vmem:[%s4056_s7] ss:$0 sm:$0xff] }
 0x390   : > { %2734 = vpow2.f32 %v1836_v44  ;;  %v1786_v26 = vadd.f32 %v3942_v5, %v1763_v45  ;;  %2479 = vmatprep.mubr.bf16.mxu0 %v1876_v33  ;;  %v1755_v55 = vpop.permute.xlu1 %1754  ;;  %v1863_v36 = vsel %vm1799_vm4, %v3961_v56, %v2279_v32  ;;  %vm1808_vm3 = vcmp.gt.f32.partialorder %v3991_v61, 0.0 }
 0x391   : > { %v2725_v47 = vpop.eup %2724  ;;  %v1826_v29 = vmul.f32 1.442695, %v4005_v6  ;;  %v1772_v3 = vmul.f32 %v1755_v55, %v1676_v63  ;;  %v1750_v37 = vpop.permute.xlu0 %1749  ;;  %v1862_v52 = vsel %vm1798_vm5, %v3964_v57, %v2278_v60  ;;  %vm1803_vm6 = vcmp.gt.f32.partialorder %v4005_v6, 0.0 }
 0x392   : > { %v2727_v41 = vpop.eup %2726  ;;  %v1824_v14 = vmul.f32 1.442695, %v1786_v26  ;;  %v1771_v31 = vmul.f32 %v1750_v37, %v1675_v54  ;;  %v1877_v22 = vpack.c.bf16 %v1863_v36, %v1862_v52  ;;  %v2287_v35 = vadd.f32 -1.0, %v2725_v47 }
 0x393   : > { %2736 = vpow2.f32 %v1826_v29  ;;  %v1795_v13 = vadd.f32 %v3942_v5, %v1772_v3  ;;  %v2286_v30 = vadd.f32 -1.0, %v2727_v41  ;;  %vm1802_vm10 = vcmp.gt.f32.partialorder %v1786_v26, 0.0 }
 0x394   : > { %2738 = vpow2.f32 %v1824_v14  ;;  %v1794_v20 = vadd.f32 %v3942_v5, %v1771_v31  ;;  %2480 = vmatmul.mubr.bf16.vlgmr.msra.gmra.mrb[0].mxu0 %v1877_v22  ;;  %v1871_v49 = vsel %vm1807_vm7, %v3969_v12, %v2287_v35 }
 0x395   : > { %v2729_v8 = vpop.eup %2728  ;;  %v1842_v57 = vmul.f32 1.442695, %v1795_v13  ;;  %v1870_v46 = vsel %vm1806_vm15, %v3972_v43, %v2286_v30  ;;  %vm1811_vm11 = vcmp.gt.f32.partialorder %v1795_v13, 0.0 }
 0x396   : > { %v2731_v59 = vpop.eup %2730  ;;  %v1840_v56 = vmul.f32 1.442695, %v1794_v20  ;;  %v2281_v48 = vadd.f32 -1.0, %v2729_v8  ;;  %v1881_v62 = vpack.c.bf16 %v1871_v49, %v1870_v46  ;;  %vm1810_vm13 = vcmp.gt.f32.partialorder %v1794_v20, 0.0 }
 0x397   : > { %2740 = vpow2.f32 %v1842_v57  ;;  %v2280_v39 = vadd.f32 -1.0, %v2731_v59 }
 0x398   : > { %2742 = vpow2.f32 %v1840_v56  ;;  %v1865_v5 = vsel %vm1801_vm9, %v3977_v24, %v2281_v48  ;;  %2488 = vmatmul.mubr.bf16.vlgmr.msra.gmra.mrb[0].mxu1 %v1881_v62 }
 0x399   : > { %v2733_v7 = vpop.eup %2732  ;;  %v1864_v17 = vsel %vm1800_vm8, %v3980_v15, %v2280_v39 }
 0x39a   : > { %v2735_v43 = vpop.eup %2734  ;;  %v1878_v51 = vpack.c.bf16 %v1865_v5, %v1864_v17  ;;  %v2289_v9 = vadd.f32 -1.0, %v2733_v7 }
 0x39b   : > { %v2288_v12 = vadd.f32 -1.0, %v2735_v43 }
 0x39c   : > { %2483 = vmatprep.mubr.bf16.mxu0 %v1878_v51  ;;  %v1873_v58 = vsel %vm1809_vm1, %v3987_v11, %v2289_v9 }
 0x39d   : > { %v2737_v0 = vpop.eup %2736  ;;  %v1872_v40 = vsel %vm1808_vm3, %v3991_v61, %v2288_v12 }
 0x39e   : > { %v2739_v25 = vpop.eup %2738  ;;  %v1882_v24 = vpack.c.bf16 %v1873_v58, %v1872_v40  ;;  %v2283_v38 = vadd.f32 -1.0, %v2737_v0 }
 0x39f   : > { %v2282_v15 = vadd.f32 -1.0, %v2739_v25 }
 0x3a0   : > { %2491 = vmatprep.mubr.bf16.mxu1 %v1882_v24  ;;  %v1867_v2 = vsel %vm1803_vm6, %v4005_v6, %v2283_v38 }
 0x3a1   : > { %v2741_v27 = vpop.eup %2740  ;;  %v1866_v23 = vsel %vm1802_vm10, %v1786_v26, %v2282_v15 }
 0x3a2   : > { %v2743_v4 = vpop.eup %2742  ;;  %v1879_v16 = vpack.c.bf16 %v1867_v2, %v1866_v23  ;;  %v2291_v19 = vadd.f32 -1.0, %v2741_v27 }
 0x3a3   : > { %v2290_v11 = vadd.f32 -1.0, %v2743_v4 }
 0x3a4   : > { %2484 = vmatmul.mubr.bf16.gmra.mrb[4].mxu0 %v1879_v16  ;;  %v1875_v61 = vsel %vm1811_vm11, %v1795_v13, %v2291_v19 }
 0x3a5   : > { %v1874_v18 = vsel %vm1810_vm13, %v1794_v20, %v2290_v11 }
 0x3a6   : > { %v1883_v1 = vpack.c.bf16 %v1875_v61, %v1874_v18 }
 0x3a8   : > { %2492 = vmatmul.mubr.bf16.gmra.mrb[4].mxu1 %v1883_v1 }
 0x467   : > { %v2481_v10 = vpop.f32.mrb[0].mxu0 }
 0x468   : > { %v1998_v53 = vadd.f32 %v2481_v10, %v2292_v21  ;;  %v1989_v34 = vpop.f32.mrb[1].mxu0 }
 0x469   : > { %v1990_v42 = vadd.f32 %v2292_v21, %v1989_v34  ;;  %v2482_v44 = vpop.f32.mrb[2].mxu0 }
 0x46a   : > { %v2001_v45 = vadd.f32 %v2482_v44, %v2292_v21  ;;  %v1992_v33 = vpop.f32.mrb[3].mxu0  ;;  %v2054_v6 = vmax.f32 %v1998_v53, 0.0 }
 0x46b   : > { %v1993_v28 = vadd.f32 %v2292_v21, %v1992_v33  ;;  %v2489_v63 = vpop.f32.mrb[0].mxu1  ;;  %v2052_v26 = vmax.f32 %v1990_v42, 0.0 }
 0x46c   : > { %v2055_v50 = vmax.f32 %v2001_v45, 0.0  ;;  %v2030_v54 = vadd.f32 %v2489_v63, %v2292_v21  ;;  %v2021_v60 = vpop.f32.mrb[1].mxu1 }
 0x46d   : > { %v2053_v55 = vmax.f32 %v1993_v28, 0.0  ;;  %v2022_v32 = vadd.f32 %v2292_v21, %v2021_v60  ;;  %v2490_v47 = vpop.f32.mrb[2].mxu1 }
 0x46e   : > { %v2344_v29 = vpack.c.bf16 %v2055_v50, %v2054_v6  ;;  %v2033_v3 = vadd.f32 %v2490_v47, %v2292_v21  ;;  %v2024_v37 = vpop.f32.mrb[3].mxu1  ;;  %v2062_v14 = vmax.f32 %v2030_v54, 0.0 }
 0x46f   : > { %v2339_v52 = vpack.c.bf16 %v2053_v55, %v2052_v26  ;;  %v2025_v41 = vadd.f32 %v2292_v21, %v2024_v37  ;;  %v2060_v36 = vmax.f32 %v2022_v32, 0.0 }
 0x470   : > { %2376 = vst [vmem:[%s2914_s26 + $0x8] sm:$0xff] %v2344_v29   ;;  %v2063_v31 = vmax.f32 %v2033_v3, 0.0 }
 0x471   : > { %2340 = vst [vmem:[%s2914_s26] sm:$0xff] %v2339_v52   ;;  %v2061_v13 = vmax.f32 %v2025_v41, 0.0 }
 0x472   : > { %v2364_v22 = vpack.c.bf16 %v2063_v31, %v2062_v14 }
 0x473   : > { %v2359_v30 = vpack.c.bf16 %v2061_v13, %v2060_v36 }
 0x474   : > { %2380 = vst [vmem:[%s2914_s26 + $0x28] sm:$0xff] %v2364_v22  }
 0x475   : > { %2379 = vst [vmem:[%s2914_s26 + $0x20] sm:$0xff] %v2359_v30  }
 0x477   : > { %v2485_v20 = vpop.f32.mrb[4].mxu0 }
 0x478   : > { %v2014_v35 = vadd.f32 %v2485_v20, %v2292_v21  ;;  %v2005_v8 = vpop.f32.mrb[5].mxu0 }
 0x479   : > { %v2006_v57 = vadd.f32 %v2292_v21, %v2005_v8  ;;  %v2486_v46 = vpop.f32.mrb[6].mxu0 }
 0x47a   : > { %v2017_v59 = vadd.f32 %v2486_v46, %v2292_v21  ;;  %v2008_v56 = vpop.f32.mrb[7].mxu0  ;;  %v2058_v62 = vmax.f32 %v2014_v35, 0.0 }
 0x47b   : > { %v2009_v49 = vadd.f32 %v2292_v21, %v2008_v56  ;;  %v2493_v48 = vpop.f32.mrb[4].mxu1  ;;  %v2056_v17 = vmax.f32 %v2006_v57, 0.0 }
 0x47c   : > { %v2059_v39 = vmax.f32 %v2017_v59, 0.0  ;;  %v2046_v5 = vadd.f32 %v2493_v48, %v2292_v21  ;;  %v2037_v7 = vpop.f32.mrb[5].mxu1 }
 0x47d   : > { %v2057_v43 = vmax.f32 %v2009_v49, 0.0  ;;  %v2038_v51 = vadd.f32 %v2292_v21, %v2037_v7  ;;  %v2494_v9 = vpop.f32.mrb[6].mxu1 }
 0x47e   : > { %v2354_v12 = vpack.c.bf16 %v2059_v39, %v2058_v62  ;;  %v2049_v58 = vadd.f32 %v2494_v9, %v2292_v21  ;;  %v2040_v0 = vpop.f32.mrb[7].mxu1  ;;  %v2066_v24 = vmax.f32 %v2046_v5, 0.0 }
 0x47f   : > { %v2349_v40 = vpack.c.bf16 %v2057_v43, %v2056_v17  ;;  %v2041_v25 = vadd.f32 %v2292_v21, %v2040_v0  ;;  %v2064_v15 = vmax.f32 %v2038_v51, 0.0 }
 0x480   : > { %2378 = vst [vmem:[%s2914_s26 + $0x18] sm:$0xff] %v2354_v12   ;;  %v2067_v38 = vmax.f32 %v2049_v58, 0.0 }
 0x481   : > { %2377 = vst [vmem:[%s2914_s26 + $0x10] sm:$0xff] %v2349_v40   ;;  %v2065_v2 = vmax.f32 %v2041_v25, 0.0 }
 0x482   : > { %v2374_v27 = vpack.c.bf16 %v2067_v38, %v2066_v24 }
 0x483   : > { %v2369_v23 = vpack.c.bf16 %v2065_v2, %v2064_v15 }
 0x484   : > { %2382 = vst [vmem:[%s2914_s26 + $0x38] sm:$0xff] %v2374_v27  }
 0x485   : > { %2381 = vst [vmem:[%s2914_s26 + $0x30] sm:$0xff] %v2369_v23  }
 0x486 PF: > { %s24_s12 = sadd.s32 1, %s2780_s12   ;;  %s4172_s10 = smov %s2776_s11 }
 0x487   : > { %p21_p11 = scmp.ge.s32.totalorder %s24_s12, 4   ;;  %s4173_s11 = smov %s4175_s0 }
 0x489   :  { %23 = sbr.rel (!%p21_p11) target bundleno = 17 (0x11), region = 97 }

</bundles_post_ra>
